<compile_context>
chip_gen: v5e
topology: v5e:2x2
jax: 0.10.0
libtpu: 0.0.40
codegen_flags: <defaults>
</compile_context>

<pallas_src>
import functools

import jax
import jax.numpy as jnp
from jax.experimental import pallas as pl
from jax.experimental.pallas import tpu as pltpu


_LANE = 128


def _round_up(n, m):
    return ((n + m - 1) // m) * m


def _largest_divisor_leq(n, cap):
    cap = max(1, min(n, cap))
    for d in range(cap, 0, -1):
        if n % d == 0:
            return d
    return 1


def _vmem_budgets():
    """(vmem_limit_bytes, kernel-A per-step block budget) keyed off the TPU generation."""
    try:
        cap = int(pltpu.get_tpu_info().vmem_capacity_bytes)
    except Exception:
        cap = 64 << 20
    if cap >= (100 << 20):          # v4/v5e/v6e class: 128 MiB physical VMEM
        return 96 << 20, 24 << 20
    # v7x class (64 MiB physical) or unknown: stay inside the 32 MiB scoped default.
    return 32 << 20, 10 << 20


# ----------------------------------------------------------------------------
# Kernel A: fused 1x1-conv chain + MaxPool2d(2) + ReLU.
# Input block: (TR, 2, W2p, 2*Cp)  -- row parity on axis 1, col parity packed in lanes.
# Output block: (TR, W2p, COp)     -- pooled rows, lane-dense channels.
# W2p is a multiple of 8, so the (TR, W2p, Cp) <-> (TR*W2p, Cp) reshapes are free.
# ----------------------------------------------------------------------------
def _pw_pool_fused_kernel(x_ref, wc_ref, bc_ref, o_ref):
    # act_learn == 1 fast path: leaky_relu is identity, conv1/conv2 pre-multiplied.
    tr, _, w2p, c2 = x_ref.shape
    cp = c2 // 2
    xb = x_ref[...]
    wc = wc_ref[...]
    m = None
    for hp in range(2):                       # the four 2x2 pooling taps, same MXU RHS
        for wp in range(2):
            xt = xb[:, hp, :, wp * cp:(wp + 1) * cp].reshape(tr * w2p, cp)
            zt = jnp.dot(xt, wc, preferred_element_type=jnp.float32)
            m = zt if m is None else jnp.maximum(m, zt)
    m = jnp.maximum(m + bc_ref[...], 0.0)     # pool-invariant bias, then ReLU (commutes)
    o_ref[...] = m.reshape(tr, w2p, -1).astype(o_ref.dtype)


def _pw_pool_general_kernel(x_ref, w1_ref, b1_ref, w2_ref, b2_ref, o_ref, *, slope):
    # general act_learn path: keep conv1 / leaky_relu(slope) / conv2 separate.
    tr, _, w2p, c2 = x_ref.shape
    cp = c2 // 2
    xb = x_ref[...]
    w1 = w1_ref[...]
    w2m = w2_ref[...]
    b1 = b1_ref[...]
    m = None
    for hp in range(2):
        for wp in range(2):
            xt = xb[:, hp, :, wp * cp:(wp + 1) * cp].reshape(tr * w2p, cp)
            y = jnp.dot(xt, w1, preferred_element_type=jnp.float32) + b1
            y = jnp.where(y >= 0, y, slope * y)               # F.leaky_relu(y, act_learn)
            zt = jnp.dot(y.astype(w2m.dtype), w2m, preferred_element_type=jnp.float32)
            m = zt if m is None else jnp.maximum(m, zt)
    m = jnp.maximum(m + b2_ref[...], 0.0)
    o_ref[...] = m.reshape(tr, w2p, -1).astype(o_ref.dtype)


def _pw_pool_call(x4, mats, out_dtype, act_learn, vmem_limit, block_budget):
    mh2, _, w2p, c2 = x4.shape
    cp = c2 // 2
    cop = mats[-1].shape[-1]                   # last arg is the (1, COp) bias

    # Tile size: pooled rows per block, sized against the per-generation VMEM budget
    # (double-buffered in/out blocks + ~3 f32 (TR*W2p, COp) temporaries) and a cap of
    # ~2048 MXU rows per pooling tap.
    in_item = jnp.dtype(x4.dtype).itemsize
    out_item = jnp.dtype(out_dtype).itemsize
    bytes_per_row = w2p * (2 * 4 * cp * in_item + 2 * cop * out_item + 3 * cop * 4)
    cap = max(1, block_budget // max(1, bytes_per_row))
    cap = min(cap, max(1, 2048 // w2p))
    cap = min(cap, mh2)

    tr = _largest_divisor_leq(mh2, cap)
    if tr * 2 < cap:                           # awkward row count: pad rows, keep big tiles
        tr = cap
    mh2p = _round_up(mh2, tr)
    if mh2p != mh2:
        x4 = jnp.pad(x4, ((0, mh2p - mh2), (0, 0), (0, 0), (0, 0)))
    grid = (mh2p // tr,)

    x_spec = pl.BlockSpec((tr, 2, w2p, c2), lambda i: (i, 0, 0, 0))
    o_spec = pl.BlockSpec((tr, w2p, cop), lambda i: (i, 0, 0))
    cparams = pltpu.CompilerParams(dimension_semantics=("parallel",),
                                   vmem_limit_bytes=vmem_limit)

    if act_learn == 1.0:
        wc, bc = mats
        kernel = _pw_pool_fused_kernel
        in_specs = [x_spec,
                    pl.BlockSpec((cp, cop), lambda i: (0, 0)),
                    pl.BlockSpec((1, cop), lambda i: (0, 0))]
        args = (x4, wc, bc)
    else:
        w1p, b1p, w2p_, b2p = mats
        kernel = functools.partial(_pw_pool_general_kernel, slope=float(act_learn))
        in_specs = [x_spec,
                    pl.BlockSpec((cp, cp), lambda i: (0, 0)),
                    pl.BlockSpec((1, cp), lambda i: (0, 0)),
                    pl.BlockSpec((cp, cop), lambda i: (0, 0)),
                    pl.BlockSpec((1, cop), lambda i: (0, 0))]
        args = (x4, w1p, b1p, w2p_, b2p)

    out = pl.pallas_call(
        kernel,
        out_shape=jax.ShapeDtypeStruct((mh2p, w2p, cop), out_dtype),
        grid=grid,
        in_specs=in_specs,
        out_specs=o_spec,
        compiler_params=cparams,
    )(*args)
    return out[:mh2]                            # strip padded rows (fuses with next pass)


# ----------------------------------------------------------------------------
# Kernel B: depthwise KxK conv (padding pre-applied) + folded BN3.
# Grid (N, COp/128): channels are independent, so blocks are lane-dense and halo-free.
# The K*K tap loop runs per small output-row strip so the f32 accumulator stays in
# vregs; input slabs stay in the stored dtype (bf16) and widen to f32 only at the MAC.
# ----------------------------------------------------------------------------
def _dw_bn_kernel(x_ref, w_ref, off_ref, o_ref, *, ksize, strip_rows):
    _, h2, w2, c = o_ref.shape
    w = w_ref[...]                              # (K, K, C) f32 with BN3 scale folded in
    off = off_ref[...]                          # (1, C) f32
    for r0 in range(0, h2, strip_rows):
        sr = min(strip_rows, h2 - r0)
        acc = jnp.zeros((sr, w2, c), jnp.float32)
        for kh in range(ksize):
            slab = x_ref[0, r0 + kh:r0 + kh + sr, :, :].astype(jnp.float32)  # (sr, Wp, C)
            for kw in range(ksize):
                acc = acc + slab[:, kw:kw + w2, :] * w[kh, kw, :]
        o_ref[0, r0:r0 + sr, :, :] = (acc + off).astype(o_ref.dtype)


def _dw_bn_call(xpad, wdw, off, act_num, out_dtype, vmem_limit):
    n, hp_, wp_, cop = xpad.shape
    k = 2 * act_num + 1
    h2, w2 = hp_ - 2 * act_num, wp_ - 2 * act_num
    # Keep the strip accumulator <= ~16 vregs (strip*W2 <= 128 sublanes of f32).
    strip = max(1, min(8, 128 // max(1, w2), h2))
    grid = (n, cop // _LANE)
    return pl.pallas_call(
        functools.partial(_dw_bn_kernel, ksize=k, strip_rows=strip),
        out_shape=jax.ShapeDtypeStruct((n, h2, w2, cop), out_dtype),
        grid=grid,
        in_specs=[
            pl.BlockSpec((1, hp_, wp_, _LANE), lambda b, c: (b, 0, 0, c)),
            pl.BlockSpec((k, k, _LANE), lambda b, c: (0, 0, c)),
            pl.BlockSpec((1, _LANE), lambda b, c: (0, c)),
        ],
        out_specs=pl.BlockSpec((1, h2, w2, _LANE), lambda b, c: (b, 0, 0, c)),
        compiler_params=pltpu.CompilerParams(
            dimension_semantics=("parallel", "parallel"),
            vmem_limit_bytes=vmem_limit),
    )(xpad, wdw, off)


# ----------------------------------------------------------------------------
# Block forward (wrapper): BN folding, channel/width padding, free reshapes.
# ----------------------------------------------------------------------------
def _fold_conv_bn(W, b, gamma, beta, mean, var, eps):
    s = gamma / jnp.sqrt(var + eps)
    return W * s[:, None], b * s + beta - mean * s


def _block_core_nhwc(x, params, act_num, act_learn, mm_dtype):
    eps = 1e-6                                             # nn.BatchNorm2d(..., eps=1e-06)
    n, h, w, c = x.shape
    assert h % 2 == 0 and w % 2 == 0, "MaxPool2d(2) requires even H, W"
    co = params["W2"].shape[0]
    cp, cop = _round_up(c, _LANE), _round_up(co, _LANE)
    h2, w2 = h // 2, w // 2
    w2a = _round_up(w2, 8)                                 # sublane-aligned pooled width
    pad_w = 2 * (w2a - w2)

    vmem_limit, block_budget = _vmem_budgets()

    # Fold BN1/BN2 scale into the 1x1 conv weights (per output channel).
    w1f, b1f = _fold_conv_bn(params["W1"], params["b1"], params["gamma1"],
                             params["beta1"], params["mean1"], params["var1"], eps)
    w2f, b2f = _fold_conv_bn(params["W2"], params["b2"], params["gamma2"],
                             params["beta2"], params["mean2"], params["var2"], eps)
    w1t, w2t = w1f.T, w2f.T                                # x @ W layout: (Cin, Cout)

    store_dtype = jnp.bfloat16 if mm_dtype == jnp.bfloat16 else jnp.float32

    # Lane-dense channel pad + width pad + mm_dtype cast in one fused wrapper pass,
    # then a free reshape exposing the 2x2 pooling taps.
    xp = jnp.pad(x, ((0, 0), (0, 0), (0, pad_w), (0, cp - c))).astype(mm_dtype)
    x4 = xp.reshape(n * h2, 2, w2a, 2 * cp)                # (N*H/2, Hparity, W2p, Wparity*Cp)

    if act_learn == 1.0:
        # leaky_relu(slope=1) == identity -> collapse conv1/conv2 into one matmul.
        # (exact float compare on a static arg; act_learn=0.9999 takes the general path)
        wc = w1t @ w2t
        bc = b1f @ w2t + b2f
        wc = jnp.pad(wc, ((0, cp - c), (0, cop - co))).astype(mm_dtype)
        bc = jnp.pad(bc, (0, cop - co)).reshape(1, cop)    # bias stays f32
        pooled = _pw_pool_call(x4, (wc, bc), store_dtype, 1.0, vmem_limit, block_budget)
    else:
        w1p = jnp.pad(w1t, ((0, cp - c), (0, cp - c))).astype(mm_dtype)
        b1p = jnp.pad(b1f, (0, cp - c)).reshape(1, cp)
        w2p_ = jnp.pad(w2t, ((0, cp - c), (0, cop - co))).astype(mm_dtype)
        b2p = jnp.pad(b2f, (0, cop - co)).reshape(1, cop)
        pooled = _pw_pool_call(x4, (w1p, b1p, w2p_, b2p), store_dtype, float(act_learn),
                               vmem_limit, block_budget)

    # activation module: ReLU was fused into kernel A (commutes with max-pool);
    # BN3 scale folded into the depthwise taps, offset added in the kernel.
    s3 = params["gamma3"] / jnp.sqrt(params["var3"] + eps)
    wdw = jnp.transpose(params["Wact"] * s3[:, None, None], (1, 2, 0))     # (K, K, CO)
    wdw = jnp.pad(wdw, ((0, 0), (0, 0), (0, cop - co)))
    off3 = jnp.pad(params["beta3"] - params["mean3"] * s3, (0, cop - co)).reshape(1, cop)

    pooled = pooled.reshape(n, h2, w2a, cop)[:, :, :w2, :]         # strip width pad
    xpad = jnp.pad(pooled, ((0, 0), (act_num, act_num), (act_num, act_num), (0, 0)))
    out = _dw_bn_call(xpad, wdw, off3, act_num, jnp.float32, vmem_limit)
    return out[..., :co]                                   # NHWC, channel pad stripped


@functools.partial(jax.jit, static_argnames=("act_num", "act_learn", "mm_dtype"))
def block_forward_nhwc(x_nhwc, params, act_num=3, act_learn=1.0, mm_dtype=jnp.bfloat16):
    """NHWC-in / NHWC-out entry point for chaining Blocks without NCHW transposes."""
    return _block_core_nhwc(x_nhwc, params, act_num, act_learn, mm_dtype)


@functools.partial(jax.jit, static_argnames=("act_num", "act_learn", "mm_dtype"))
def block_forward(x_nchw, params, act_num=3, act_learn=1.0, mm_dtype=jnp.bfloat16):
    """PyTorch-compatible NCHW interface."""
    x = jnp.transpose(x_nchw, (0, 2, 3, 1))                # NCHW -> NHWC
    out = _block_core_nhwc(x, params, act_num, act_learn, mm_dtype)
    return jnp.transpose(out, (0, 3, 1, 2))                # NHWC -> NCHW


# ----------------------------------------------------------------------------
# Pure-JAX reference (no Pallas) for correctness checks.
# ----------------------------------------------------------------------------
def block_reference(x_nchw, params, act_num=3, act_learn=1.0, eps=1e-6):
    x = jnp.transpose(x_nchw, (0, 2, 3, 1)).astype(jnp.float32)
    n, h, w, c = x.shape
    xf = x.reshape(-1, c)
    v = xf @ params["W1"].T + params["b1"]
    v = (v - params["mean1"]) / jnp.sqrt(params["var1"] + eps) * params["gamma1"] + params["beta1"]
    v = jnp.where(v >= 0, v, act_learn * v)
    v = v @ params["W2"].T + params["b2"]
    v = (v - params["mean2"]) / jnp.sqrt(params["var2"] + eps) * params["gamma2"] + params["beta2"]
    co = params["W2"].shape[0]
    v = v.reshape(n, h, w, co)
    p = v.reshape(n, h // 2, 2, w // 2, 2, co).max(axis=(2, 4))     # MaxPool2d(2)
    r = jnp.maximum(p, 0.0)                                          # ReLU
    rp = jnp.pad(r, ((0, 0), (act_num, act_num), (act_num, act_num), (0, 0)))
    k = 2 * act_num + 1
    h2, w2 = h // 2, w // 2
    acc = jnp.zeros((n, h2, w2, co), jnp.float32)
    for kh in range(k):
        for kw in range(k):
            acc = acc + rp[:, kh:kh + h2, kw:kw + w2, :] * params["Wact"][:, kh, kw]
    acc = (acc - params["mean3"]) / jnp.sqrt(params["var3"] + eps) * params["gamma3"] + params["beta3"]
    return jnp.transpose(acc, (0, 3, 1, 2))


def make_params(key, dim, dim_out, act_num, wscale=0.1):
    ks = jax.random.split(key, 17)
    f32 = jnp.float32
    k = 2 * act_num + 1
    return {
        # conv1: Conv2d(dim, dim, 1) weight squeezed to (out, in)
        "W1": wscale * jax.random.normal(ks[0], (dim, dim), f32),
        "b1": 0.1 * jax.random.normal(ks[1], (dim,), f32),
        "gamma1": 1.0 + 0.1 * jax.random.normal(ks[2], (dim,), f32),
        "beta1": 0.1 * jax.random.normal(ks[3], (dim,), f32),
        "mean1": 0.1 * jax.random.normal(ks[4], (dim,), f32),
        "var1": jax.random.uniform(ks[5], (dim,), f32, 0.5, 1.5),
        # conv2: Conv2d(dim, dim_out, 1)
        "W2": wscale * jax.random.normal(ks[6], (dim_out, dim), f32),
        "b2": 0.1 * jax.random.normal(ks[7], (dim_out,), f32),
        "gamma2": 1.0 + 0.1 * jax.random.normal(ks[8], (dim_out,), f32),
        "beta2": 0.1 * jax.random.normal(ks[9], (dim_out,), f32),
        "mean2": 0.1 * jax.random.normal(ks[10], (dim_out,), f32),
        "var2": jax.random.uniform(ks[11], (dim_out,), f32, 0.5, 1.5),
        # activation: depthwise weight (dim_out, 1, K, K) squeezed to (dim_out, K, K)
        "Wact": 0.02 * jax.random.normal(ks[12], (dim_out, k, k), f32),
        "gamma3": 1.0 + 0.1 * jax.random.normal(ks[13], (dim_out,), f32),
        "beta3": 0.1 * jax.random.normal(ks[14], (dim_out,), f32),
        "mean3": 0.1 * jax.random.normal(ks[15], (dim_out,), f32),
        "var3": jax.random.uniform(ks[16], (dim_out,), f32, 0.5, 1.5),
    }


if __name__ == "__main__":
    key = jax.random.PRNGKey(0)
    kp, kx, kp2, kx2, kp3, kx3 = jax.random.split(key, 6)

    # 1) Tiny config, f32 operands, act_learn == 1 (fused single-matmul path) — strict.
    dim, dim_out, act_num = 4, 8, 3
    n, h, w = 2, 16, 16
    params = make_params(kp, dim, dim_out, act_num, wscale=0.1)
    x = jax.random.normal(kx, (n, dim, h, w), jnp.float32)         # NCHW like PyTorch

    out = jax.block_until_ready(
        block_forward(x, params, act_num=act_num, act_learn=1.0, mm_dtype=jnp.float32))
    ref = block_reference(x, params, act_num=act_num, act_learn=1.0)
    assert out.shape == (n, dim_out, h // 2, w // 2), out.shape
    assert jnp.allclose(out, ref, rtol=1e-4, atol=1e-4), float(jnp.max(jnp.abs(out - ref)))

    # 2) General leaky_relu path (act_learn != 1) — strict.
    out_g = jax.block_until_ready(
        block_forward(x, params, act_num=act_num, act_learn=0.25, mm_dtype=jnp.float32))
    ref_g = block_reference(x, params, act_num=act_num, act_learn=0.25)
    assert jnp.allclose(out_g, ref_g, rtol=1e-4, atol=1e-4), float(jnp.max(jnp.abs(out_g - ref_g)))

    # 3) Pooled width not a multiple of 8 (exercises the wrapper width-pad path) — strict.
    dim3, dim_out3 = 8, 16
    params3 = make_params(kp3, dim3, dim_out3, act_num, wscale=0.1)
    x3 = jax.random.normal(kx3, (2, dim3, 12, 28), jnp.float32)    # H2=6, W2=14
    out3 = jax.block_until_ready(
        block_forward(x3, params3, act_num=act_num, act_learn=1.0, mm_dtype=jnp.float32))
    ref3 = block_reference(x3, params3, act_num=act_num, act_learn=1.0)
    assert out3.shape == (2, dim_out3, 6, 14), out3.shape
    assert jnp.allclose(out3, ref3, rtol=1e-4, atol=1e-4), float(jnp.max(jnp.abs(out3 - ref3)))

    # 4) Larger VanillaNet-like config with the default bf16 MXU path (f32 accumulate).
    dim_b, dim_out_b, hb, wb = 96, 192, 64, 64
    params_b = make_params(kp2, dim_b, dim_out_b, act_num, wscale=0.05)
    xb = jax.random.normal(kx2, (n, dim_b, hb, wb), jnp.float32)
    out_b = jax.block_until_ready(block_forward(xb, params_b, act_num=act_num, act_learn=1.0))
    ref_b = block_reference(xb, params_b, act_num=act_num, act_learn=1.0)
    assert out_b.shape == (n, dim_out_b, hb // 2, wb // 2), out_b.shape
    assert jnp.allclose(out_b, ref_b, rtol=5e-2, atol=5e-2), float(jnp.max(jnp.abs(out_b - ref_b)))

    print("KERNEL_OK")
</pallas_src>

<mosaic_0001>
module attributes {stable_mosaic.version = 11 : i64} {
  func.func @_pw_pool_fused_kernel(%arg0: i32, %arg1: memref<16x2x8x256xf32, #tpu.memory_space<vmem>>, %arg2: memref<128x128xf32, #tpu.memory_space<vmem>>, %arg3: memref<1x128xf32, #tpu.memory_space<vmem>>, %arg4: memref<16x8x128xf32, #tpu.memory_space<vmem>>) attributes {dimension_semantics = [#tpu.dimension_semantics<parallel>], iteration_bounds = array<i64: 1>, scalar_prefetch = 0 : i64, scratch_operands = 0 : i64, tpu.core_type = #tpu.core_type<tc>, window_params = [{transform_indices = @transform_0, window_bounds = array<i64: 16, 2, 8, 256>}, {pipeline_mode = #tpu.pipeline_mode<synchronous>, transform_indices = @transform_1, window_bounds = array<i64: 128, 128>}, {pipeline_mode = #tpu.pipeline_mode<synchronous>, transform_indices = @transform_2, window_bounds = array<i64: 1, 128>}, {transform_indices = @transform_3, window_bounds = array<i64: 16, 8, 128>}]} {
    %c0 = arith.constant 0 : index
    %c0_0 = arith.constant 0 : index
    %c0_1 = arith.constant 0 : index
    %c0_2 = arith.constant 0 : index
    %0 = vector.load %arg1[%c0, %c0_0, %c0_1, %c0_2] : memref<16x2x8x256xf32, #tpu.memory_space<vmem>>, vector<16x2x8x256xf32>
    %c0_3 = arith.constant 0 : index
    %c0_4 = arith.constant 0 : index
    %1 = vector.load %arg2[%c0_3, %c0_4] : memref<128x128xf32, #tpu.memory_space<vmem>>, vector<128x128xf32>
    %2 = vector.extract_strided_slice %0 {offsets = [0, 0, 0, 0], sizes = [16, 1, 8, 128], strides = [1, 1, 1, 1]} : vector<16x2x8x256xf32> to vector<16x1x8x128xf32>
    %3 = vector.shape_cast %2 : vector<16x1x8x128xf32> to vector<16x8x128xf32>
    %4 = vector.shape_cast %3 : vector<16x8x128xf32> to vector<128x128xf32>
    %cst = arith.constant dense<0.000000e+00> : vector<128x128xf32>
    %5 = tpu.matmul %4, %1, %cst {dimension_numbers = #tpu.dot_dimension_numbers<[1], [0], [0], [1], [0, 0, 1, 1], [], []>} : vector<128x128xf32>, vector<128x128xf32>, vector<128x128xf32> -> vector<128x128xf32>
    %6 = vector.extract_strided_slice %0 {offsets = [0, 0, 0, 128], sizes = [16, 1, 8, 128], strides = [1, 1, 1, 1]} : vector<16x2x8x256xf32> to vector<16x1x8x128xf32>
    %7 = vector.shape_cast %6 : vector<16x1x8x128xf32> to vector<16x8x128xf32>
    %8 = vector.shape_cast %7 : vector<16x8x128xf32> to vector<128x128xf32>
    %cst_5 = arith.constant dense<0.000000e+00> : vector<128x128xf32>
    %9 = tpu.matmul %8, %1, %cst_5 {dimension_numbers = #tpu.dot_dimension_numbers<[1], [0], [0], [1], [0, 0, 1, 1], [], []>} : vector<128x128xf32>, vector<128x128xf32>, vector<128x128xf32> -> vector<128x128xf32>
    %10 = arith.maximumf %5, %9 : vector<128x128xf32>
    %11 = vector.extract_strided_slice %0 {offsets = [0, 1, 0, 0], sizes = [16, 1, 8, 128], strides = [1, 1, 1, 1]} : vector<16x2x8x256xf32> to vector<16x1x8x128xf32>
    %12 = vector.shape_cast %11 : vector<16x1x8x128xf32> to vector<16x8x128xf32>
    %13 = vector.shape_cast %12 : vector<16x8x128xf32> to vector<128x128xf32>
    %cst_6 = arith.constant dense<0.000000e+00> : vector<128x128xf32>
    %14 = tpu.matmul %13, %1, %cst_6 {dimension_numbers = #tpu.dot_dimension_numbers<[1], [0], [0], [1], [0, 0, 1, 1], [], []>} : vector<128x128xf32>, vector<128x128xf32>, vector<128x128xf32> -> vector<128x128xf32>
    %15 = arith.maximumf %10, %14 : vector<128x128xf32>
    %16 = vector.extract_strided_slice %0 {offsets = [0, 1, 0, 128], sizes = [16, 1, 8, 128], strides = [1, 1, 1, 1]} : vector<16x2x8x256xf32> to vector<16x1x8x128xf32>
    %17 = vector.shape_cast %16 : vector<16x1x8x128xf32> to vector<16x8x128xf32>
    %18 = vector.shape_cast %17 : vector<16x8x128xf32> to vector<128x128xf32>
    %cst_7 = arith.constant dense<0.000000e+00> : vector<128x128xf32>
    %19 = tpu.matmul %18, %1, %cst_7 {dimension_numbers = #tpu.dot_dimension_numbers<[1], [0], [0], [1], [0, 0, 1, 1], [], []>} : vector<128x128xf32>, vector<128x128xf32>, vector<128x128xf32> -> vector<128x128xf32>
    %20 = arith.maximumf %15, %19 : vector<128x128xf32>
    %c0_8 = arith.constant 0 : index
    %c0_9 = arith.constant 0 : index
    %21 = vector.load %arg3[%c0_8, %c0_9] : memref<1x128xf32, #tpu.memory_space<vmem>>, vector<1x128xf32>
    %22 = vector.broadcast %21 : vector<1x128xf32> to vector<128x128xf32>
    %23 = arith.addf %20, %22 : vector<128x128xf32>
    %cst_10 = arith.constant 0.000000e+00 : f32
    %24 = vector.broadcast %cst_10 : f32 to vector<128x128xf32>
    %25 = arith.maximumf %23, %24 : vector<128x128xf32>
    %26 = vector.shape_cast %25 : vector<128x128xf32> to vector<16x8x128xf32>
    %c0_11 = arith.constant 0 : index
    %c0_12 = arith.constant 0 : index
    %c0_13 = arith.constant 0 : index
    %27 = vector.load %arg4[%c0_11, %c0_12, %c0_13] : memref<16x8x128xf32, #tpu.memory_space<vmem>>, vector<16x8x128xf32>
    tpu.vector_store %arg4[%c0_11, %c0_12, %c0_13], %26 {strides = array<i32>} : memref<16x8x128xf32, #tpu.memory_space<vmem>>, vector<16x8x128xf32>,
    return
  }
  func.func @transform_0(%arg0: i32) -> (i32, i32, i32, i32) {
    %c0_i32 = arith.constant 0 : i32
    %c0_i32_0 = arith.constant 0 : i32
    %c0_i32_1 = arith.constant 0 : i32
    %c0_i32_2 = arith.constant 0 : i32
    return %arg0, %c0_i32, %c0_i32_0, %c0_i32_1 : i32, i32, i32, i32
  }
  func.func @transform_1(%arg0: i32) -> (i32, i32) {
    %c0_i32 = arith.constant 0 : i32
    %c0_i32_0 = arith.constant 0 : i32
    %c0_i32_1 = arith.constant 0 : i32
    return %c0_i32, %c0_i32_0 : i32, i32
  }
  func.func @transform_2(%arg0: i32) -> (i32, i32) {
    %c0_i32 = arith.constant 0 : i32
    %c0_i32_0 = arith.constant 0 : i32
    %c0_i32_1 = arith.constant 0 : i32
    return %c0_i32, %c0_i32_0 : i32, i32
  }
  func.func @transform_3(%arg0: i32) -> (i32, i32, i32) {
    %c0_i32 = arith.constant 0 : i32
    %c0_i32_0 = arith.constant 0 : i32
    %c0_i32_1 = arith.constant 0 : i32
    return %arg0, %c0_i32, %c0_i32_0 : i32, i32, i32
  }
}

module attributes {stable_mosaic.version = 11 : i64} {
  func.func @_dw_bn_kernel(%arg0: i32, %arg1: i32, %arg2: memref<1x14x14x128xf32, #tpu.memory_space<vmem>>, %arg3: memref<7x7x128xf32, #tpu.memory_space<vmem>>, %arg4: memref<1x128xf32, #tpu.memory_space<vmem>>, %arg5: memref<1x8x8x128xf32, #tpu.memory_space<vmem>>) attributes {dimension_semantics = [#tpu.dimension_semantics<parallel>, #tpu.dimension_semantics<parallel>], iteration_bounds = array<i64: 2, 1>, scalar_prefetch = 0 : i64, scratch_operands = 0 : i64, tpu.core_type = #tpu.core_type<tc>, window_params = [{transform_indices = @transform_0, window_bounds = array<i64: 1, 14, 14, 128>}, {transform_indices = @transform_1, window_bounds = array<i64: 7, 7, 128>}, {transform_indices = @transform_2, window_bounds = array<i64: 1, 128>}, {transform_indices = @transform_3, window_bounds = array<i64: 1, 8, 8, 128>}]} {
    %c0 = arith.constant 0 : index
    %c0_0 = arith.constant 0 : index
    %c0_1 = arith.constant 0 : index
    %0 = vector.load %arg3[%c0, %c0_0, %c0_1] : memref<7x7x128xf32, #tpu.memory_space<vmem>>, vector<7x7x128xf32>
    %c0_2 = arith.constant 0 : index
    %c0_3 = arith.constant 0 : index
    %1 = vector.load %arg4[%c0_2, %c0_3] : memref<1x128xf32, #tpu.memory_space<vmem>>, vector<1x128xf32>
    %cst = arith.constant 0.000000e+00 : f32
    %2 = vector.broadcast %cst : f32 to vector<8x8x128xf32>
    %c0_4 = arith.constant 0 : index
    %c0_5 = arith.constant 0 : index
    %c0_6 = arith.constant 0 : index
    %c0_7 = arith.constant 0 : index
    %3 = vector.load %arg2[%c0_4, %c0_5, %c0_6, %c0_7] : memref<1x14x14x128xf32, #tpu.memory_space<vmem>>, vector<1x8x14x128xf32>
    %4 = vector.shape_cast %3 : vector<1x8x14x128xf32> to vector<8x14x128xf32>
    %5 = vector.extract_strided_slice %4 {offsets = [0, 0, 0], sizes = [8, 8, 128], strides = [1, 1, 1]} : vector<8x14x128xf32> to vector<8x8x128xf32>
    %6 = vector.extract_strided_slice %0 {offsets = [0, 0, 0], sizes = [1, 1, 128], strides = [1, 1, 1]} : vector<7x7x128xf32> to vector<1x1x128xf32>
    %7 = vector.shape_cast %6 : vector<1x1x128xf32> to vector<128xf32>
    %8 = vector.shape_cast %7 : vector<128xf32> to vector<1x1x128xf32>
    %9 = vector.broadcast %8 : vector<1x1x128xf32> to vector<8x8x128xf32>
    %10 = arith.mulf %5, %9 : vector<8x8x128xf32>
    %11 = arith.addf %2, %10 : vector<8x8x128xf32>
    %12 = vector.extract_strided_slice %4 {offsets = [0, 1, 0], sizes = [8, 8, 128], strides = [1, 1, 1]} : vector<8x14x128xf32> to vector<8x8x128xf32>
    %13 = vector.extract_strided_slice %0 {offsets = [0, 1, 0], sizes = [1, 1, 128], strides = [1, 1, 1]} : vector<7x7x128xf32> to vector<1x1x128xf32>
    %14 = vector.shape_cast %13 : vector<1x1x128xf32> to vector<128xf32>
    %15 = vector.shape_cast %14 : vector<128xf32> to vector<1x1x128xf32>
    %16 = vector.broadcast %15 : vector<1x1x128xf32> to vector<8x8x128xf32>
    %17 = arith.mulf %12, %16 : vector<8x8x128xf32>
    %18 = arith.addf %11, %17 : vector<8x8x128xf32>
    %19 = vector.extract_strided_slice %4 {offsets = [0, 2, 0], sizes = [8, 8, 128], strides = [1, 1, 1]} : vector<8x14x128xf32> to vector<8x8x128xf32>
    %20 = vector.extract_strided_slice %0 {offsets = [0, 2, 0], sizes = [1, 1, 128], strides = [1, 1, 1]} : vector<7x7x128xf32> to vector<1x1x128xf32>
    %21 = vector.shape_cast %20 : vector<1x1x128xf32> to vector<128xf32>
    %22 = vector.shape_cast %21 : vector<128xf32> to vector<1x1x128xf32>
    %23 = vector.broadcast %22 : vector<1x1x128xf32> to vector<8x8x128xf32>
    %24 = arith.mulf %19, %23 : vector<8x8x128xf32>
    %25 = arith.addf %18, %24 : vector<8x8x128xf32>
    %26 = vector.extract_strided_slice %4 {offsets = [0, 3, 0], sizes = [8, 8, 128], strides = [1, 1, 1]} : vector<8x14x128xf32> to vector<8x8x128xf32>
    %27 = vector.extract_strided_slice %0 {offsets = [0, 3, 0], sizes = [1, 1, 128], strides = [1, 1, 1]} : vector<7x7x128xf32> to vector<1x1x128xf32>
    %28 = vector.shape_cast %27 : vector<1x1x128xf32> to vector<128xf32>
    %29 = vector.shape_cast %28 : vector<128xf32> to vector<1x1x128xf32>
    %30 = vector.broadcast %29 : vector<1x1x128xf32> to vector<8x8x128xf32>
    %31 = arith.mulf %26, %30 : vector<8x8x128xf32>
    %32 = arith.addf %25, %31 : vector<8x8x128xf32>
    %33 = vector.extract_strided_slice %4 {offsets = [0, 4, 0], sizes = [8, 8, 128], strides = [1, 1, 1]} : vector<8x14x128xf32> to vector<8x8x128xf32>
    %34 = vector.extract_strided_slice %0 {offsets = [0, 4, 0], sizes = [1, 1, 128], strides = [1, 1, 1]} : vector<7x7x128xf32> to vector<1x1x128xf32>
    %35 = vector.shape_cast %34 : vector<1x1x128xf32> to vector<128xf32>
    %36 = vector.shape_cast %35 : vector<128xf32> to vector<1x1x128xf32>
    %37 = vector.broadcast %36 : vector<1x1x128xf32> to vector<8x8x128xf32>
    %38 = arith.mulf %33, %37 : vector<8x8x128xf32>
    %39 = arith.addf %32, %38 : vector<8x8x128xf32>
    %40 = vector.extract_strided_slice %4 {offsets = [0, 5, 0], sizes = [8, 8, 128], strides = [1, 1, 1]} : vector<8x14x128xf32> to vector<8x8x128xf32>
    %41 = vector.extract_strided_slice %0 {offsets = [0, 5, 0], sizes = [1, 1, 128], strides = [1, 1, 1]} : vector<7x7x128xf32> to vector<1x1x128xf32>
    %42 = vector.shape_cast %41 : vector<1x1x128xf32> to vector<128xf32>
    %43 = vector.shape_cast %42 : vector<128xf32> to vector<1x1x128xf32>
    %44 = vector.broadcast %43 : vector<1x1x128xf32> to vector<8x8x128xf32>
    %45 = arith.mulf %40, %44 : vector<8x8x128xf32>
    %46 = arith.addf %39, %45 : vector<8x8x128xf32>
    %47 = vector.extract_strided_slice %4 {offsets = [0, 6, 0], sizes = [8, 8, 128], strides = [1, 1, 1]} : vector<8x14x128xf32> to vector<8x8x128xf32>
    %48 = vector.extract_strided_slice %0 {offsets = [0, 6, 0], sizes = [1, 1, 128], strides = [1, 1, 1]} : vector<7x7x128xf32> to vector<1x1x128xf32>
    %49 = vector.shape_cast %48 : vector<1x1x128xf32> to vector<128xf32>
    %50 = vector.shape_cast %49 : vector<128xf32> to vector<1x1x128xf32>
    %51 = vector.broadcast %50 : vector<1x1x128xf32> to vector<8x8x128xf32>
    %52 = arith.mulf %47, %51 : vector<8x8x128xf32>
    %53 = arith.addf %46, %52 : vector<8x8x128xf32>
    %c0_8 = arith.constant 0 : index
    %c1 = arith.constant 1 : index
    %c0_9 = arith.constant 0 : index
    %c0_10 = arith.constant 0 : index
    %54 = vector.load %arg2[%c0_8, %c1, %c0_9, %c0_10] : memref<1x14x14x128xf32, #tpu.memory_space<vmem>>, vector<1x8x14x128xf32>
    %55 = vector.shape_cast %54 : vector<1x8x14x128xf32> to vector<8x14x128xf32>
    %56 = vector.extract_strided_slice %55 {offsets = [0, 0, 0], sizes = [8, 8, 128], strides = [1, 1, 1]} : vector<8x14x128xf32> to vector<8x8x128xf32>
    %57 = vector.extract_strided_slice %0 {offsets = [1, 0, 0], sizes = [1, 1, 128], strides = [1, 1, 1]} : vector<7x7x128xf32> to vector<1x1x128xf32>
    %58 = vector.shape_cast %57 : vector<1x1x128xf32> to vector<128xf32>
    %59 = vector.shape_cast %58 : vector<128xf32> to vector<1x1x128xf32>
    %60 = vector.broadcast %59 : vector<1x1x128xf32> to vector<8x8x128xf32>
    %61 = arith.mulf %56, %60 : vector<8x8x128xf32>
    %62 = arith.addf %53, %61 : vector<8x8x128xf32>
    %63 = vector.extract_strided_slice %55 {offsets = [0, 1, 0], sizes = [8, 8, 128], strides = [1, 1, 1]} : vector<8x14x128xf32> to vector<8x8x128xf32>
    %64 = vector.extract_strided_slice %0 {offsets = [1, 1, 0], sizes = [1, 1, 128], strides = [1, 1, 1]} : vector<7x7x128xf32> to vector<1x1x128xf32>
    %65 = vector.shape_cast %64 : vector<1x1x128xf32> to vector<128xf32>
    %66 = vector.shape_cast %65 : vector<128xf32> to vector<1x1x128xf32>
    %67 = vector.broadcast %66 : vector<1x1x128xf32> to vector<8x8x128xf32>
    %68 = arith.mulf %63, %67 : vector<8x8x128xf32>
    %69 = arith.addf %62, %68 : vector<8x8x128xf32>
    %70 = vector.extract_strided_slice %55 {offsets = [0, 2, 0], sizes = [8, 8, 128], strides = [1, 1, 1]} : vector<8x14x128xf32> to vector<8x8x128xf32>
    %71 = vector.extract_strided_slice %0 {offsets = [1, 2, 0], sizes = [1, 1, 128], strides = [1, 1, 1]} : vector<7x7x128xf32> to vector<1x1x128xf32>
    %72 = vector.shape_cast %71 : vector<1x1x128xf32> to vector<128xf32>
    %73 = vector.shape_cast %72 : vector<128xf32> to vector<1x1x128xf32>
    %74 = vector.broadcast %73 : vector<1x1x128xf32> to vector<8x8x128xf32>
    %75 = arith.mulf %70, %74 : vector<8x8x128xf32>
    %76 = arith.addf %69, %75 : vector<8x8x128xf32>
    %77 = vector.extract_strided_slice %55 {offsets = [0, 3, 0], sizes = [8, 8, 128], strides = [1, 1, 1]} : vector<8x14x128xf32> to vector<8x8x128xf32>
    %78 = vector.extract_strided_slice %0 {offsets = [1, 3, 0], sizes = [1, 1, 128], strides = [1, 1, 1]} : vector<7x7x128xf32> to vector<1x1x128xf32>
    %79 = vector.shape_cast %78 : vector<1x1x128xf32> to vector<128xf32>
    %80 = vector.shape_cast %79 : vector<128xf32> to vector<1x1x128xf32>
    %81 = vector.broadcast %80 : vector<1x1x128xf32> to vector<8x8x128xf32>
    %82 = arith.mulf %77, %81 : vector<8x8x128xf32>
    %83 = arith.addf %76, %82 : vector<8x8x128xf32>
    %84 = vector.extract_strided_slice %55 {offsets = [0, 4, 0], sizes = [8, 8, 128], strides = [1, 1, 1]} : vector<8x14x128xf32> to vector<8x8x128xf32>
    %85 = vector.extract_strided_slice %0 {offsets = [1, 4, 0], sizes = [1, 1, 128], strides = [1, 1, 1]} : vector<7x7x128xf32> to vector<1x1x128xf32>
    %86 = vector.shape_cast %85 : vector<1x1x128xf32> to vector<128xf32>
    %87 = vector.shape_cast %86 : vector<128xf32> to vector<1x1x128xf32>
    %88 = vector.broadcast %87 : vector<1x1x128xf32> to vector<8x8x128xf32>
    %89 = arith.mulf %84, %88 : vector<8x8x128xf32>
    %90 = arith.addf %83, %89 : vector<8x8x128xf32>
    %91 = vector.extract_strided_slice %55 {offsets = [0, 5, 0], sizes = [8, 8, 128], strides = [1, 1, 1]} : vector<8x14x128xf32> to vector<8x8x128xf32>
    %92 = vector.extract_strided_slice %0 {offsets = [1, 5, 0], sizes = [1, 1, 128], strides = [1, 1, 1]} : vector<7x7x128xf32> to vector<1x1x128xf32>
    %93 = vector.shape_cast %92 : vector<1x1x128xf32> to vector<128xf32>
    %94 = vector.shape_cast %93 : vector<128xf32> to vector<1x1x128xf32>
    %95 = vector.broadcast %94 : vector<1x1x128xf32> to vector<8x8x128xf32>
    %96 = arith.mulf %91, %95 : vector<8x8x128xf32>
    %97 = arith.addf %90, %96 : vector<8x8x128xf32>
    %98 = vector.extract_strided_slice %55 {offsets = [0, 6, 0], sizes = [8, 8, 128], strides = [1, 1, 1]} : vector<8x14x128xf32> to vector<8x8x128xf32>
    %99 = vector.extract_strided_slice %0 {offsets = [1, 6, 0], sizes = [1, 1, 128], strides = [1, 1, 1]} : vector<7x7x128xf32> to vector<1x1x128xf32>
    %100 = vector.shape_cast %99 : vector<1x1x128xf32> to vector<128xf32>
    %101 = vector.shape_cast %100 : vector<128xf32> to vector<1x1x128xf32>
    %102 = vector.broadcast %101 : vector<1x1x128xf32> to vector<8x8x128xf32>
    %103 = arith.mulf %98, %102 : vector<8x8x128xf32>
    %104 = arith.addf %97, %103 : vector<8x8x128xf32>
    %c0_11 = arith.constant 0 : index
    %c2 = arith.constant 2 : index
    %c0_12 = arith.constant 0 : index
    %c0_13 = arith.constant 0 : index
    %105 = vector.load %arg2[%c0_11, %c2, %c0_12, %c0_13] : memref<1x14x14x128xf32, #tpu.memory_space<vmem>>, vector<1x8x14x128xf32>
    %106 = vector.shape_cast %105 : vector<1x8x14x128xf32> to vector<8x14x128xf32>
    %107 = vector.extract_strided_slice %106 {offsets = [0, 0, 0], sizes = [8, 8, 128], strides = [1, 1, 1]} : vector<8x14x128xf32> to vector<8x8x128xf32>
    %108 = vector.extract_strided_slice %0 {offsets = [2, 0, 0], sizes = [1, 1, 128], strides = [1, 1, 1]} : vector<7x7x128xf32> to vector<1x1x128xf32>
    %109 = vector.shape_cast %108 : vector<1x1x128xf32> to vector<128xf32>
    %110 = vector.shape_cast %109 : vector<128xf32> to vector<1x1x128xf32>
    %111 = vector.broadcast %110 : vector<1x1x128xf32> to vector<8x8x128xf32>
    %112 = arith.mulf %107, %111 : vector<8x8x128xf32>
    %113 = arith.addf %104, %112 : vector<8x8x128xf32>
    %114 = vector.extract_strided_slice %106 {offsets = [0, 1, 0], sizes = [8, 8, 128], strides = [1, 1, 1]} : vector<8x14x128xf32> to vector<8x8x128xf32>
    %115 = vector.extract_strided_slice %0 {offsets = [2, 1, 0], sizes = [1, 1, 128], strides = [1, 1, 1]} : vector<7x7x128xf32> to vector<1x1x128xf32>
    %116 = vector.shape_cast %115 : vector<1x1x128xf32> to vector<128xf32>
    %117 = vector.shape_cast %116 : vector<128xf32> to vector<1x1x128xf32>
    %118 = vector.broadcast %117 : vector<1x1x128xf32> to vector<8x8x128xf32>
    %119 = arith.mulf %114, %118 : vector<8x8x128xf32>
    %120 = arith.addf %113, %119 : vector<8x8x128xf32>
    %121 = vector.extract_strided_slice %106 {offsets = [0, 2, 0], sizes = [8, 8, 128], strides = [1, 1, 1]} : vector<8x14x128xf32> to vector<8x8x128xf32>
    %122 = vector.extract_strided_slice %0 {offsets = [2, 2, 0], sizes = [1, 1, 128], strides = [1, 1, 1]} : vector<7x7x128xf32> to vector<1x1x128xf32>
    %123 = vector.shape_cast %122 : vector<1x1x128xf32> to vector<128xf32>
    %124 = vector.shape_cast %123 : vector<128xf32> to vector<1x1x128xf32>
    %125 = vector.broadcast %124 : vector<1x1x128xf32> to vector<8x8x128xf32>
    %126 = arith.mulf %121, %125 : vector<8x8x128xf32>
    %127 = arith.addf %120, %126 : vector<8x8x128xf32>
    %128 = vector.extract_strided_slice %106 {offsets = [0, 3, 0], sizes = [8, 8, 128], strides = [1, 1, 1]} : vector<8x14x128xf32> to vector<8x8x128xf32>
    %129 = vector.extract_strided_slice %0 {offsets = [2, 3, 0], sizes = [1, 1, 128], strides = [1, 1, 1]} : vector<7x7x128xf32> to vector<1x1x128xf32>
    %130 = vector.shape_cast %129 : vector<1x1x128xf32> to vector<128xf32>
    %131 = vector.shape_cast %130 : vector<128xf32> to vector<1x1x128xf32>
    %132 = vector.broadcast %131 : vector<1x1x128xf32> to vector<8x8x128xf32>
    %133 = arith.mulf %128, %132 : vector<8x8x128xf32>
    %134 = arith.addf %127, %133 : vector<8x8x128xf32>
    %135 = vector.extract_strided_slice %106 {offsets = [0, 4, 0], sizes = [8, 8, 128], strides = [1, 1, 1]} : vector<8x14x128xf32> to vector<8x8x128xf32>
    %136 = vector.extract_strided_slice %0 {offsets = [2, 4, 0], sizes = [1, 1, 128], strides = [1, 1, 1]} : vector<7x7x128xf32> to vector<1x1x128xf32>
    %137 = vector.shape_cast %136 : vector<1x1x128xf32> to vector<128xf32>
    %138 = vector.shape_cast %137 : vector<128xf32> to vector<1x1x128xf32>
    %139 = vector.broadcast %138 : vector<1x1x128xf32> to vector<8x8x128xf32>
    %140 = arith.mulf %135, %139 : vector<8x8x128xf32>
    %141 = arith.addf %134, %140 : vector<8x8x128xf32>
    %142 = vector.extract_strided_slice %106 {offsets = [0, 5, 0], sizes = [8, 8, 128], strides = [1, 1, 1]} : vector<8x14x128xf32> to vector<8x8x128xf32>
    %143 = vector.extract_strided_slice %0 {offsets = [2, 5, 0], sizes = [1, 1, 128], strides = [1, 1, 1]} : vector<7x7x128xf32> to vector<1x1x128xf32>
    %144 = vector.shape_cast %143 : vector<1x1x128xf32> to vector<128xf32>
    %145 = vector.shape_cast %144 : vector<128xf32> to vector<1x1x128xf32>
    %146 = vector.broadcast %145 : vector<1x1x128xf32> to vector<8x8x128xf32>
    %147 = arith.mulf %142, %146 : vector<8x8x128xf32>
    %148 = arith.addf %141, %147 : vector<8x8x128xf32>
    %149 = vector.extract_strided_slice %106 {offsets = [0, 6, 0], sizes = [8, 8, 128], strides = [1, 1, 1]} : vector<8x14x128xf32> to vector<8x8x128xf32>
    %150 = vector.extract_strided_slice %0 {offsets = [2, 6, 0], sizes = [1, 1, 128], strides = [1, 1, 1]} : vector<7x7x128xf32> to vector<1x1x128xf32>
    %151 = vector.shape_cast %150 : vector<1x1x128xf32> to vector<128xf32>
    %152 = vector.shape_cast %151 : vector<128xf32> to vector<1x1x128xf32>
    %153 = vector.broadcast %152 : vector<1x1x128xf32> to vector<8x8x128xf32>
    %154 = arith.mulf %149, %153 : vector<8x8x128xf32>
    %155 = arith.addf %148, %154 : vector<8x8x128xf32>
    %c0_14 = arith.constant 0 : index
    %c3 = arith.constant 3 : index
    %c0_15 = arith.constant 0 : index
    %c0_16 = arith.constant 0 : index
    %156 = vector.load %arg2[%c0_14, %c3, %c0_15, %c0_16] : memref<1x14x14x128xf32, #tpu.memory_space<vmem>>, vector<1x8x14x128xf32>
    %157 = vector.shape_cast %156 : vector<1x8x14x128xf32> to vector<8x14x128xf32>
    %158 = vector.extract_strided_slice %157 {offsets = [0, 0, 0], sizes = [8, 8, 128], strides = [1, 1, 1]} : vector<8x14x128xf32> to vector<8x8x128xf32>
    %159 = vector.extract_strided_slice %0 {offsets = [3, 0, 0], sizes = [1, 1, 128], strides = [1, 1, 1]} : vector<7x7x128xf32> to vector<1x1x128xf32>
    %160 = vector.shape_cast %159 : vector<1x1x128xf32> to vector<128xf32>
    %161 = vector.shape_cast %160 : vector<128xf32> to vector<1x1x128xf32>
    %162 = vector.broadcast %161 : vector<1x1x128xf32> to vector<8x8x128xf32>
    %163 = arith.mulf %158, %162 : vector<8x8x128xf32>
    %164 = arith.addf %155, %163 : vector<8x8x128xf32>
    %165 = vector.extract_strided_slice %157 {offsets = [0, 1, 0], sizes = [8, 8, 128], strides = [1, 1, 1]} : vector<8x14x128xf32> to vector<8x8x128xf32>
    %166 = vector.extract_strided_slice %0 {offsets = [3, 1, 0], sizes = [1, 1, 128], strides = [1, 1, 1]} : vector<7x7x128xf32> to vector<1x1x128xf32>
    %167 = vector.shape_cast %166 : vector<1x1x128xf32> to vector<128xf32>
    %168 = vector.shape_cast %167 : vector<128xf32> to vector<1x1x128xf32>
    %169 = vector.broadcast %168 : vector<1x1x128xf32> to vector<8x8x128xf32>
    %170 = arith.mulf %165, %169 : vector<8x8x128xf32>
    %171 = arith.addf %164, %170 : vector<8x8x128xf32>
    %172 = vector.extract_strided_slice %157 {offsets = [0, 2, 0], sizes = [8, 8, 128], strides = [1, 1, 1]} : vector<8x14x128xf32> to vector<8x8x128xf32>
    %173 = vector.extract_strided_slice %0 {offsets = [3, 2, 0], sizes = [1, 1, 128], strides = [1, 1, 1]} : vector<7x7x128xf32> to vector<1x1x128xf32>
    %174 = vector.shape_cast %173 : vector<1x1x128xf32> to vector<128xf32>
    %175 = vector.shape_cast %174 : vector<128xf32> to vector<1x1x128xf32>
    %176 = vector.broadcast %175 : vector<1x1x128xf32> to vector<8x8x128xf32>
    %177 = arith.mulf %172, %176 : vector<8x8x128xf32>
    %178 = arith.addf %171, %177 : vector<8x8x128xf32>
    %179 = vector.extract_strided_slice %157 {offsets = [0, 3, 0], sizes = [8, 8, 128], strides = [1, 1, 1]} : vector<8x14x128xf32> to vector<8x8x128xf32>
    %180 = vector.extract_strided_slice %0 {offsets = [3, 3, 0], sizes = [1, 1, 128], strides = [1, 1, 1]} : vector<7x7x128xf32> to vector<1x1x128xf32>
    %181 = vector.shape_cast %180 : vector<1x1x128xf32> to vector<128xf32>
    %182 = vector.shape_cast %181 : vector<128xf32> to vector<1x1x128xf32>
    %183 = vector.broadcast %182 : vector<1x1x128xf32> to vector<8x8x128xf32>
    %184 = arith.mulf %179, %183 : vector<8x8x128xf32>
    %185 = arith.addf %178, %184 : vector<8x8x128xf32>
    %186 = vector.extract_strided_slice %157 {offsets = [0, 4, 0], sizes = [8, 8, 128], strides = [1, 1, 1]} : vector<8x14x128xf32> to vector<8x8x128xf32>
    %187 = vector.extract_strided_slice %0 {offsets = [3, 4, 0], sizes = [1, 1, 128], strides = [1, 1, 1]} : vector<7x7x128xf32> to vector<1x1x128xf32>
    %188 = vector.shape_cast %187 : vector<1x1x128xf32> to vector<128xf32>
    %189 = vector.shape_cast %188 : vector<128xf32> to vector<1x1x128xf32>
    %190 = vector.broadcast %189 : vector<1x1x128xf32> to vector<8x8x128xf32>
    %191 = arith.mulf %186, %190 : vector<8x8x128xf32>
    %192 = arith.addf %185, %191 : vector<8x8x128xf32>
    %193 = vector.extract_strided_slice %157 {offsets = [0, 5, 0], sizes = [8, 8, 128], strides = [1, 1, 1]} : vector<8x14x128xf32> to vector<8x8x128xf32>
    %194 = vector.extract_strided_slice %0 {offsets = [3, 5, 0], sizes = [1, 1, 128], strides = [1, 1, 1]} : vector<7x7x128xf32> to vector<1x1x128xf32>
    %195 = vector.shape_cast %194 : vector<1x1x128xf32> to vector<128xf32>
    %196 = vector.shape_cast %195 : vector<128xf32> to vector<1x1x128xf32>
    %197 = vector.broadcast %196 : vector<1x1x128xf32> to vector<8x8x128xf32>
    %198 = arith.mulf %193, %197 : vector<8x8x128xf32>
    %199 = arith.addf %192, %198 : vector<8x8x128xf32>
    %200 = vector.extract_strided_slice %157 {offsets = [0, 6, 0], sizes = [8, 8, 128], strides = [1, 1, 1]} : vector<8x14x128xf32> to vector<8x8x128xf32>
    %201 = vector.extract_strided_slice %0 {offsets = [3, 6, 0], sizes = [1, 1, 128], strides = [1, 1, 1]} : vector<7x7x128xf32> to vector<1x1x128xf32>
    %202 = vector.shape_cast %201 : vector<1x1x128xf32> to vector<128xf32>
    %203 = vector.shape_cast %202 : vector<128xf32> to vector<1x1x128xf32>
    %204 = vector.broadcast %203 : vector<1x1x128xf32> to vector<8x8x128xf32>
    %205 = arith.mulf %200, %204 : vector<8x8x128xf32>
    %206 = arith.addf %199, %205 : vector<8x8x128xf32>
    %c0_17 = arith.constant 0 : index
    %c4 = arith.constant 4 : index
    %c0_18 = arith.constant 0 : index
    %c0_19 = arith.constant 0 : index
    %207 = vector.load %arg2[%c0_17, %c4, %c0_18, %c0_19] : memref<1x14x14x128xf32, #tpu.memory_space<vmem>>, vector<1x8x14x128xf32>
    %208 = vector.shape_cast %207 : vector<1x8x14x128xf32> to vector<8x14x128xf32>
    %209 = vector.extract_strided_slice %208 {offsets = [0, 0, 0], sizes = [8, 8, 128], strides = [1, 1, 1]} : vector<8x14x128xf32> to vector<8x8x128xf32>
    %210 = vector.extract_strided_slice %0 {offsets = [4, 0, 0], sizes = [1, 1, 128], strides = [1, 1, 1]} : vector<7x7x128xf32> to vector<1x1x128xf32>
    %211 = vector.shape_cast %210 : vector<1x1x128xf32> to vector<128xf32>
    %212 = vector.shape_cast %211 : vector<128xf32> to vector<1x1x128xf32>
    %213 = vector.broadcast %212 : vector<1x1x128xf32> to vector<8x8x128xf32>
    %214 = arith.mulf %209, %213 : vector<8x8x128xf32>
    %215 = arith.addf %206, %214 : vector<8x8x128xf32>
    %216 = vector.extract_strided_slice %208 {offsets = [0, 1, 0], sizes = [8, 8, 128], strides = [1, 1, 1]} : vector<8x14x128xf32> to vector<8x8x128xf32>
    %217 = vector.extract_strided_slice %0 {offsets = [4, 1, 0], sizes = [1, 1, 128], strides = [1, 1, 1]} : vector<7x7x128xf32> to vector<1x1x128xf32>
    %218 = vector.shape_cast %217 : vector<1x1x128xf32> to vector<128xf32>
    %219 = vector.shape_cast %218 : vector<128xf32> to vector<1x1x128xf32>
    %220 = vector.broadcast %219 : vector<1x1x128xf32> to vector<8x8x128xf32>
    %221 = arith.mulf %216, %220 : vector<8x8x128xf32>
    %222 = arith.addf %215, %221 : vector<8x8x128xf32>
    %223 = vector.extract_strided_slice %208 {offsets = [0, 2, 0], sizes = [8, 8, 128], strides = [1, 1, 1]} : vector<8x14x128xf32> to vector<8x8x128xf32>
    %224 = vector.extract_strided_slice %0 {offsets = [4, 2, 0], sizes = [1, 1, 128], strides = [1, 1, 1]} : vector<7x7x128xf32> to vector<1x1x128xf32>
    %225 = vector.shape_cast %224 : vector<1x1x128xf32> to vector<128xf32>
    %226 = vector.shape_cast %225 : vector<128xf32> to vector<1x1x128xf32>
    %227 = vector.broadcast %226 : vector<1x1x128xf32> to vector<8x8x128xf32>
    %228 = arith.mulf %223, %227 : vector<8x8x128xf32>
    %229 = arith.addf %222, %228 : vector<8x8x128xf32>
    %230 = vector.extract_strided_slice %208 {offsets = [0, 3, 0], sizes = [8, 8, 128], strides = [1, 1, 1]} : vector<8x14x128xf32> to vector<8x8x128xf32>
    %231 = vector.extract_strided_slice %0 {offsets = [4, 3, 0], sizes = [1, 1, 128], strides = [1, 1, 1]} : vector<7x7x128xf32> to vector<1x1x128xf32>
    %232 = vector.shape_cast %231 : vector<1x1x128xf32> to vector<128xf32>
    %233 = vector.shape_cast %232 : vector<128xf32> to vector<1x1x128xf32>
    %234 = vector.broadcast %233 : vector<1x1x128xf32> to vector<8x8x128xf32>
    %235 = arith.mulf %230, %234 : vector<8x8x128xf32>
    %236 = arith.addf %229, %235 : vector<8x8x128xf32>
    %237 = vector.extract_strided_slice %208 {offsets = [0, 4, 0], sizes = [8, 8, 128], strides = [1, 1, 1]} : vector<8x14x128xf32> to vector<8x8x128xf32>
    %238 = vector.extract_strided_slice %0 {offsets = [4, 4, 0], sizes = [1, 1, 128], strides = [1, 1, 1]} : vector<7x7x128xf32> to vector<1x1x128xf32>
    %239 = vector.shape_cast %238 : vector<1x1x128xf32> to vector<128xf32>
    %240 = vector.shape_cast %239 : vector<128xf32> to vector<1x1x128xf32>
    %241 = vector.broadcast %240 : vector<1x1x128xf32> to vector<8x8x128xf32>
    %242 = arith.mulf %237, %241 : vector<8x8x128xf32>
    %243 = arith.addf %236, %242 : vector<8x8x128xf32>
    %244 = vector.extract_strided_slice %208 {offsets = [0, 5, 0], sizes = [8, 8, 128], strides = [1, 1, 1]} : vector<8x14x128xf32> to vector<8x8x128xf32>
    %245 = vector.extract_strided_slice %0 {offsets = [4, 5, 0], sizes = [1, 1, 128], strides = [1, 1, 1]} : vector<7x7x128xf32> to vector<1x1x128xf32>
    %246 = vector.shape_cast %245 : vector<1x1x128xf32> to vector<128xf32>
    %247 = vector.shape_cast %246 : vector<128xf32> to vector<1x1x128xf32>
    %248 = vector.broadcast %247 : vector<1x1x128xf32> to vector<8x8x128xf32>
    %249 = arith.mulf %244, %248 : vector<8x8x128xf32>
    %250 = arith.addf %243, %249 : vector<8x8x128xf32>
    %251 = vector.extract_strided_slice %208 {offsets = [0, 6, 0], sizes = [8, 8, 128], strides = [1, 1, 1]} : vector<8x14x128xf32> to vector<8x8x128xf32>
    %252 = vector.extract_strided_slice %0 {offsets = [4, 6, 0], sizes = [1, 1, 128], strides = [1, 1, 1]} : vector<7x7x128xf32> to vector<1x1x128xf32>
    %253 = vector.shape_cast %252 : vector<1x1x128xf32> to vector<128xf32>
    %254 = vector.shape_cast %253 : vector<128xf32> to vector<1x1x128xf32>
    %255 = vector.broadcast %254 : vector<1x1x128xf32> to vector<8x8x128xf32>
    %256 = arith.mulf %251, %255 : vector<8x8x128xf32>
    %257 = arith.addf %250, %256 : vector<8x8x128xf32>
    %c0_20 = arith.constant 0 : index
    %c5 = arith.constant 5 : index
    %c0_21 = arith.constant 0 : index
    %c0_22 = arith.constant 0 : index
    %258 = vector.load %arg2[%c0_20, %c5, %c0_21, %c0_22] : memref<1x14x14x128xf32, #tpu.memory_space<vmem>>, vector<1x8x14x128xf32>
    %259 = vector.shape_cast %258 : vector<1x8x14x128xf32> to vector<8x14x128xf32>
    %260 = vector.extract_strided_slice %259 {offsets = [0, 0, 0], sizes = [8, 8, 128], strides = [1, 1, 1]} : vector<8x14x128xf32> to vector<8x8x128xf32>
    %261 = vector.extract_strided_slice %0 {offsets = [5, 0, 0], sizes = [1, 1, 128], strides = [1, 1, 1]} : vector<7x7x128xf32> to vector<1x1x128xf32>
    %262 = vector.shape_cast %261 : vector<1x1x128xf32> to vector<128xf32>
    %263 = vector.shape_cast %262 : vector<128xf32> to vector<1x1x128xf32>
    %264 = vector.broadcast %263 : vector<1x1x128xf32> to vector<8x8x128xf32>
    %265 = arith.mulf %260, %264 : vector<8x8x128xf32>
    %266 = arith.addf %257, %265 : vector<8x8x128xf32>
    %267 = vector.extract_strided_slice %259 {offsets = [0, 1, 0], sizes = [8, 8, 128], strides = [1, 1, 1]} : vector<8x14x128xf32> to vector<8x8x128xf32>
    %268 = vector.extract_strided_slice %0 {offsets = [5, 1, 0], sizes = [1, 1, 128], strides = [1, 1, 1]} : vector<7x7x128xf32> to vector<1x1x128xf32>
    %269 = vector.shape_cast %268 : vector<1x1x128xf32> to vector<128xf32>
    %270 = vector.shape_cast %269 : vector<128xf32> to vector<1x1x128xf32>
    %271 = vector.broadcast %270 : vector<1x1x128xf32> to vector<8x8x128xf32>
    %272 = arith.mulf %267, %271 : vector<8x8x128xf32>
    %273 = arith.addf %266, %272 : vector<8x8x128xf32>
    %274 = vector.extract_strided_slice %259 {offsets = [0, 2, 0], sizes = [8, 8, 128], strides = [1, 1, 1]} : vector<8x14x128xf32> to vector<8x8x128xf32>
    %275 = vector.extract_strided_slice %0 {offsets = [5, 2, 0], sizes = [1, 1, 128], strides = [1, 1, 1]} : vector<7x7x128xf32> to vector<1x1x128xf32>
    %276 = vector.shape_cast %275 : vector<1x1x128xf32> to vector<128xf32>
    %277 = vector.shape_cast %276 : vector<128xf32> to vector<1x1x128xf32>
    %278 = vector.broadcast %277 : vector<1x1x128xf32> to vector<8x8x128xf32>
    %279 = arith.mulf %274, %278 : vector<8x8x128xf32>
    %280 = arith.addf %273, %279 : vector<8x8x128xf32>
    %281 = vector.extract_strided_slice %259 {offsets = [0, 3, 0], sizes = [8, 8, 128], strides = [1, 1, 1]} : vector<8x14x128xf32> to vector<8x8x128xf32>
    %282 = vector.extract_strided_slice %0 {offsets = [5, 3, 0], sizes = [1, 1, 128], strides = [1, 1, 1]} : vector<7x7x128xf32> to vector<1x1x128xf32>
    %283 = vector.shape_cast %282 : vector<1x1x128xf32> to vector<128xf32>
    %284 = vector.shape_cast %283 : vector<128xf32> to vector<1x1x128xf32>
    %285 = vector.broadcast %284 : vector<1x1x128xf32> to vector<8x8x128xf32>
    %286 = arith.mulf %281, %285 : vector<8x8x128xf32>
    %287 = arith.addf %280, %286 : vector<8x8x128xf32>
    %288 = vector.extract_strided_slice %259 {offsets = [0, 4, 0], sizes = [8, 8, 128], strides = [1, 1, 1]} : vector<8x14x128xf32> to vector<8x8x128xf32>
    %289 = vector.extract_strided_slice %0 {offsets = [5, 4, 0], sizes = [1, 1, 128], strides = [1, 1, 1]} : vector<7x7x128xf32> to vector<1x1x128xf32>
    %290 = vector.shape_cast %289 : vector<1x1x128xf32> to vector<128xf32>
    %291 = vector.shape_cast %290 : vector<128xf32> to vector<1x1x128xf32>
    %292 = vector.broadcast %291 : vector<1x1x128xf32> to vector<8x8x128xf32>
    %293 = arith.mulf %288, %292 : vector<8x8x128xf32>
    %294 = arith.addf %287, %293 : vector<8x8x128xf32>
    %295 = vector.extract_strided_slice %259 {offsets = [0, 5, 0], sizes = [8, 8, 128], strides = [1, 1, 1]} : vector<8x14x128xf32> to vector<8x8x128xf32>
    %296 = vector.extract_strided_slice %0 {offsets = [5, 5, 0], sizes = [1, 1, 128], strides = [1, 1, 1]} : vector<7x7x128xf32> to vector<1x1x128xf32>
    %297 = vector.shape_cast %296 : vector<1x1x128xf32> to vector<128xf32>
    %298 = vector.shape_cast %297 : vector<128xf32> to vector<1x1x128xf32>
    %299 = vector.broadcast %298 : vector<1x1x128xf32> to vector<8x8x128xf32>
    %300 = arith.mulf %295, %299 : vector<8x8x128xf32>
    %301 = arith.addf %294, %300 : vector<8x8x128xf32>
    %302 = vector.extract_strided_slice %259 {offsets = [0, 6, 0], sizes = [8, 8, 128], strides = [1, 1, 1]} : vector<8x14x128xf32> to vector<8x8x128xf32>
    %303 = vector.extract_strided_slice %0 {offsets = [5, 6, 0], sizes = [1, 1, 128], strides = [1, 1, 1]} : vector<7x7x128xf32> to vector<1x1x128xf32>
    %304 = vector.shape_cast %303 : vector<1x1x128xf32> to vector<128xf32>
    %305 = vector.shape_cast %304 : vector<128xf32> to vector<1x1x128xf32>
    %306 = vector.broadcast %305 : vector<1x1x128xf32> to vector<8x8x128xf32>
    %307 = arith.mulf %302, %306 : vector<8x8x128xf32>
    %308 = arith.addf %301, %307 : vector<8x8x128xf32>
    %c0_23 = arith.constant 0 : index
    %c6 = arith.constant 6 : index
    %c0_24 = arith.constant 0 : index
    %c0_25 = arith.constant 0 : index
    %309 = vector.load %arg2[%c0_23, %c6, %c0_24, %c0_25] : memref<1x14x14x128xf32, #tpu.memory_space<vmem>>, vector<1x8x14x128xf32>
    %310 = vector.shape_cast %309 : vector<1x8x14x128xf32> to vector<8x14x128xf32>
    %311 = vector.extract_strided_slice %310 {offsets = [0, 0, 0], sizes = [8, 8, 128], strides = [1, 1, 1]} : vector<8x14x128xf32> to vector<8x8x128xf32>
    %312 = vector.extract_strided_slice %0 {offsets = [6, 0, 0], sizes = [1, 1, 128], strides = [1, 1, 1]} : vector<7x7x128xf32> to vector<1x1x128xf32>
    %313 = vector.shape_cast %312 : vector<1x1x128xf32> to vector<128xf32>
    %314 = vector.shape_cast %313 : vector<128xf32> to vector<1x1x128xf32>
    %315 = vector.broadcast %314 : vector<1x1x128xf32> to vector<8x8x128xf32>
    %316 = arith.mulf %311, %315 : vector<8x8x128xf32>
    %317 = arith.addf %308, %316 : vector<8x8x128xf32>
    %318 = vector.extract_strided_slice %310 {offsets = [0, 1, 0], sizes = [8, 8, 128], strides = [1, 1, 1]} : vector<8x14x128xf32> to vector<8x8x128xf32>
    %319 = vector.extract_strided_slice %0 {offsets = [6, 1, 0], sizes = [1, 1, 128], strides = [1, 1, 1]} : vector<7x7x128xf32> to vector<1x1x128xf32>
    %320 = vector.shape_cast %319 : vector<1x1x128xf32> to vector<128xf32>
    %321 = vector.shape_cast %320 : vector<128xf32> to vector<1x1x128xf32>
    %322 = vector.broadcast %321 : vector<1x1x128xf32> to vector<8x8x128xf32>
    %323 = arith.mulf %318, %322 : vector<8x8x128xf32>
    %324 = arith.addf %317, %323 : vector<8x8x128xf32>
    %325 = vector.extract_strided_slice %310 {offsets = [0, 2, 0], sizes = [8, 8, 128], strides = [1, 1, 1]} : vector<8x14x128xf32> to vector<8x8x128xf32>
    %326 = vector.extract_strided_slice %0 {offsets = [6, 2, 0], sizes = [1, 1, 128], strides = [1, 1, 1]} : vector<7x7x128xf32> to vector<1x1x128xf32>
    %327 = vector.shape_cast %326 : vector<1x1x128xf32> to vector<128xf32>
    %328 = vector.shape_cast %327 : vector<128xf32> to vector<1x1x128xf32>
    %329 = vector.broadcast %328 : vector<1x1x128xf32> to vector<8x8x128xf32>
    %330 = arith.mulf %325, %329 : vector<8x8x128xf32>
    %331 = arith.addf %324, %330 : vector<8x8x128xf32>
    %332 = vector.extract_strided_slice %310 {offsets = [0, 3, 0], sizes = [8, 8, 128], strides = [1, 1, 1]} : vector<8x14x128xf32> to vector<8x8x128xf32>
    %333 = vector.extract_strided_slice %0 {offsets = [6, 3, 0], sizes = [1, 1, 128], strides = [1, 1, 1]} : vector<7x7x128xf32> to vector<1x1x128xf32>
    %334 = vector.shape_cast %333 : vector<1x1x128xf32> to vector<128xf32>
    %335 = vector.shape_cast %334 : vector<128xf32> to vector<1x1x128xf32>
    %336 = vector.broadcast %335 : vector<1x1x128xf32> to vector<8x8x128xf32>
    %337 = arith.mulf %332, %336 : vector<8x8x128xf32>
    %338 = arith.addf %331, %337 : vector<8x8x128xf32>
    %339 = vector.extract_strided_slice %310 {offsets = [0, 4, 0], sizes = [8, 8, 128], strides = [1, 1, 1]} : vector<8x14x128xf32> to vector<8x8x128xf32>
    %340 = vector.extract_strided_slice %0 {offsets = [6, 4, 0], sizes = [1, 1, 128], strides = [1, 1, 1]} : vector<7x7x128xf32> to vector<1x1x128xf32>
    %341 = vector.shape_cast %340 : vector<1x1x128xf32> to vector<128xf32>
    %342 = vector.shape_cast %341 : vector<128xf32> to vector<1x1x128xf32>
    %343 = vector.broadcast %342 : vector<1x1x128xf32> to vector<8x8x128xf32>
    %344 = arith.mulf %339, %343 : vector<8x8x128xf32>
    %345 = arith.addf %338, %344 : vector<8x8x128xf32>
    %346 = vector.extract_strided_slice %310 {offsets = [0, 5, 0], sizes = [8, 8, 128], strides = [1, 1, 1]} : vector<8x14x128xf32> to vector<8x8x128xf32>
    %347 = vector.extract_strided_slice %0 {offsets = [6, 5, 0], sizes = [1, 1, 128], strides = [1, 1, 1]} : vector<7x7x128xf32> to vector<1x1x128xf32>
    %348 = vector.shape_cast %347 : vector<1x1x128xf32> to vector<128xf32>
    %349 = vector.shape_cast %348 : vector<128xf32> to vector<1x1x128xf32>
    %350 = vector.broadcast %349 : vector<1x1x128xf32> to vector<8x8x128xf32>
    %351 = arith.mulf %346, %350 : vector<8x8x128xf32>
    %352 = arith.addf %345, %351 : vector<8x8x128xf32>
    %353 = vector.extract_strided_slice %310 {offsets = [0, 6, 0], sizes = [8, 8, 128], strides = [1, 1, 1]} : vector<8x14x128xf32> to vector<8x8x128xf32>
    %354 = vector.extract_strided_slice %0 {offsets = [6, 6, 0], sizes = [1, 1, 128], strides = [1, 1, 1]} : vector<7x7x128xf32> to vector<1x1x128xf32>
    %355 = vector.shape_cast %354 : vector<1x1x128xf32> to vector<128xf32>
    %356 = vector.shape_cast %355 : vector<128xf32> to vector<1x1x128xf32>
    %357 = vector.broadcast %356 : vector<1x1x128xf32> to vector<8x8x128xf32>
    %358 = arith.mulf %353, %357 : vector<8x8x128xf32>
    %359 = arith.addf %352, %358 : vector<8x8x128xf32>
    %360 = vector.shape_cast %1 : vector<1x128xf32> to vector<1x1x128xf32>
    %361 = vector.broadcast %360 : vector<1x1x128xf32> to vector<8x8x128xf32>
    %362 = arith.addf %359, %361 : vector<8x8x128xf32>
    %c0_26 = arith.constant 0 : index
    %c0_27 = arith.constant 0 : index
    %c0_28 = arith.constant 0 : index
    %c0_29 = arith.constant 0 : index
    %363 = vector.load %arg5[%c0_26, %c0_27, %c0_28, %c0_29] : memref<1x8x8x128xf32, #tpu.memory_space<vmem>>, vector<1x8x8x128xf32>
    %364 = vector.shape_cast %363 : vector<1x8x8x128xf32> to vector<8x8x128xf32>
    %365 = vector.shape_cast %362 : vector<8x8x128xf32> to vector<1x8x8x128xf32>
    tpu.vector_store %arg5[%c0_26, %c0_27, %c0_28, %c0_29], %365 {strides = array<i32>} : memref<1x8x8x128xf32, #tpu.memory_space<vmem>>, vector<1x8x8x128xf32>,
    return
  }
  func.func @transform_0(%arg0: i32, %arg1: i32) -> (i32, i32, i32, i32) {
    %c0_i32 = arith.constant 0 : i32
    %c0_i32_0 = arith.constant 0 : i32
    %c0_i32_1 = arith.constant 0 : i32
    return %arg0, %c0_i32, %c0_i32_0, %arg1 : i32, i32, i32, i32
  }
  func.func @transform_1(%arg0: i32, %arg1: i32) -> (i32, i32, i32) {
    %c0_i32 = arith.constant 0 : i32
    %c0_i32_0 = arith.constant 0 : i32
    %c0_i32_1 = arith.constant 0 : i32
    return %c0_i32, %c0_i32_0, %arg1 : i32, i32, i32
  }
  func.func @transform_2(%arg0: i32, %arg1: i32) -> (i32, i32) {
    %c0_i32 = arith.constant 0 : i32
    %c0_i32_0 = arith.constant 0 : i32
    return %c0_i32, %arg1 : i32, i32
  }
  func.func @transform_3(%arg0: i32, %arg1: i32) -> (i32, i32, i32, i32) {
    %c0_i32 = arith.constant 0 : i32
    %c0_i32_0 = arith.constant 0 : i32
    %c0_i32_1 = arith.constant 0 : i32
    return %arg0, %c0_i32, %c0_i32_0, %arg1 : i32, i32, i32, i32
  }
}

</mosaic_0001>

<bundles_post_ra>
// kernel: block_forward.2
= control target key start
LH: loop header
LB: loop body
LE: loop exit
PB: predicated region body
PF: predicated region fallthrough
CT: control target
= control target key end

     0   :  { %s788_s1 = inlined_call_operand.vmem [shape: f32[128,128], index: 1, kind: input, shape index: {}]   ;;  %s789_s0 = inlined_call_operand.vmem [shape: f32[16,2,8,256], index: 0, kind: input, shape index: {}]   ;;  %s790_s2 = inlined_call_operand.vmem [shape: f32[1,128], index: 2, kind: input, shape index: {}]   ;;  %s791_s3 = inlined_call_operand.vmem [shape: f32[16,8,128], index: 3, kind: output, shape index: {}]  }
   0x1   :  { %v93_v0 = vld [vmem:[%s788_s1 + $0x78] sm:$0xff]  ;;  %v92_v1 = vld [vmem:[%s788_s1 + $0x70] sm:$0xff]  ;;  %v91_v2 = vld [vmem:[%s788_s1 + $0x68] sm:$0xff] }
   0x2   :  { %240 = vmatpush.msra.mxu2 %v93_v0  ;;  %321 = vmatpush.msra.mxu3 %v93_v0  ;;  %v90_v3 = vld [vmem:[%s788_s1 + $0x60] sm:$0xff]  ;;  %v89_v4 = vld [vmem:[%s788_s1 + $0x58] sm:$0xff]  ;;  %v88_v5 = vld [vmem:[%s788_s1 + $0x50] sm:$0xff] }
   0x3   :  { %94 = vmatpush.msra.mxu0 %v93_v0  ;;  %159 = vmatpush.msra.mxu1 %v93_v0  ;;  %v87_v6 = vld [vmem:[%s788_s1 + $0x48] sm:$0xff]  ;;  %v86_v7 = vld [vmem:[%s788_s1 + $0x40] sm:$0xff]  ;;  %v85_v8 = vld [vmem:[%s788_s1 + $0x38] sm:$0xff] }
   0x4   :  { %241 = vmatpush.msra.mxu2 %v92_v1  ;;  %322 = vmatpush.msra.mxu3 %v92_v1  ;;  %v84_v9 = vld [vmem:[%s788_s1 + $0x30] sm:$0xff]  ;;  %v83_v10 = vld [vmem:[%s788_s1 + $0x28] sm:$0xff]  ;;  %v82_v11 = vld [vmem:[%s788_s1 + $0x20] sm:$0xff] }
   0x5   :  { %95 = vmatpush.msra.mxu0 %v92_v1  ;;  %160 = vmatpush.msra.mxu1 %v92_v1  ;;  %v81_v12 = vld [vmem:[%s788_s1 + $0x18] sm:$0xff]  ;;  %v80_v13 = vld [vmem:[%s788_s1 + $0x10] sm:$0xff]  ;;  %v79_v14 = vld [vmem:[%s788_s1 + $0x8] sm:$0xff] }
   0x6   :  { %242 = vmatpush.msra.mxu2 %v91_v2  ;;  %323 = vmatpush.msra.mxu3 %v91_v2  ;;  %v78_v15 = vld [vmem:[%s788_s1] sm:$0xff]  ;;  %v16_v16 = vld [vmem:[%s789_s0 + $0x10] sm:$0xff]  ;;  %v17_v17 = vld [vmem:[%s789_s0 + $0x18] sm:$0xff] }
   0x7   :  { %96 = vmatpush.msra.mxu0 %v91_v2  ;;  %161 = vmatpush.msra.mxu1 %v91_v2  ;;  %v14_v18 = vld [vmem:[%s789_s0] sm:$0xff]  ;;  %v15_v19 = vld [vmem:[%s789_s0 + $0x8] sm:$0xff]  ;;  %v20_v20 = vld [vmem:[%s789_s0 + $0x30] sm:$0xff] }
   0x8   :  { %243 = vmatpush.msra.mxu2 %v90_v3  ;;  %324 = vmatpush.msra.mxu3 %v90_v3  ;;  %v21_v21 = vld [vmem:[%s789_s0 + $0x38] sm:$0xff]  ;;  %v18_v22 = vld [vmem:[%s789_s0 + $0x20] sm:$0xff]  ;;  %v19_v23 = vld [vmem:[%s789_s0 + $0x28] sm:$0xff] }
   0x9   :  { %97 = vmatpush.msra.mxu0 %v90_v3  ;;  %162 = vmatpush.msra.mxu1 %v90_v3  ;;  %v24_v24 = vld [vmem:[%s789_s0 + $0x50] sm:$0xff]  ;;  %v25_v25 = vld [vmem:[%s789_s0 + $0x58] sm:$0xff]  ;;  %v22_v26 = vld [vmem:[%s789_s0 + $0x40] sm:$0xff] }
   0xa   :  { %244 = vmatpush.msra.mxu2 %v89_v4  ;;  %325 = vmatpush.msra.mxu3 %v89_v4  ;;  %v23_v27 = vld [vmem:[%s789_s0 + $0x48] sm:$0xff]  ;;  %v28_v28 = vld [vmem:[%s789_s0 + $0x70] sm:$0xff]  ;;  %v29_v29 = vld [vmem:[%s789_s0 + $0x78] sm:$0xff] }
   0xb   :  { %98 = vmatpush.msra.mxu0 %v89_v4  ;;  %163 = vmatpush.msra.mxu1 %v89_v4  ;;  %v26_v30 = vld [vmem:[%s789_s0 + $0x60] sm:$0xff]  ;;  %v27_v31 = vld [vmem:[%s789_s0 + $0x68] sm:$0xff]  ;;  %v32_v32 = vld [vmem:[%s789_s0 + $0x90] sm:$0xff] }
   0xc   :  { %245 = vmatpush.msra.mxu2 %v88_v5  ;;  %326 = vmatpush.msra.mxu3 %v88_v5  ;;  %v33_v33 = vld [vmem:[%s789_s0 + $0x98] sm:$0xff]  ;;  %v30_v34 = vld [vmem:[%s789_s0 + $0x80] sm:$0xff]  ;;  %v31_v35 = vld [vmem:[%s789_s0 + $0x88] sm:$0xff] }
   0xd   :  { %99 = vmatpush.msra.mxu0 %v88_v5  ;;  %164 = vmatpush.msra.mxu1 %v88_v5  ;;  %v36_v36 = vld [vmem:[%s789_s0 + $0xb0] sm:$0xff]  ;;  %v37_v37 = vld [vmem:[%s789_s0 + $0xb8] sm:$0xff]  ;;  %v34_v38 = vld [vmem:[%s789_s0 + $0xa0] sm:$0xff] }
   0xe   :  { %246 = vmatpush.msra.mxu2 %v87_v6  ;;  %327 = vmatpush.msra.mxu3 %v87_v6  ;;  %v35_v39 = vld [vmem:[%s789_s0 + $0xa8] sm:$0xff]  ;;  %v40_v40 = vld [vmem:[%s789_s0 + $0xd0] sm:$0xff]  ;;  %v41_v41 = vld [vmem:[%s789_s0 + $0xd8] sm:$0xff] }
   0xf   :  { %100 = vmatpush.msra.mxu0 %v87_v6  ;;  %165 = vmatpush.msra.mxu1 %v87_v6  ;;  %v38_v42 = vld [vmem:[%s789_s0 + $0xc0] sm:$0xff]  ;;  %v39_v43 = vld [vmem:[%s789_s0 + $0xc8] sm:$0xff]  ;;  %v44_v44 = vld [vmem:[%s789_s0 + $0xf0] sm:$0xff] }
  0x10   :  { %247 = vmatpush.msra.mxu2 %v86_v7  ;;  %328 = vmatpush.msra.mxu3 %v86_v7  ;;  %v45_v45 = vld [vmem:[%s789_s0 + $0xf8] sm:$0xff]  ;;  %v42_v46 = vld [vmem:[%s789_s0 + $0xe0] sm:$0xff]  ;;  %v43_v47 = vld [vmem:[%s789_s0 + $0xe8] sm:$0xff] }
  0x11   :  { %101 = vmatpush.msra.mxu0 %v86_v7  ;;  %166 = vmatpush.msra.mxu1 %v86_v7  ;;  %v48_v48 = vld [vmem:[%s789_s0 + $0x110] sm:$0xff]  ;;  %v49_v49 = vld [vmem:[%s789_s0 + $0x118] sm:$0xff]  ;;  %v46_v50 = vld [vmem:[%s789_s0 + $0x100] sm:$0xff] }
  0x12   :  { %248 = vmatpush.msra.mxu2 %v85_v8  ;;  %329 = vmatpush.msra.mxu3 %v85_v8  ;;  %v47_v51 = vld [vmem:[%s789_s0 + $0x108] sm:$0xff]  ;;  %v52_v52 = vld [vmem:[%s789_s0 + $0x130] sm:$0xff]  ;;  %v53_v53 = vld [vmem:[%s789_s0 + $0x138] sm:$0xff] }
  0x13   :  { %102 = vmatpush.msra.mxu0 %v85_v8  ;;  %167 = vmatpush.msra.mxu1 %v85_v8  ;;  %v50_v54 = vld [vmem:[%s789_s0 + $0x120] sm:$0xff]  ;;  %v51_v55 = vld [vmem:[%s789_s0 + $0x128] sm:$0xff]  ;;  %v56_v56 = vld [vmem:[%s789_s0 + $0x150] sm:$0xff] }
  0x14   :  { %249 = vmatpush.msra.mxu2 %v84_v9  ;;  %330 = vmatpush.msra.mxu3 %v84_v9  ;;  %v57_v57 = vld [vmem:[%s789_s0 + $0x158] sm:$0xff]  ;;  %v54_v58 = vld [vmem:[%s789_s0 + $0x140] sm:$0xff]  ;;  %v55_v59 = vld [vmem:[%s789_s0 + $0x148] sm:$0xff] }
  0x15   :  { %103 = vmatpush.msra.mxu0 %v84_v9  ;;  %168 = vmatpush.msra.mxu1 %v84_v9  ;;  %v60_v60 = vld [vmem:[%s789_s0 + $0x170] sm:$0xff]  ;;  %v61_v61 = vld [vmem:[%s789_s0 + $0x178] sm:$0xff]  ;;  %v58_v62 = vld [vmem:[%s789_s0 + $0x160] sm:$0xff] }
  0x16   :  { %250 = vmatpush.msra.mxu2 %v83_v10  ;;  %331 = vmatpush.msra.mxu3 %v83_v10  ;;  %v59_v63 = vld [vmem:[%s789_s0 + $0x168] sm:$0xff]  ;;  %v64_v0 = vld [vmem:[%s789_s0 + $0x190] sm:$0xff]  ;;  %v65_v1 = vld [vmem:[%s789_s0 + $0x198] sm:$0xff] }
  0x17   :  { %104 = vmatpush.msra.mxu0 %v83_v10  ;;  %169 = vmatpush.msra.mxu1 %v83_v10  ;;  %v62_v2 = vld [vmem:[%s789_s0 + $0x180] sm:$0xff]  ;;  %v63_v3 = vld [vmem:[%s789_s0 + $0x188] sm:$0xff]  ;;  %v68_v4 = vld [vmem:[%s789_s0 + $0x1b0] sm:$0xff] }
  0x18   :  { %251 = vmatpush.msra.mxu2 %v82_v11  ;;  %332 = vmatpush.msra.mxu3 %v82_v11  ;;  %v69_v5 = vld [vmem:[%s789_s0 + $0x1b8] sm:$0xff]  ;;  %v66_v6 = vld [vmem:[%s789_s0 + $0x1a0] sm:$0xff]  ;;  %v67_v7 = vld [vmem:[%s789_s0 + $0x1a8] sm:$0xff] }
  0x19   :  { %105 = vmatpush.msra.mxu0 %v82_v11  ;;  %170 = vmatpush.msra.mxu1 %v82_v11  ;;  %v72_v8 = vld [vmem:[%s789_s0 + $0x1d0] sm:$0xff]  ;;  %v73_v9 = vld [vmem:[%s789_s0 + $0x1d8] sm:$0xff]  ;;  %v70_v10 = vld [vmem:[%s789_s0 + $0x1c0] sm:$0xff] }
  0x1a   :  { %252 = vmatpush.msra.mxu2 %v81_v12  ;;  %333 = vmatpush.msra.mxu3 %v81_v12  ;;  %v71_v11 = vld [vmem:[%s789_s0 + $0x1c8] sm:$0xff] }
  0x1b   :  { %106 = vmatpush.msra.mxu0 %v81_v12  ;;  %171 = vmatpush.msra.mxu1 %v81_v12  ;;  %v76_v12 = vld [vmem:[%s789_s0 + $0x1f0] sm:$0xff] }
  0x1c   :  { %253 = vmatpush.msra.mxu2 %v80_v13  ;;  %334 = vmatpush.msra.mxu3 %v80_v13 }
  0x1d   :  { %107 = vmatpush.msra.mxu0 %v80_v13  ;;  %172 = vmatpush.msra.mxu1 %v80_v13  ;;  %v77_v13 = vld [vmem:[%s789_s0 + $0x1f8] sm:$0xff] }
  0x1e   :  { %254 = vmatpush.msra.mxu2 %v79_v14  ;;  %335 = vmatpush.msra.mxu3 %v79_v14 }
  0x1f   :  { %108 = vmatpush.msra.mxu0 %v79_v14  ;;  %173 = vmatpush.msra.mxu1 %v79_v14  ;;  %v74_v14 = vld [vmem:[%s789_s0 + $0x1e0] sm:$0xff] }
  0x20   :  { %255 = vmatpush.msra.mxu2 %v78_v15  ;;  %336 = vmatpush.msra.mxu3 %v78_v15 }
  0x21   :  { %256 = vmatmul.f32.vlgmr.msra.gmra.mxu2 %v16_v16  ;;  %337 = vmatmul.f32.vlgmr.msra.gmra.mxu3 %v17_v17 }
  0x22   :  { %109 = vmatpush.msra.mxu0 %v78_v15  ;;  %174 = vmatpush.msra.mxu1 %v78_v15  ;;  %v75_v15 = vld [vmem:[%s789_s0 + $0x1e8] sm:$0xff] }
  0x23   :  { %110 = vmatmul.f32.vlgmr.msra.gmra.mxu0 %v14_v18  ;;  %175 = vmatmul.f32.vlgmr.msra.gmra.mxu1 %v15_v19 }
  0x29   :  { %259 = vmatmul.f32.gmra.mxu2 %v20_v20  ;;  %340 = vmatmul.f32.gmra.mxu3 %v21_v21 }
  0x2b   :  { %113 = vmatmul.f32.gmra.mxu0 %v18_v22  ;;  %178 = vmatmul.f32.gmra.mxu1 %v19_v23  ;;  %v722_v22 = vld [vmem:[%s790_s2] ss:$0 sm:$0xff] }
  0x31   :  { %262 = vmatmul.f32.gmra.mxu2 %v24_v24  ;;  %343 = vmatmul.f32.gmra.mxu3 %v25_v25 }
  0x33   :  { %116 = vmatmul.f32.gmra.mxu0 %v22_v26  ;;  %181 = vmatmul.f32.gmra.mxu1 %v23_v27 }
  0x39   :  { %265 = vmatmul.f32.gmra.mxu2 %v28_v28  ;;  %346 = vmatmul.f32.gmra.mxu3 %v29_v29 }
  0x3b   :  { %119 = vmatmul.f32.gmra.mxu0 %v26_v30  ;;  %184 = vmatmul.f32.gmra.mxu1 %v27_v31 }
  0x41   :  { %268 = vmatmul.f32.gmra.mxu2 %v32_v32  ;;  %349 = vmatmul.f32.gmra.mxu3 %v33_v33 }
  0x43   :  { %122 = vmatmul.f32.gmra.mxu0 %v30_v34  ;;  %187 = vmatmul.f32.gmra.mxu1 %v31_v35 }
  0x49   :  { %271 = vmatmul.f32.gmra.mxu2 %v36_v36  ;;  %352 = vmatmul.f32.gmra.mxu3 %v37_v37 }
  0x4b   :  { %125 = vmatmul.f32.gmra.mxu0 %v34_v38  ;;  %190 = vmatmul.f32.gmra.mxu1 %v35_v39 }
  0x51   :  { %274 = vmatmul.f32.gmra.mxu2 %v40_v40  ;;  %355 = vmatmul.f32.gmra.mxu3 %v41_v41 }
  0x53   :  { %128 = vmatmul.f32.gmra.mxu0 %v38_v42  ;;  %193 = vmatmul.f32.gmra.mxu1 %v39_v43 }
  0x59   :  { %277 = vmatmul.f32.gmra.mxu2 %v44_v44  ;;  %358 = vmatmul.f32.gmra.mxu3 %v45_v45 }
  0x5b   :  { %131 = vmatmul.f32.gmra.mxu0 %v42_v46  ;;  %196 = vmatmul.f32.gmra.mxu1 %v43_v47 }
  0x61   :  { %280 = vmatmul.f32.gmra.mxu2 %v48_v48  ;;  %361 = vmatmul.f32.gmra.mxu3 %v49_v49 }
  0x63   :  { %134 = vmatmul.f32.gmra.mxu0 %v46_v50  ;;  %199 = vmatmul.f32.gmra.mxu1 %v47_v51 }
  0x69   :  { %283 = vmatmul.f32.gmra.mxu2 %v52_v52  ;;  %364 = vmatmul.f32.gmra.mxu3 %v53_v53 }
  0x6b   :  { %137 = vmatmul.f32.gmra.mxu0 %v50_v54  ;;  %202 = vmatmul.f32.gmra.mxu1 %v51_v55 }
  0x71   :  { %286 = vmatmul.f32.gmra.mxu2 %v56_v56  ;;  %367 = vmatmul.f32.gmra.mxu3 %v57_v57 }
  0x73   :  { %140 = vmatmul.f32.gmra.mxu0 %v54_v58  ;;  %205 = vmatmul.f32.gmra.mxu1 %v55_v59 }
  0x79   :  { %289 = vmatmul.f32.gmra.mxu2 %v60_v60  ;;  %370 = vmatmul.f32.gmra.mxu3 %v61_v61 }
  0x7b   :  { %143 = vmatmul.f32.gmra.mxu0 %v58_v62  ;;  %208 = vmatmul.f32.gmra.mxu1 %v59_v63 }
  0x81   :  { %292 = vmatmul.f32.gmra.mxu2 %v64_v0  ;;  %373 = vmatmul.f32.gmra.mxu3 %v65_v1 }
  0x83   :  { %146 = vmatmul.f32.gmra.mxu0 %v62_v2  ;;  %211 = vmatmul.f32.gmra.mxu1 %v63_v3 }
  0x89   :  { %295 = vmatmul.f32.gmra.mxu2 %v68_v4  ;;  %376 = vmatmul.f32.gmra.mxu3 %v69_v5 }
  0x8b   :  { %149 = vmatmul.f32.gmra.mxu0 %v66_v6  ;;  %214 = vmatmul.f32.gmra.mxu1 %v67_v7 }
  0x91   :  { %298 = vmatmul.f32.gmra.mxu2 %v72_v8  ;;  %379 = vmatmul.f32.gmra.mxu3 %v73_v9 }
  0x93   :  { %152 = vmatmul.f32.gmra.mxu0 %v70_v10  ;;  %217 = vmatmul.f32.gmra.mxu1 %v71_v11 }
  0x99   :  { %301 = vmatmul.f32.gmra.mxu2 %v76_v12  ;;  %382 = vmatmul.f32.gmra.mxu3 %v77_v13 }
  0x9b   :  { %155 = vmatmul.f32.gmra.mxu0 %v74_v14  ;;  %220 = vmatmul.f32.gmra.mxu1 %v75_v15 }
  0xa0   :  { %v111_v16 = vpop.f32.mrf.mxu0  ;;  %v176_v17 = vpop.f32.mrf.mxu1 }
  0xa1   :  { %v224_v18 = vmax.f32 %v111_v16, %v176_v17 }
  0xa4   :  { %v257_v19 = vpop.f32.mrf.mxu2  ;;  %v338_v20 = vpop.f32.mrf.mxu3 }
  0xa5   :  { %v305_v21 = vmax.f32 %v224_v18, %v257_v19 }
  0xa7   :  { %v386_v23 = vmax.f32 %v305_v21, %v338_v20 }
  0xa8   :  { %v114_v24 = vpop.f32.mrf.mxu0  ;;  %v179_v25 = vpop.f32.mrf.mxu1 }
  0xa9   :  { %v406_v26 = vadd.f32 %v722_v22, %v386_v23  ;;  %v225_v27 = vmax.f32 %v114_v24, %v179_v25 }
  0xab   :  { %v422_v28 = vmax.f32 %v406_v26, 0.0 }
  0xac   :  { %v260_v29 = vpop.f32.mrf.mxu2  ;;  %v341_v30 = vpop.f32.mrf.mxu3 }
  0xad   :  { %438 = vst [vmem:[%s791_s3] sm:$0xff] %v422_v28  ;;  %v306_v31 = vmax.f32 %v225_v27, %v260_v29 }
  0xaf   :  { %v387_v32 = vmax.f32 %v306_v31, %v341_v30 }
  0xb0   :  { %v117_v33 = vpop.f32.mrf.mxu0  ;;  %v182_v34 = vpop.f32.mrf.mxu1 }
  0xb1   :  { %v407_v35 = vadd.f32 %v722_v22, %v387_v32  ;;  %v226_v36 = vmax.f32 %v117_v33, %v182_v34 }
  0xb3   :  { %v423_v37 = vmax.f32 %v407_v35, 0.0 }
  0xb4   :  { %v263_v38 = vpop.f32.mrf.mxu2  ;;  %v344_v39 = vpop.f32.mrf.mxu3 }
  0xb5   :  { %439 = vst [vmem:[%s791_s3 + $0x8] sm:$0xff] %v423_v37  ;;  %v307_v40 = vmax.f32 %v226_v36, %v263_v38 }
  0xb7   :  { %v388_v41 = vmax.f32 %v307_v40, %v344_v39 }
  0xb8   :  { %v120_v42 = vpop.f32.mrf.mxu0  ;;  %v185_v43 = vpop.f32.mrf.mxu1 }
  0xb9   :  { %v408_v44 = vadd.f32 %v722_v22, %v388_v41  ;;  %v227_v45 = vmax.f32 %v120_v42, %v185_v43 }
  0xbb   :  { %v424_v46 = vmax.f32 %v408_v44, 0.0 }
  0xbc   :  { %v266_v47 = vpop.f32.mrf.mxu2  ;;  %v347_v48 = vpop.f32.mrf.mxu3 }
  0xbd   :  { %440 = vst [vmem:[%s791_s3 + $0x10] sm:$0xff] %v424_v46  ;;  %v308_v49 = vmax.f32 %v227_v45, %v266_v47 }
  0xbf   :  { %v389_v50 = vmax.f32 %v308_v49, %v347_v48 }
  0xc0   :  { %v123_v51 = vpop.f32.mrf.mxu0  ;;  %v188_v52 = vpop.f32.mrf.mxu1 }
  0xc1   :  { %v409_v53 = vadd.f32 %v722_v22, %v389_v50  ;;  %v228_v54 = vmax.f32 %v123_v51, %v188_v52 }
  0xc3   :  { %v425_v55 = vmax.f32 %v409_v53, 0.0 }
  0xc4   :  { %v269_v56 = vpop.f32.mrf.mxu2  ;;  %v350_v57 = vpop.f32.mrf.mxu3 }
  0xc5   :  { %441 = vst [vmem:[%s791_s3 + $0x18] sm:$0xff] %v425_v55  ;;  %v309_v58 = vmax.f32 %v228_v54, %v269_v56 }
  0xc7   :  { %v390_v59 = vmax.f32 %v309_v58, %v350_v57 }
  0xc8   :  { %v126_v60 = vpop.f32.mrf.mxu0  ;;  %v191_v61 = vpop.f32.mrf.mxu1 }
  0xc9   :  { %v410_v62 = vadd.f32 %v722_v22, %v390_v59  ;;  %v229_v63 = vmax.f32 %v126_v60, %v191_v61 }
  0xcb   :  { %v426_v0 = vmax.f32 %v410_v62, 0.0 }
  0xcc   :  { %v272_v1 = vpop.f32.mrf.mxu2  ;;  %v353_v2 = vpop.f32.mrf.mxu3 }
  0xcd   :  { %442 = vst [vmem:[%s791_s3 + $0x20] sm:$0xff] %v426_v0  ;;  %v310_v3 = vmax.f32 %v229_v63, %v272_v1 }
  0xcf   :  { %v391_v4 = vmax.f32 %v310_v3, %v353_v2 }
  0xd0   :  { %v129_v5 = vpop.f32.mrf.mxu0  ;;  %v194_v6 = vpop.f32.mrf.mxu1 }
  0xd1   :  { %v411_v7 = vadd.f32 %v722_v22, %v391_v4  ;;  %v230_v8 = vmax.f32 %v129_v5, %v194_v6 }
  0xd3   :  { %v427_v9 = vmax.f32 %v411_v7, 0.0 }
  0xd4   :  { %v275_v10 = vpop.f32.mrf.mxu2  ;;  %v356_v11 = vpop.f32.mrf.mxu3 }
  0xd5   :  { %443 = vst [vmem:[%s791_s3 + $0x28] sm:$0xff] %v427_v9  ;;  %v311_v12 = vmax.f32 %v230_v8, %v275_v10 }
  0xd7   :  { %v392_v13 = vmax.f32 %v311_v12, %v356_v11 }
  0xd8   :  { %v132_v14 = vpop.f32.mrf.mxu0  ;;  %v197_v15 = vpop.f32.mrf.mxu1 }
  0xd9   :  { %v412_v16 = vadd.f32 %v722_v22, %v392_v13  ;;  %v231_v17 = vmax.f32 %v132_v14, %v197_v15 }
  0xdb   :  { %v428_v18 = vmax.f32 %v412_v16, 0.0 }
  0xdc   :  { %v278_v19 = vpop.f32.mrf.mxu2  ;;  %v359_v20 = vpop.f32.mrf.mxu3 }
  0xdd   :  { %444 = vst [vmem:[%s791_s3 + $0x30] sm:$0xff] %v428_v18  ;;  %v312_v21 = vmax.f32 %v231_v17, %v278_v19 }
  0xdf   :  { %v393_v23 = vmax.f32 %v312_v21, %v359_v20 }
  0xe0   :  { %v135_v24 = vpop.f32.mrf.mxu0  ;;  %v200_v25 = vpop.f32.mrf.mxu1 }
  0xe1   :  { %v413_v26 = vadd.f32 %v722_v22, %v393_v23  ;;  %v232_v27 = vmax.f32 %v135_v24, %v200_v25 }
  0xe3   :  { %v429_v28 = vmax.f32 %v413_v26, 0.0 }
  0xe4   :  { %v281_v29 = vpop.f32.mrf.mxu2  ;;  %v362_v30 = vpop.f32.mrf.mxu3 }
  0xe5   :  { %445 = vst [vmem:[%s791_s3 + $0x38] sm:$0xff] %v429_v28  ;;  %v313_v31 = vmax.f32 %v232_v27, %v281_v29 }
  0xe7   :  { %v394_v32 = vmax.f32 %v313_v31, %v362_v30 }
  0xe8   :  { %v138_v33 = vpop.f32.mrf.mxu0  ;;  %v203_v34 = vpop.f32.mrf.mxu1 }
  0xe9   :  { %v414_v35 = vadd.f32 %v722_v22, %v394_v32  ;;  %v233_v36 = vmax.f32 %v138_v33, %v203_v34 }
  0xeb   :  { %v430_v37 = vmax.f32 %v414_v35, 0.0 }
  0xec   :  { %v284_v38 = vpop.f32.mrf.mxu2  ;;  %v365_v39 = vpop.f32.mrf.mxu3 }
  0xed   :  { %446 = vst [vmem:[%s791_s3 + $0x40] sm:$0xff] %v430_v37  ;;  %v314_v40 = vmax.f32 %v233_v36, %v284_v38 }
  0xef   :  { %v395_v41 = vmax.f32 %v314_v40, %v365_v39 }
  0xf0   :  { %v141_v42 = vpop.f32.mrf.mxu0  ;;  %v206_v43 = vpop.f32.mrf.mxu1 }
  0xf1   :  { %v415_v44 = vadd.f32 %v722_v22, %v395_v41  ;;  %v234_v45 = vmax.f32 %v141_v42, %v206_v43 }
  0xf3   :  { %v431_v46 = vmax.f32 %v415_v44, 0.0 }
  0xf4   :  { %v287_v47 = vpop.f32.mrf.mxu2  ;;  %v368_v48 = vpop.f32.mrf.mxu3 }
  0xf5   :  { %447 = vst [vmem:[%s791_s3 + $0x48] sm:$0xff] %v431_v46  ;;  %v315_v49 = vmax.f32 %v234_v45, %v287_v47 }
  0xf7   :  { %v396_v50 = vmax.f32 %v315_v49, %v368_v48 }
  0xf8   :  { %v144_v51 = vpop.f32.mrf.mxu0  ;;  %v209_v52 = vpop.f32.mrf.mxu1 }
  0xf9   :  { %v416_v53 = vadd.f32 %v722_v22, %v396_v50  ;;  %v235_v54 = vmax.f32 %v144_v51, %v209_v52 }
  0xfb   :  { %v432_v55 = vmax.f32 %v416_v53, 0.0 }
  0xfc   :  { %v290_v56 = vpop.f32.mrf.mxu2  ;;  %v371_v57 = vpop.f32.mrf.mxu3 }
  0xfd   :  { %448 = vst [vmem:[%s791_s3 + $0x50] sm:$0xff] %v432_v55  ;;  %v316_v58 = vmax.f32 %v235_v54, %v290_v56 }
  0xff   :  { %v397_v59 = vmax.f32 %v316_v58, %v371_v57 }
 0x100   :  { %v147_v60 = vpop.f32.mrf.mxu0  ;;  %v212_v61 = vpop.f32.mrf.mxu1 }
 0x101   :  { %v417_v62 = vadd.f32 %v722_v22, %v397_v59  ;;  %v236_v63 = vmax.f32 %v147_v60, %v212_v61 }
 0x103   :  { %v433_v0 = vmax.f32 %v417_v62, 0.0 }
 0x104   :  { %v293_v1 = vpop.f32.mrf.mxu2  ;;  %v374_v2 = vpop.f32.mrf.mxu3 }
 0x105   :  { %449 = vst [vmem:[%s791_s3 + $0x58] sm:$0xff] %v433_v0  ;;  %v317_v3 = vmax.f32 %v236_v63, %v293_v1 }
 0x107   :  { %v398_v4 = vmax.f32 %v317_v3, %v374_v2 }
 0x108   :  { %v150_v5 = vpop.f32.mrf.mxu0  ;;  %v215_v6 = vpop.f32.mrf.mxu1 }
 0x109   :  { %v418_v7 = vadd.f32 %v722_v22, %v398_v4  ;;  %v237_v8 = vmax.f32 %v150_v5, %v215_v6 }
 0x10b   :  { %v434_v9 = vmax.f32 %v418_v7, 0.0 }
 0x10c   :  { %v296_v10 = vpop.f32.mrf.mxu2  ;;  %v377_v11 = vpop.f32.mrf.mxu3 }
 0x10d   :  { %450 = vst [vmem:[%s791_s3 + $0x60] sm:$0xff] %v434_v9  ;;  %v318_v12 = vmax.f32 %v237_v8, %v296_v10 }
 0x10f   :  { %v399_v13 = vmax.f32 %v318_v12, %v377_v11 }
 0x110   :  { %v153_v14 = vpop.f32.mrf.mxu0  ;;  %v218_v15 = vpop.f32.mrf.mxu1 }
 0x111   :  { %v419_v16 = vadd.f32 %v722_v22, %v399_v13  ;;  %v238_v17 = vmax.f32 %v153_v14, %v218_v15 }
 0x113   :  { %v435_v18 = vmax.f32 %v419_v16, 0.0 }
 0x114   :  { %v299_v19 = vpop.f32.mrf.mxu2  ;;  %v380_v20 = vpop.f32.mrf.mxu3 }
 0x115   :  { %451 = vst [vmem:[%s791_s3 + $0x68] sm:$0xff] %v435_v18  ;;  %v319_v21 = vmax.f32 %v238_v17, %v299_v19 }
 0x117   :  { %v400_v23 = vmax.f32 %v319_v21, %v380_v20 }
 0x118   :  { %v156_v24 = vpop.f32.mrf.mxu0  ;;  %v221_v25 = vpop.f32.mrf.mxu1 }
 0x119   :  { %v420_v26 = vadd.f32 %v722_v22, %v400_v23  ;;  %v239_v27 = vmax.f32 %v156_v24, %v221_v25 }
 0x11b   :  { %v436_v28 = vmax.f32 %v420_v26, 0.0 }
 0x11c   :  { %v302_v29 = vpop.f32.mrf.mxu2  ;;  %v383_v30 = vpop.f32.mrf.mxu3 }
 0x11d   :  { %452 = vst [vmem:[%s791_s3 + $0x70] sm:$0xff] %v436_v28  ;;  %v320_v31 = vmax.f32 %v239_v27, %v302_v29 }
 0x11f   :  { %v401_v32 = vmax.f32 %v320_v31, %v383_v30 }
 0x121   :  { %v421_v33 = vadd.f32 %v722_v22, %v401_v32 }
 0x123   :  { %v437_v34 = vmax.f32 %v421_v33, 0.0 }
 0x125   :  { %453 = vst [vmem:[%s791_s3 + $0x78] sm:$0xff] %v437_v34 }

// kernel: block_forward.3
= control target key start
LH: loop header
LB: loop body
LE: loop exit
PB: predicated region body
PF: predicated region fallthrough
CT: control target
= control target key end

     0   :  { %s3883_s12 = smov 0   ;;  %s3885_s13 = smov 0   ;;  %s5847_s0 = inlined_call_operand.vmem [shape: f32[2,14,14,128], index: 0, kind: input, shape index: {}]   ;;  %s5848_s1 = inlined_call_operand.vmem [shape: f32[7,7,128], index: 1, kind: input, shape index: {}]   ;;  %s5849_s2 = inlined_call_operand.vmem [shape: f32[1,128], index: 2, kind: input, shape index: {}]   ;;  %s5850_s3 = inlined_call_operand.vmem [shape: f32[2,8,8,128], index: 3, kind: output, shape index: {}]  }
   0x1   :  { %s3887_s14 = smov 0  }
   0x2 LB: > { %s25_s15 = sadd.s32 1, %s3857_s13  ;;  %p3686_p0 = scmp.ge.s32.totalorder %s3861_s14, 1  ;;  %s3861_s14 = sphi %s3887_s14, %s13_s14   ;;  %s3857_s13 = sphi %s3885_s13, %s5852_s13   ;;  %s3853_s12 = sphi %s3883_s12, %s5851_s12  }
   0x3   : > { %p27_p1 = scmp.ge.s32.totalorder %s25_s15, 2  ;;  %p173_p2 = scmp.lt.s32.totalorder %s3861_s14, 3 }
   0x5   : > { %s5854_s15 = smov (%p27_p1, %s25_s15), 0  ;;  %p174_p3 = pnand %p3686_p0, %p173_p2 }
   0x6   : > { %p210_p4 = scmp.lt.s32.totalorder (!%p174_p3), %s3853_s12, 1 }
   0x7   : > { %177 = sbr.rel (%p174_p3) target bundleno = 569 (0x239), region = 32 }
   0xc   : > { %v3904_v0 = vld [vmem:[%s5848_s1] sm:$0x7f]  ;;  %s5856_s12 = smov (!%p210_p4, %s3853_s12), 1  ;;  %vm307_vm0 = vcmask 1046528   ;;  %vm381_vm1 = vcmask 1045504   ;;  %vm455_vm2 = vcmask 1044480  }
   0xd   : > { %s3789_s18 = smul.u32 224, %s5856_s12  ;;  %v257_v1 = vperm.slane %v3904_v0, 0  ;;  %v274_v2 = vperm.slane %v3904_v0, 1  ;;  %v3926_v6 = vperm.slane %v3904_v0, 2  ;;  %v3929_v7 = vperm.slane %v3904_v0, 3  ;;  %s3788_s7 = sshll.u32 %s5856_s12, 6 }
   0xe   : > { %vm529_vm3 = vcmask 1043456   ;;  %vm603_vm4 = vcmask 1042432   ;;  %vm677_vm5 = vcmask 1041408   ;;  %s232_s12 = scalar_lea.vmem %s5850_s3, %s3788_s7 }
   0xf   : > { %s3914_s21 = scalar_lea.vmem %s5847_s0, %s3789_s18 }
  0x10   : > { %v3917_v3 = vld [vmem:[%s3914_s21] sm:$0xff]  ;;  %v3920_v4 = vld [vmem:[%s3914_s21 + $0x8] sm:$0x3f]  ;;  %v3923_v5 = vld [vmem:[%s3914_s21 + $0x10] sm:$0xff] }
  0x11   : > { %v3932_v8 = vld [vmem:[%s3914_s21 + $0x18] sm:$0x3f]  ;;  %v3935_v9 = vld [vmem:[%s3914_s21 + $0x20] sm:$0xff]  ;;  %v3938_v10 = vld [vmem:[%s3914_s21 + $0x28] sm:$0x3f]  ;;  %v258_v11 = vmul.f32 %v257_v1, %v3917_v3  ;;  %v259_v12 = vmul.f32 %v257_v1, %v3923_v5  ;;  %v275_v13 = vmul.f32 %v274_v2, %v3917_v3  ;;  %v276_v14 = vmul.f32 %v274_v2, %v3920_v4 }
  0x12   : > { %v3945_v15 = vld [vmem:[%s3914_s21 + $0x30] sm:$0xff]  ;;  %v3948_v16 = vld [vmem:[%s3914_s21 + $0x38] sm:$0x3f]  ;;  %v3951_v17 = vld [vmem:[%s3914_s21 + $0x40] sm:$0xff]  ;;  %v260_v18 = vmul.f32 %v257_v1, %v3935_v9  ;;  %v277_v19 = vmul.f32 %v274_v2, %v3923_v5  ;;  %v278_v20 = vmul.f32 %v274_v2, %v3932_v8  ;;  %v279_v21 = vmul.f32 %v274_v2, %v3935_v9 }
  0x13   : > { %v3958_v22 = vld [vmem:[%s3914_s21 + $0x48] sm:$0x3f]  ;;  %v3961_v23 = vld [vmem:[%s3914_s21 + $0x50] sm:$0xff]  ;;  %v3964_v24 = vld [vmem:[%s3914_s21 + $0x58] sm:$0x3f]  ;;  %v261_v25 = vmul.f32 %v257_v1, %v3945_v15  ;;  %v262_v26 = vmul.f32 %v257_v1, %v3951_v17  ;;  %v280_v27 = vmul.f32 %v274_v2, %v3938_v10  ;;  %v281_v28 = vmul.f32 %v274_v2, %v3945_v15 }
  0x14   : > { %v3971_v29 = vld [vmem:[%s3914_s21 + $0x60] sm:$0xff]  ;;  %v3974_v30 = vld [vmem:[%s3914_s21 + $0x68] sm:$0x3f]  ;;  %v3977_v31 = vld [vmem:[%s3914_s21 + $0x70] sm:$0xff]  ;;  %v263_v32 = vmul.f32 %v257_v1, %v3961_v23  ;;  %v282_v33 = vmul.f32 %v274_v2, %v3948_v16  ;;  %v283_v34 = vmul.f32 %v274_v2, %v3951_v17  ;;  %v284_v35 = vmul.f32 %v274_v2, %v3958_v22 }
  0x15   : > { %v3984_v36 = vld [vmem:[%s3914_s21 + $0x78] sm:$0x3f]  ;;  %v264_v37 = vmul.f32 %v257_v1, %v3971_v29  ;;  %v265_v38 = vmul.f32 %v257_v1, %v3977_v31  ;;  %v285_v39 = vmul.f32 %v274_v2, %v3961_v23  ;;  %v286_v40 = vmul.f32 %v274_v2, %v3964_v24 }
  0x16   : > { %v287_v41 = vmul.f32 %v274_v2, %v3971_v29  ;;  %v288_v42 = vmul.f32 %v274_v2, %v3974_v30  ;;  %v289_v43 = vmul.f32 %v274_v2, %v3977_v31  ;;  %v290_v44 = vmul.f32 %v274_v2, %v3984_v36 }
  0x17   : > { %v308_v45 = vrot.slane %v275_v13, 1  ;;  %v309_v46 = vrot.slane %v276_v14, 1  ;;  %v311_v47 = vrot.slane %v277_v19, 1  ;;  %v312_v48 = vrot.slane %v278_v20, 1 }
  0x18   : > { %v314_v49 = vrot.slane %v279_v21, 1  ;;  %v315_v50 = vrot.slane %v280_v27, 1  ;;  %v317_v51 = vrot.slane %v281_v28, 1  ;;  %v318_v52 = vrot.slane %v282_v33, 1 }
  0x19   : > { %v310_v53 = vsel %vm307_vm0, %v308_v45, %v309_v46  ;;  %v313_v54 = vsel %vm307_vm0, %v311_v47, %v312_v48  ;;  %v320_v55 = vrot.slane %v283_v34, 1  ;;  %v321_v56 = vrot.slane %v284_v35, 1 }
  0x1a   : > { %v316_v57 = vsel %vm307_vm0, %v314_v49, %v315_v50  ;;  %v319_v58 = vsel %vm307_vm0, %v317_v51, %v318_v52  ;;  %v323_v59 = vrot.slane %v285_v39, 1  ;;  %v324_v60 = vrot.slane %v286_v40, 1 }
  0x1b   : > { %v322_v61 = vsel %vm307_vm0, %v320_v55, %v321_v56  ;;  %v326_v62 = vrot.slane %v287_v41, 1  ;;  %v327_v63 = vrot.slane %v288_v42, 1  ;;  %v329_v1 = vrot.slane %v289_v43, 1 }
  0x1c   : > { %v325_v2 = vsel %vm307_vm0, %v323_v59, %v324_v60  ;;  %v330_v13 = vrot.slane %v290_v44, 1  ;;  %v340_v14 = vadd.f32 %v310_v53, %v258_v11  ;;  %v341_v19 = vadd.f32 %v313_v54, %v259_v12 }
  0x1d   : > { %v328_v20 = vsel %vm307_vm0, %v326_v62, %v327_v63  ;;  %v342_v21 = vadd.f32 %v316_v57, %v260_v18  ;;  %v343_v27 = vadd.f32 %v319_v58, %v261_v25  ;;  %v344_v28 = vadd.f32 %v322_v61, %v262_v26 }
  0x1e   : > { %v331_v33 = vsel %vm307_vm0, %v329_v1, %v330_v13  ;;  %v345_v34 = vadd.f32 %v325_v2, %v263_v32  ;;  %v346_v35 = vadd.f32 %v328_v20, %v264_v37  ;;  %v349_v39 = vmul.f32 %v3926_v6, %v3917_v3 }
  0x1f   : > { %v347_v40 = vadd.f32 %v331_v33, %v265_v38  ;;  %v350_v41 = vmul.f32 %v3926_v6, %v3920_v4  ;;  %v351_v11 = vmul.f32 %v3926_v6, %v3923_v5  ;;  %v352_v12 = vmul.f32 %v3926_v6, %v3932_v8 }
  0x20   : > { %v353_v18 = vmul.f32 %v3926_v6, %v3935_v9  ;;  %v354_v25 = vmul.f32 %v3926_v6, %v3938_v10  ;;  %v355_v26 = vmul.f32 %v3926_v6, %v3945_v15  ;;  %v356_v32 = vmul.f32 %v3926_v6, %v3948_v16 }
  0x21   : > { %v357_v37 = vmul.f32 %v3926_v6, %v3951_v17  ;;  %v358_v38 = vmul.f32 %v3926_v6, %v3958_v22  ;;  %v359_v42 = vmul.f32 %v3926_v6, %v3961_v23  ;;  %v360_v43 = vmul.f32 %v3926_v6, %v3964_v24 }
  0x22   : > { %v361_v44 = vmul.f32 %v3926_v6, %v3971_v29  ;;  %v362_v45 = vmul.f32 %v3926_v6, %v3974_v30  ;;  %v363_v46 = vmul.f32 %v3926_v6, %v3977_v31  ;;  %v364_v47 = vmul.f32 %v3926_v6, %v3984_v36 }
  0x23   : > { %v382_v48 = vrot.slane %v349_v39, 2  ;;  %v383_v49 = vrot.slane %v350_v41, 2  ;;  %v385_v50 = vrot.slane %v351_v11, 2  ;;  %v386_v51 = vrot.slane %v352_v12, 2 }
  0x24   : > { %v388_v52 = vrot.slane %v353_v18, 2  ;;  %v389_v53 = vrot.slane %v354_v25, 2  ;;  %v391_v54 = vrot.slane %v355_v26, 2  ;;  %v392_v55 = vrot.slane %v356_v32, 2 }
  0x25   : > { %v384_v56 = vsel %vm381_vm1, %v382_v48, %v383_v49  ;;  %v387_v57 = vsel %vm381_vm1, %v385_v50, %v386_v51  ;;  %v394_v58 = vrot.slane %v357_v37, 2  ;;  %v395_v59 = vrot.slane %v358_v38, 2 }
  0x26   : > { %v390_v60 = vsel %vm381_vm1, %v388_v52, %v389_v53  ;;  %v393_v61 = vsel %vm381_vm1, %v391_v54, %v392_v55  ;;  %v397_v62 = vrot.slane %v359_v42, 2  ;;  %v398_v6 = vrot.slane %v360_v43, 2 }
  0x27   : > { %v396_v63 = vsel %vm381_vm1, %v394_v58, %v395_v59  ;;  %v400_v1 = vrot.slane %v361_v44, 2  ;;  %v401_v2 = vrot.slane %v362_v45, 2  ;;  %v403_v13 = vrot.slane %v363_v46, 2 }
  0x28   : > { %v399_v20 = vsel %vm381_vm1, %v397_v62, %v398_v6  ;;  %v404_v33 = vrot.slane %v364_v47, 2  ;;  %v414_v39 = vadd.f32 %v384_v56, %v340_v14  ;;  %v415_v41 = vadd.f32 %v387_v57, %v341_v19 }
  0x29   : > { %v402_v11 = vsel %vm381_vm1, %v400_v1, %v401_v2  ;;  %v416_v12 = vadd.f32 %v390_v60, %v342_v21  ;;  %v417_v18 = vadd.f32 %v393_v61, %v343_v27  ;;  %v418_v25 = vadd.f32 %v396_v63, %v344_v28 }
  0x2a   : > { %v405_v26 = vsel %vm381_vm1, %v403_v13, %v404_v33  ;;  %v419_v32 = vadd.f32 %v399_v20, %v345_v34  ;;  %v420_v37 = vadd.f32 %v402_v11, %v346_v35  ;;  %v423_v38 = vmul.f32 %v3929_v7, %v3917_v3 }
  0x2b   : > { %v421_v42 = vadd.f32 %v405_v26, %v347_v40  ;;  %v424_v43 = vmul.f32 %v3929_v7, %v3920_v4  ;;  %v425_v14 = vmul.f32 %v3929_v7, %v3923_v5  ;;  %v426_v19 = vmul.f32 %v3929_v7, %v3932_v8 }
  0x2c   : > { %v427_v21 = vmul.f32 %v3929_v7, %v3935_v9  ;;  %v428_v27 = vmul.f32 %v3929_v7, %v3938_v10  ;;  %v429_v28 = vmul.f32 %v3929_v7, %v3945_v15  ;;  %v430_v34 = vmul.f32 %v3929_v7, %v3948_v16 }
  0x2d   : > { %v431_v35 = vmul.f32 %v3929_v7, %v3951_v17  ;;  %v432_v40 = vmul.f32 %v3929_v7, %v3958_v22  ;;  %v433_v44 = vmul.f32 %v3929_v7, %v3961_v23  ;;  %v434_v45 = vmul.f32 %v3929_v7, %v3964_v24 }
  0x2e   : > { %v435_v46 = vmul.f32 %v3929_v7, %v3971_v29  ;;  %v436_v47 = vmul.f32 %v3929_v7, %v3974_v30  ;;  %v437_v48 = vmul.f32 %v3929_v7, %v3977_v31  ;;  %v438_v49 = vmul.f32 %v3929_v7, %v3984_v36 }
  0x2f   : > { %v456_v50 = vrot.slane %v423_v38, 3  ;;  %v457_v51 = vrot.slane %v424_v43, 3  ;;  %v459_v52 = vrot.slane %v425_v14, 3  ;;  %v460_v53 = vrot.slane %v426_v19, 3 }
  0x30   : > { %v462_v54 = vrot.slane %v427_v21, 3  ;;  %v463_v55 = vrot.slane %v428_v27, 3  ;;  %v465_v56 = vrot.slane %v429_v28, 3  ;;  %v466_v57 = vrot.slane %v430_v34, 3 }
  0x31   : > { %v458_v58 = vsel %vm455_vm2, %v456_v50, %v457_v51  ;;  %v461_v59 = vsel %vm455_vm2, %v459_v52, %v460_v53  ;;  %v468_v60 = vrot.slane %v431_v35, 3  ;;  %v469_v61 = vrot.slane %v432_v40, 3 }
  0x32   : > { %v464_v62 = vsel %vm455_vm2, %v462_v54, %v463_v55  ;;  %v467_v6 = vsel %vm455_vm2, %v465_v56, %v466_v57  ;;  %v471_v63 = vrot.slane %v433_v44, 3  ;;  %v472_v7 = vrot.slane %v434_v45, 3 }
  0x33   : > { %v470_v1 = vsel %vm455_vm2, %v468_v60, %v469_v61  ;;  %v474_v2 = vrot.slane %v435_v46, 3  ;;  %v475_v13 = vrot.slane %v436_v47, 3  ;;  %v477_v20 = vrot.slane %v437_v48, 3 }
  0x34   : > { %v473_v33 = vsel %vm455_vm2, %v471_v63, %v472_v7  ;;  %v478_v11 = vrot.slane %v438_v49, 3  ;;  %v488_v26 = vadd.f32 %v458_v58, %v414_v39  ;;  %v489_v43 = vadd.f32 %v461_v59, %v415_v41 }
  0x35   : > { %v476_v38 = vsel %vm455_vm2, %v474_v2, %v475_v13  ;;  %v490_v14 = vadd.f32 %v464_v62, %v416_v12  ;;  %v491_v19 = vadd.f32 %v467_v6, %v417_v18  ;;  %v492_v27 = vadd.f32 %v470_v1, %v418_v25 }
  0x36   : > { %v479_v21 = vsel %vm455_vm2, %v477_v20, %v478_v11  ;;  %v493_v28 = vadd.f32 %v473_v33, %v419_v32  ;;  %v496_v34 = vperm.slane %v3904_v0, 4  ;;  %v494_v35 = vadd.f32 %v476_v38, %v420_v37 }
  0x37   : > { %v495_v40 = vadd.f32 %v479_v21, %v421_v42  ;;  %v4084_v44 = vperm.slane %v3904_v0, 5 }
  0x38   : > { %v497_v45 = vmul.f32 %v496_v34, %v3917_v3  ;;  %v498_v39 = vmul.f32 %v496_v34, %v3920_v4  ;;  %v499_v41 = vmul.f32 %v496_v34, %v3923_v5  ;;  %v500_v12 = vmul.f32 %v496_v34, %v3932_v8 }
  0x39   : > { %v501_v18 = vmul.f32 %v496_v34, %v3935_v9  ;;  %v502_v25 = vmul.f32 %v496_v34, %v3938_v10  ;;  %v503_v32 = vmul.f32 %v496_v34, %v3945_v15  ;;  %v504_v37 = vmul.f32 %v496_v34, %v3948_v16 }
  0x3a   : > { %v505_v42 = vmul.f32 %v496_v34, %v3951_v17  ;;  %v506_v46 = vmul.f32 %v496_v34, %v3958_v22  ;;  %v507_v47 = vmul.f32 %v496_v34, %v3961_v23  ;;  %v508_v48 = vmul.f32 %v496_v34, %v3964_v24 }
  0x3b   : > { %v509_v49 = vmul.f32 %v496_v34, %v3971_v29  ;;  %v510_v50 = vmul.f32 %v496_v34, %v3974_v30  ;;  %v511_v51 = vmul.f32 %v496_v34, %v3977_v31  ;;  %v512_v52 = vmul.f32 %v496_v34, %v3984_v36 }
  0x3c   : > { %v530_v53 = vrot.slane %v497_v45, 4  ;;  %v531_v54 = vrot.slane %v498_v39, 4  ;;  %v533_v55 = vrot.slane %v499_v41, 4  ;;  %v534_v56 = vrot.slane %v500_v12, 4 }
  0x3d   : > { %v536_v57 = vrot.slane %v501_v18, 4  ;;  %v537_v58 = vrot.slane %v502_v25, 4  ;;  %v539_v59 = vrot.slane %v503_v32, 4  ;;  %v540_v60 = vrot.slane %v504_v37, 4 }
  0x3e   : > { %v532_v61 = vsel %vm529_vm3, %v530_v53, %v531_v54  ;;  %v535_v62 = vsel %vm529_vm3, %v533_v55, %v534_v56  ;;  %v542_v6 = vrot.slane %v505_v42, 4  ;;  %v543_v63 = vrot.slane %v506_v46, 4 }
  0x3f   : > { %v538_v7 = vsel %vm529_vm3, %v536_v57, %v537_v58  ;;  %v541_v1 = vsel %vm529_vm3, %v539_v59, %v540_v60  ;;  %v545_v2 = vrot.slane %v507_v47, 4  ;;  %v546_v13 = vrot.slane %v508_v48, 4 }
  0x40   : > { %v544_v20 = vsel %vm529_vm3, %v542_v6, %v543_v63  ;;  %v548_v33 = vrot.slane %v509_v49, 4  ;;  %v549_v11 = vrot.slane %v510_v50, 4  ;;  %v551_v38 = vrot.slane %v511_v51, 4 }
  0x41   : > { %v547_v21 = vsel %vm529_vm3, %v545_v2, %v546_v13  ;;  %v552_v34 = vrot.slane %v512_v52, 4  ;;  %v562_v45 = vadd.f32 %v532_v61, %v488_v26  ;;  %v563_v39 = vadd.f32 %v535_v62, %v489_v43 }
  0x42   : > { %v550_v41 = vsel %vm529_vm3, %v548_v33, %v549_v11  ;;  %v564_v12 = vadd.f32 %v538_v7, %v490_v14  ;;  %v565_v18 = vadd.f32 %v541_v1, %v491_v19  ;;  %v566_v25 = vadd.f32 %v544_v20, %v492_v27 }
  0x43   : > { %v553_v32 = vsel %vm529_vm3, %v551_v38, %v552_v34  ;;  %v567_v37 = vadd.f32 %v547_v21, %v493_v28  ;;  %v568_v42 = vadd.f32 %v550_v41, %v494_v35  ;;  %v571_v46 = vmul.f32 %v4084_v44, %v3917_v3  ;;  %v4150_v34 = vld [vmem:[%s5848_s1 + $0x8] sm:$0x7f] }
  0x44   : > { %v569_v47 = vadd.f32 %v553_v32, %v495_v40  ;;  %v572_v48 = vmul.f32 %v4084_v44, %v3920_v4  ;;  %v573_v26 = vmul.f32 %v4084_v44, %v3923_v5  ;;  %v574_v43 = vmul.f32 %v4084_v44, %v3932_v8 }
  0x45   : > { %v575_v14 = vmul.f32 %v4084_v44, %v3935_v9  ;;  %v576_v19 = vmul.f32 %v4084_v44, %v3938_v10  ;;  %v577_v27 = vmul.f32 %v4084_v44, %v3945_v15  ;;  %v578_v28 = vmul.f32 %v4084_v44, %v3948_v16 }
  0x46   : > { %v579_v35 = vmul.f32 %v4084_v44, %v3951_v17  ;;  %v580_v40 = vmul.f32 %v4084_v44, %v3958_v22  ;;  %v581_v49 = vmul.f32 %v4084_v44, %v3961_v23  ;;  %v582_v50 = vmul.f32 %v4084_v44, %v3964_v24 }
  0x47   : > { %v583_v51 = vmul.f32 %v4084_v44, %v3971_v29  ;;  %v584_v52 = vmul.f32 %v4084_v44, %v3974_v30  ;;  %v585_v53 = vmul.f32 %v4084_v44, %v3977_v31  ;;  %v586_v54 = vmul.f32 %v4084_v44, %v3984_v36 }
  0x48   : > { %v604_v55 = vrot.slane %v571_v46, 5  ;;  %v605_v56 = vrot.slane %v572_v48, 5  ;;  %v607_v57 = vrot.slane %v573_v26, 5  ;;  %v608_v58 = vrot.slane %v574_v43, 5 }
  0x49   : > { %v610_v59 = vrot.slane %v575_v14, 5  ;;  %v611_v60 = vrot.slane %v576_v19, 5  ;;  %v613_v61 = vrot.slane %v577_v27, 5  ;;  %v614_v62 = vrot.slane %v578_v28, 5 }
  0x4a   : > { %v606_v6 = vsel %vm603_vm4, %v604_v55, %v605_v56  ;;  %v609_v63 = vsel %vm603_vm4, %v607_v57, %v608_v58  ;;  %v616_v7 = vrot.slane %v579_v35, 5  ;;  %v617_v1 = vrot.slane %v580_v40, 5 }
  0x4b   : > { %v612_v2 = vsel %vm603_vm4, %v610_v59, %v611_v60  ;;  %v615_v13 = vsel %vm603_vm4, %v613_v61, %v614_v62  ;;  %v619_v20 = vrot.slane %v581_v49, 5  ;;  %v620_v44 = vrot.slane %v582_v50, 5 }
  0x4c   : > { %v618_v33 = vsel %vm603_vm4, %v616_v7, %v617_v1  ;;  %v622_v11 = vrot.slane %v583_v51, 5  ;;  %v623_v38 = vrot.slane %v584_v52, 5  ;;  %v625_v21 = vrot.slane %v585_v53, 5 }
  0x4d   : > { %v621_v41 = vsel %vm603_vm4, %v619_v20, %v620_v44  ;;  %v626_v32 = vrot.slane %v586_v54, 5  ;;  %v636_v46 = vadd.f32 %v606_v6, %v562_v45  ;;  %v637_v48 = vadd.f32 %v609_v63, %v563_v39 }
  0x4e   : > { %v624_v26 = vsel %vm603_vm4, %v622_v11, %v623_v38  ;;  %v638_v43 = vadd.f32 %v612_v2, %v564_v12  ;;  %v639_v14 = vadd.f32 %v615_v13, %v565_v18  ;;  %v640_v19 = vadd.f32 %v618_v33, %v566_v25 }
  0x4f   : > { %v627_v27 = vsel %vm603_vm4, %v625_v21, %v626_v32  ;;  %v641_v28 = vadd.f32 %v621_v41, %v567_v37  ;;  %v642_v35 = vadd.f32 %v624_v26, %v568_v42  ;;  %v644_v40 = vperm.slane %v3904_v0, 6 }
  0x50   : > { %v643_v49 = vadd.f32 %v627_v27, %v569_v47  ;;  %v735_v50 = vperm.slane %v4150_v34, 0  ;;  %v4158_v51 = vperm.slane %v4150_v34, 1  ;;  %v4184_v27 = vld [vmem:[%s3914_s21 + $0x80] sm:$0xff] }
  0x51   : > { %v645_v45 = vmul.f32 %v644_v40, %v3917_v3  ;;  %v646_v39 = vmul.f32 %v644_v40, %v3920_v4  ;;  %v647_v12 = vmul.f32 %v644_v40, %v3923_v5  ;;  %v648_v18 = vmul.f32 %v644_v40, %v3932_v8 }
  0x52   : > { %v649_v25 = vmul.f32 %v644_v40, %v3935_v9  ;;  %v650_v37 = vmul.f32 %v644_v40, %v3938_v10  ;;  %v651_v0 = vmul.f32 %v644_v40, %v3945_v15  ;;  %v652_v42 = vmul.f32 %v644_v40, %v3948_v16 }
  0x53   : > { %v653_v47 = vmul.f32 %v644_v40, %v3951_v17  ;;  %v654_v52 = vmul.f32 %v644_v40, %v3958_v22  ;;  %v655_v3 = vmul.f32 %v644_v40, %v3961_v23  ;;  %v656_v4 = vmul.f32 %v644_v40, %v3964_v24 }
  0x54   : > { %v657_v53 = vmul.f32 %v644_v40, %v3971_v29  ;;  %v658_v8 = vmul.f32 %v644_v40, %v3974_v30  ;;  %v659_v54 = vmul.f32 %v644_v40, %v3977_v31  ;;  %v660_v10 = vmul.f32 %v644_v40, %v3984_v36 }
  0x55   : > { %v678_v55 = vrot.slane %v645_v45, 6  ;;  %v679_v56 = vrot.slane %v646_v39, 6  ;;  %v681_v57 = vrot.slane %v647_v12, 6  ;;  %v682_v16 = vrot.slane %v648_v18, 6 }
  0x56   : > { %v684_v58 = vrot.slane %v649_v25, 6  ;;  %v685_v59 = vrot.slane %v650_v37, 6  ;;  %v687_v60 = vrot.slane %v651_v0, 6  ;;  %v688_v22 = vrot.slane %v652_v42, 6  ;;  %v4202_v37 = vld [vmem:[%s3914_s21 + $0x38] sm:$0x3f] }
  0x57   : > { %v680_v61 = vsel %vm677_vm5, %v678_v55, %v679_v56  ;;  %v683_v24 = vsel %vm677_vm5, %v681_v57, %v682_v16  ;;  %v690_v62 = vrot.slane %v653_v47, 6  ;;  %v691_v6 = vrot.slane %v654_v52, 6  ;;  %v4205_v0 = vld [vmem:[%s3914_s21 + $0x48] sm:$0x3f]  ;;  %v4214_v56 = vld [vmem:[%s3914_s21 + $0x78] sm:$0x3f] }
  0x58   : > { %v686_v30 = vsel %vm677_vm5, %v684_v58, %v685_v59  ;;  %v689_v63 = vsel %vm677_vm5, %v687_v60, %v688_v22  ;;  %v693_v36 = vrot.slane %v655_v3, 6  ;;  %v694_v7 = vrot.slane %v656_v4, 6  ;;  %v4208_v4 = vld [vmem:[%s3914_s21 + $0x58] sm:$0x3f]  ;;  %v4217_v57 = vld [vmem:[%s3914_s21 + $0x88] sm:$0x3f] }
  0x59   : > { %v692_v1 = vsel %vm677_vm5, %v690_v62, %v691_v6  ;;  %v696_v2 = vrot.slane %v657_v53, 6  ;;  %v697_v13 = vrot.slane %v658_v8, 6  ;;  %v699_v20 = vrot.slane %v659_v54, 6  ;;  %v4211_v53 = vld [vmem:[%s3914_s21 + $0x68] sm:$0x3f] }
  0x5a   : > { %v695_v44 = vsel %vm677_vm5, %v693_v36, %v694_v7  ;;  %v700_v33 = vrot.slane %v660_v10, 6  ;;  %v710_v11 = vadd.f32 %v680_v61, %v636_v46  ;;  %v711_v38 = vadd.f32 %v683_v24, %v637_v48 }
  0x5b   : > { %v698_v21 = vsel %vm677_vm5, %v696_v2, %v697_v13  ;;  %v712_v41 = vadd.f32 %v686_v30, %v638_v43  ;;  %v713_v32 = vadd.f32 %v689_v63, %v639_v14  ;;  %v714_v26 = vadd.f32 %v692_v1, %v640_v19  ;;  %v4192_v14 = vld [vmem:[%s3914_s21 + $0x18] sm:$0x3f]  ;;  %v4195_v19 = vld [vmem:[%s3914_s21 + $0x28] sm:$0x3f] }
  0x5c   : > { %v701_v40 = vsel %vm677_vm5, %v699_v20, %v700_v33  ;;  %v715_v45 = vadd.f32 %v695_v44, %v641_v28  ;;  %v716_v39 = vadd.f32 %v698_v21, %v642_v35  ;;  %v736_v12 = vmul.f32 %v735_v50, %v3923_v5 }
  0x5d   : > { %v717_v18 = vadd.f32 %v701_v40, %v643_v49  ;;  %v737_v46 = vmul.f32 %v735_v50, %v3935_v9  ;;  %v738_v48 = vmul.f32 %v735_v50, %v3945_v15  ;;  %v739_v43 = vmul.f32 %v735_v50, %v3951_v17 }
  0x5e   : > { %v740_v25 = vmul.f32 %v735_v50, %v3961_v23  ;;  %v741_v28 = vmul.f32 %v735_v50, %v3971_v29  ;;  %v742_v35 = vmul.f32 %v735_v50, %v3977_v31  ;;  %v743_v49 = vmul.f32 %v4184_v27, %v735_v50 }
  0x5f   : > { %v744_v42 = vadd.f32 %v736_v12, %v710_v11  ;;  %v745_v47 = vadd.f32 %v737_v46, %v711_v38  ;;  %v746_v52 = vadd.f32 %v738_v48, %v712_v41  ;;  %v747_v3 = vadd.f32 %v739_v43, %v713_v32 }
  0x60   : > { %v748_v8 = vadd.f32 %v740_v25, %v714_v26  ;;  %v749_v54 = vadd.f32 %v741_v28, %v715_v45  ;;  %v750_v10 = vadd.f32 %v742_v35, %v716_v39  ;;  %v751_v55 = vadd.f32 %v743_v49, %v717_v18 }
  0x61   : > { %v753_v50 = vmul.f32 %v4158_v51, %v3923_v5  ;;  %v754_v16 = vmul.f32 %v4192_v14, %v4158_v51  ;;  %v755_v58 = vmul.f32 %v4158_v51, %v3935_v9  ;;  %v756_v59 = vmul.f32 %v4195_v19, %v4158_v51 }
  0x62   : > { %v757_v60 = vmul.f32 %v4158_v51, %v3945_v15  ;;  %v758_v22 = vmul.f32 %v4202_v37, %v4158_v51  ;;  %v759_v61 = vmul.f32 %v4158_v51, %v3951_v17  ;;  %v760_v24 = vmul.f32 %v4205_v0, %v4158_v51 }
  0x63   : > { %v761_v62 = vmul.f32 %v4158_v51, %v3961_v23  ;;  %v762_v6 = vmul.f32 %v4208_v4, %v4158_v51  ;;  %v763_v30 = vmul.f32 %v4158_v51, %v3971_v29  ;;  %v764_v63 = vmul.f32 %v4211_v53, %v4158_v51 }
  0x64   : > { %v765_v36 = vmul.f32 %v4158_v51, %v3977_v31  ;;  %v766_v7 = vmul.f32 %v4214_v56, %v4158_v51  ;;  %v767_v1 = vmul.f32 %v4184_v27, %v4158_v51  ;;  %v768_v2 = vmul.f32 %v4217_v57, %v4158_v51 }
  0x65   : > { %v785_v13 = vrot.slane %v753_v50, 1  ;;  %v786_v20 = vrot.slane %v754_v16, 1  ;;  %v788_v44 = vrot.slane %v755_v58, 1  ;;  %v789_v33 = vrot.slane %v756_v59, 1 }
  0x66   : > { %v791_v11 = vrot.slane %v757_v60, 1  ;;  %v792_v38 = vrot.slane %v758_v22, 1  ;;  %v794_v21 = vrot.slane %v759_v61, 1  ;;  %v795_v41 = vrot.slane %v760_v24, 1 }
  0x67   : > { %v787_v32 = vsel %vm307_vm0, %v785_v13, %v786_v20  ;;  %v790_v26 = vsel %vm307_vm0, %v788_v44, %v789_v33  ;;  %v797_v40 = vrot.slane %v761_v62, 1  ;;  %v798_v45 = vrot.slane %v762_v6, 1 }
  0x68   : > { %v793_v39 = vsel %vm307_vm0, %v791_v11, %v792_v38  ;;  %v796_v12 = vsel %vm307_vm0, %v794_v21, %v795_v41  ;;  %v800_v18 = vrot.slane %v763_v30, 1  ;;  %v801_v51 = vrot.slane %v764_v63, 1 }
  0x69   : > { %v799_v46 = vsel %vm307_vm0, %v797_v40, %v798_v45  ;;  %v803_v48 = vrot.slane %v765_v36, 1  ;;  %v804_v43 = vrot.slane %v766_v7, 1  ;;  %v806_v25 = vrot.slane %v767_v1, 1 }
  0x6a   : > { %v802_v28 = vsel %vm307_vm0, %v800_v18, %v801_v51  ;;  %v807_v35 = vrot.slane %v768_v2, 1  ;;  %v817_v49 = vadd.f32 %v787_v32, %v744_v42  ;;  %v818_v50 = vadd.f32 %v790_v26, %v745_v47 }
  0x6b   : > { %v805_v16 = vsel %vm307_vm0, %v803_v48, %v804_v43  ;;  %v819_v58 = vadd.f32 %v793_v39, %v746_v52  ;;  %v820_v59 = vadd.f32 %v796_v12, %v747_v3  ;;  %v821_v60 = vadd.f32 %v799_v46, %v748_v8 }
  0x6c   : > { %v808_v22 = vsel %vm307_vm0, %v806_v25, %v807_v35  ;;  %v822_v61 = vadd.f32 %v802_v28, %v749_v54  ;;  %v823_v24 = vadd.f32 %v805_v16, %v750_v10  ;;  %v825_v62 = vperm.slane %v4150_v34, 2 }
  0x6d   : > { %v824_v6 = vadd.f32 %v808_v22, %v751_v55  ;;  %v4261_v30 = vperm.slane %v4150_v34, 3  ;;  %v4264_v63 = vperm.slane %v4150_v34, 4  ;;  %v4267_v42 = vperm.slane %v4150_v34, 5 }
  0x6e   : > { %v826_v47 = vmul.f32 %v825_v62, %v3923_v5  ;;  %v827_v52 = vmul.f32 %v4192_v14, %v825_v62  ;;  %v828_v3 = vmul.f32 %v825_v62, %v3935_v9  ;;  %v829_v8 = vmul.f32 %v4195_v19, %v825_v62 }
  0x6f   : > { %v830_v54 = vmul.f32 %v825_v62, %v3945_v15  ;;  %v831_v10 = vmul.f32 %v4202_v37, %v825_v62  ;;  %v832_v55 = vmul.f32 %v825_v62, %v3951_v17  ;;  %v833_v36 = vmul.f32 %v4205_v0, %v825_v62 }
  0x70   : > { %v834_v7 = vmul.f32 %v825_v62, %v3961_v23  ;;  %v835_v1 = vmul.f32 %v4208_v4, %v825_v62  ;;  %v836_v2 = vmul.f32 %v825_v62, %v3971_v29  ;;  %v837_v13 = vmul.f32 %v4211_v53, %v825_v62 }
  0x71   : > { %v838_v20 = vmul.f32 %v825_v62, %v3977_v31  ;;  %v839_v44 = vmul.f32 %v4214_v56, %v825_v62  ;;  %v840_v33 = vmul.f32 %v4184_v27, %v825_v62  ;;  %v841_v11 = vmul.f32 %v4217_v57, %v825_v62 }
  0x72   : > { %v858_v38 = vrot.slane %v826_v47, 2  ;;  %v859_v21 = vrot.slane %v827_v52, 2  ;;  %v861_v41 = vrot.slane %v828_v3, 2  ;;  %v862_v32 = vrot.slane %v829_v8, 2 }
  0x73   : > { %v864_v26 = vrot.slane %v830_v54, 2  ;;  %v865_v40 = vrot.slane %v831_v10, 2  ;;  %v867_v45 = vrot.slane %v832_v55, 2  ;;  %v868_v39 = vrot.slane %v833_v36, 2 }
  0x74   : > { %v860_v12 = vsel %vm381_vm1, %v858_v38, %v859_v21  ;;  %v863_v18 = vsel %vm381_vm1, %v861_v41, %v862_v32  ;;  %v870_v51 = vrot.slane %v834_v7, 2  ;;  %v871_v46 = vrot.slane %v835_v1, 2 }
  0x75   : > { %v866_v48 = vsel %vm381_vm1, %v864_v26, %v865_v40  ;;  %v869_v43 = vsel %vm381_vm1, %v867_v45, %v868_v39  ;;  %v873_v25 = vrot.slane %v836_v2, 2  ;;  %v874_v28 = vrot.slane %v837_v13, 2 }
  0x76   : > { %v872_v35 = vsel %vm381_vm1, %v870_v51, %v871_v46  ;;  %v876_v16 = vrot.slane %v838_v20, 2  ;;  %v877_v22 = vrot.slane %v839_v44, 2  ;;  %v879_v62 = vrot.slane %v840_v33, 2 }
  0x77   : > { %v875_v47 = vsel %vm381_vm1, %v873_v25, %v874_v28  ;;  %v880_v52 = vrot.slane %v841_v11, 2  ;;  %v890_v3 = vadd.f32 %v860_v12, %v817_v49  ;;  %v891_v8 = vadd.f32 %v863_v18, %v818_v50 }
  0x78   : > { %v878_v54 = vsel %vm381_vm1, %v876_v16, %v877_v22  ;;  %v892_v10 = vadd.f32 %v866_v48, %v819_v58  ;;  %v893_v55 = vadd.f32 %v869_v43, %v820_v59  ;;  %v894_v36 = vadd.f32 %v872_v35, %v821_v60 }
  0x79   : > { %v881_v7 = vsel %vm381_vm1, %v879_v62, %v880_v52  ;;  %v895_v1 = vadd.f32 %v875_v47, %v822_v61  ;;  %v896_v2 = vadd.f32 %v878_v54, %v823_v24  ;;  %v899_v13 = vmul.f32 %v4261_v30, %v3923_v5 }
  0x7a   : > { %v897_v20 = vadd.f32 %v881_v7, %v824_v6  ;;  %v900_v44 = vmul.f32 %v4192_v14, %v4261_v30  ;;  %v901_v49 = vmul.f32 %v4261_v30, %v3935_v9  ;;  %v902_v50 = vmul.f32 %v4195_v19, %v4261_v30 }
  0x7b   : > { %v903_v58 = vmul.f32 %v4261_v30, %v3945_v15  ;;  %v904_v59 = vmul.f32 %v4202_v37, %v4261_v30  ;;  %v905_v60 = vmul.f32 %v4261_v30, %v3951_v17  ;;  %v906_v61 = vmul.f32 %v4205_v0, %v4261_v30 }
  0x7c   : > { %v907_v24 = vmul.f32 %v4261_v30, %v3961_v23  ;;  %v908_v6 = vmul.f32 %v4208_v4, %v4261_v30  ;;  %v909_v33 = vmul.f32 %v4261_v30, %v3971_v29  ;;  %v910_v11 = vmul.f32 %v4211_v53, %v4261_v30 }
  0x7d   : > { %v911_v38 = vmul.f32 %v4261_v30, %v3977_v31  ;;  %v912_v21 = vmul.f32 %v4214_v56, %v4261_v30  ;;  %v913_v41 = vmul.f32 %v4184_v27, %v4261_v30  ;;  %v914_v32 = vmul.f32 %v4217_v57, %v4261_v30 }
  0x7e   : > { %v931_v26 = vrot.slane %v899_v13, 3  ;;  %v932_v40 = vrot.slane %v900_v44, 3  ;;  %v934_v45 = vrot.slane %v901_v49, 3  ;;  %v935_v39 = vrot.slane %v902_v50, 3 }
  0x7f   : > { %v937_v12 = vrot.slane %v903_v58, 3  ;;  %v938_v18 = vrot.slane %v904_v59, 3  ;;  %v940_v51 = vrot.slane %v905_v60, 3  ;;  %v941_v46 = vrot.slane %v906_v61, 3 }
  0x80   : > { %v933_v48 = vsel %vm455_vm2, %v931_v26, %v932_v40  ;;  %v936_v43 = vsel %vm455_vm2, %v934_v45, %v935_v39  ;;  %v943_v25 = vrot.slane %v907_v24, 3  ;;  %v944_v28 = vrot.slane %v908_v6, 3 }
  0x81   : > { %v939_v35 = vsel %vm455_vm2, %v937_v12, %v938_v18  ;;  %v942_v16 = vsel %vm455_vm2, %v940_v51, %v941_v46  ;;  %v946_v22 = vrot.slane %v909_v33, 3  ;;  %v947_v30 = vrot.slane %v910_v11, 3 }
  0x82   : > { %v945_v62 = vsel %vm455_vm2, %v943_v25, %v944_v28  ;;  %v949_v47 = vrot.slane %v911_v38, 3  ;;  %v950_v52 = vrot.slane %v912_v21, 3  ;;  %v952_v54 = vrot.slane %v913_v41, 3 }
  0x83   : > { %v948_v7 = vsel %vm455_vm2, %v946_v22, %v947_v30  ;;  %v953_v13 = vrot.slane %v914_v32, 3  ;;  %v963_v44 = vadd.f32 %v933_v48, %v890_v3  ;;  %v964_v49 = vadd.f32 %v936_v43, %v891_v8 }
  0x84   : > { %v951_v50 = vsel %vm455_vm2, %v949_v47, %v950_v52  ;;  %v965_v58 = vadd.f32 %v939_v35, %v892_v10  ;;  %v966_v59 = vadd.f32 %v942_v16, %v893_v55  ;;  %v967_v60 = vadd.f32 %v945_v62, %v894_v36 }
  0x85   : > { %v954_v61 = vsel %vm455_vm2, %v952_v54, %v953_v13  ;;  %v968_v24 = vadd.f32 %v948_v7, %v895_v1  ;;  %v969_v6 = vadd.f32 %v951_v50, %v896_v2  ;;  %v972_v33 = vmul.f32 %v4264_v63, %v3923_v5 }
  0x86   : > { %v970_v11 = vadd.f32 %v954_v61, %v897_v20  ;;  %v973_v38 = vmul.f32 %v4192_v14, %v4264_v63  ;;  %v974_v3 = vmul.f32 %v4264_v63, %v3935_v9  ;;  %v975_v8 = vmul.f32 %v4195_v19, %v4264_v63 }
  0x87   : > { %v976_v10 = vmul.f32 %v4264_v63, %v3945_v15  ;;  %v977_v55 = vmul.f32 %v4202_v37, %v4264_v63  ;;  %v978_v36 = vmul.f32 %v4264_v63, %v3951_v17  ;;  %v979_v5 = vmul.f32 %v4205_v0, %v4264_v63 }
  0x88   : > { %v980_v1 = vmul.f32 %v4264_v63, %v3961_v23  ;;  %v981_v9 = vmul.f32 %v4208_v4, %v4264_v63  ;;  %v982_v2 = vmul.f32 %v4264_v63, %v3971_v29  ;;  %v983_v15 = vmul.f32 %v4211_v53, %v4264_v63 }
  0x89   : > { %v984_v20 = vmul.f32 %v4264_v63, %v3977_v31  ;;  %v985_v17 = vmul.f32 %v4214_v56, %v4264_v63  ;;  %v986_v21 = vmul.f32 %v4184_v27, %v4264_v63  ;;  %v987_v23 = vmul.f32 %v4217_v57, %v4264_v63 }
  0x8a   : > { %v1004_v41 = vrot.slane %v972_v33, 4  ;;  %v1005_v32 = vrot.slane %v973_v38, 4  ;;  %v1007_v26 = vrot.slane %v974_v3, 4  ;;  %v1008_v40 = vrot.slane %v975_v8, 4  ;;  %v3815_v3 = vld [vmem:[%s3914_s21 + $0x10] sm:$0xff] }
  0x8b   : > { %v1010_v29 = vrot.slane %v976_v10, 4  ;;  %v1011_v45 = vrot.slane %v977_v55, 4  ;;  %v1013_v39 = vrot.slane %v978_v36, 4  ;;  %v1014_v12 = vrot.slane %v979_v5, 4  ;;  %v3819_v5 = vld [vmem:[%s3914_s21 + $0x50] sm:$0xff] }
  0x8c   : > { %v1006_v18 = vsel %vm529_vm3, %v1004_v41, %v1005_v32  ;;  %v1009_v31 = vsel %vm529_vm3, %v1007_v26, %v1008_v40  ;;  %v1016_v51 = vrot.slane %v980_v1, 4  ;;  %v1017_v46 = vrot.slane %v981_v9, 4 }
  0x8d   : > { %v1012_v48 = vsel %vm529_vm3, %v1010_v29, %v1011_v45  ;;  %v1015_v43 = vsel %vm529_vm3, %v1013_v39, %v1014_v12  ;;  %v1019_v25 = vrot.slane %v982_v2, 4  ;;  %v1020_v63 = vrot.slane %v983_v15, 4  ;;  %v3820_v2 = vld [vmem:[%s3914_s21 + $0x60] sm:$0xff] }
  0x8e   : > { %v1018_v28 = vsel %vm529_vm3, %v1016_v51, %v1017_v46  ;;  %v1022_v35 = vrot.slane %v984_v20, 4  ;;  %v1023_v16 = vrot.slane %v985_v17, 4  ;;  %v1025_v22 = vrot.slane %v986_v21, 4  ;;  %v3821_v17 = vld [vmem:[%s3914_s21 + $0x70] sm:$0xff] }
  0x8f   : > { %v1021_v30 = vsel %vm529_vm3, %v1019_v25, %v1020_v63  ;;  %v1026_v62 = vrot.slane %v987_v23, 4  ;;  %v1036_v47 = vadd.f32 %v1006_v18, %v963_v44  ;;  %v1037_v52 = vadd.f32 %v1009_v31, %v964_v49  ;;  %v3816_v49 = vld [vmem:[%s3914_s21 + $0x20] sm:$0xff] }
  0x90   : > { %v1024_v54 = vsel %vm529_vm3, %v1022_v35, %v1023_v16  ;;  %v1038_v7 = vadd.f32 %v1012_v48, %v965_v58  ;;  %v1039_v13 = vadd.f32 %v1015_v43, %v966_v59  ;;  %v1040_v50 = vadd.f32 %v1018_v28, %v967_v60  ;;  %v3817_v60 = vld [vmem:[%s3914_s21 + $0x30] sm:$0xff] }
  0x91   : > { %v1027_v61 = vsel %vm529_vm3, %v1025_v22, %v1026_v62  ;;  %v1041_v33 = vadd.f32 %v1021_v30, %v968_v24  ;;  %v1042_v38 = vadd.f32 %v1024_v54, %v969_v6  ;;  %v1045_v8 = vmul.f32 %v3815_v3, %v4267_v42  ;;  %v3818_v6 = vld [vmem:[%s3914_s21 + $0x40] sm:$0xff]  ;;  %v4413_v62 = vld [vmem:[%s5848_s1 + $0x10] sm:$0x7f] }
  0x92   : > { %v1043_v10 = vadd.f32 %v1027_v61, %v970_v11  ;;  %v1046_v44 = vmul.f32 %v4192_v14, %v4267_v42  ;;  %v1047_v58 = vmul.f32 %v3816_v49, %v4267_v42  ;;  %v1048_v59 = vmul.f32 %v4195_v19, %v4267_v42 }
  0x93   : > { %v1049_v55 = vmul.f32 %v3817_v60, %v4267_v42  ;;  %v1050_v24 = vmul.f32 %v4202_v37, %v4267_v42  ;;  %v1051_v36 = vmul.f32 %v3818_v6, %v4267_v42  ;;  %v1052_v11 = vmul.f32 %v4205_v0, %v4267_v42 }
  0x94   : > { %v1053_v1 = vmul.f32 %v3819_v5, %v4267_v42  ;;  %v1054_v9 = vmul.f32 %v4208_v4, %v4267_v42  ;;  %v1055_v15 = vmul.f32 %v3820_v2, %v4267_v42  ;;  %v1056_v20 = vmul.f32 %v4211_v53, %v4267_v42 }
  0x95   : > { %v1057_v21 = vmul.f32 %v3821_v17, %v4267_v42  ;;  %v1058_v23 = vmul.f32 %v4214_v56, %v4267_v42  ;;  %v1059_v41 = vmul.f32 %v4184_v27, %v4267_v42  ;;  %v1060_v32 = vmul.f32 %v4217_v57, %v4267_v42 }
  0x96   : > { %v1077_v26 = vrot.slane %v1045_v8, 5  ;;  %v1078_v40 = vrot.slane %v1046_v44, 5  ;;  %v1080_v29 = vrot.slane %v1047_v58, 5  ;;  %v1081_v45 = vrot.slane %v1048_v59, 5 }
  0x97   : > { %v1083_v39 = vrot.slane %v1049_v55, 5  ;;  %v1084_v12 = vrot.slane %v1050_v24, 5  ;;  %v1086_v18 = vrot.slane %v1051_v36, 5  ;;  %v1087_v31 = vrot.slane %v1052_v11, 5 }
  0x98   : > { %v1079_v51 = vsel %vm603_vm4, %v1077_v26, %v1078_v40  ;;  %v1082_v46 = vsel %vm603_vm4, %v1080_v29, %v1081_v45  ;;  %v1089_v48 = vrot.slane %v1053_v1, 5  ;;  %v1090_v43 = vrot.slane %v1054_v9, 5 }
  0x99   : > { %v1085_v25 = vsel %vm603_vm4, %v1083_v39, %v1084_v12  ;;  %v1088_v63 = vsel %vm603_vm4, %v1086_v18, %v1087_v31  ;;  %v1092_v28 = vrot.slane %v1055_v15, 5  ;;  %v1093_v42 = vrot.slane %v1056_v20, 5 }
  0x9a   : > { %v1091_v35 = vsel %vm603_vm4, %v1089_v48, %v1090_v43  ;;  %v1095_v16 = vrot.slane %v1057_v21, 5  ;;  %v1096_v22 = vrot.slane %v1058_v23, 5  ;;  %v1098_v30 = vrot.slane %v1059_v41, 5  ;;  %v4443_v48 = vld [vmem:[%s3914_s21 + $0x20] sm:$0xff] }
  0x9b   : > { %v1094_v54 = vsel %vm603_vm4, %v1092_v28, %v1093_v42  ;;  %v1099_v61 = vrot.slane %v1060_v32, 5  ;;  %v1109_v8 = vadd.f32 %v1079_v51, %v1036_v47  ;;  %v1110_v44 = vadd.f32 %v1082_v46, %v1037_v52  ;;  %v4447_v42 = vld [vmem:[%s3914_s21 + $0x30] sm:$0xff] }
  0x9c   : > { %v1097_v58 = vsel %vm603_vm4, %v1095_v16, %v1096_v22  ;;  %v1111_v59 = vadd.f32 %v1085_v25, %v1038_v7  ;;  %v1112_v55 = vadd.f32 %v1088_v63, %v1039_v13  ;;  %v1113_v24 = vadd.f32 %v1091_v35, %v1040_v50  ;;  %v4450_v35 = vld [vmem:[%s3914_s21 + $0x40] sm:$0xff]  ;;  %v4453_v16 = vld [vmem:[%s3914_s21 + $0x50] sm:$0xff] }
  0x9d   : > { %v1100_v36 = vsel %vm603_vm4, %v1098_v30, %v1099_v61  ;;  %v1114_v11 = vadd.f32 %v1094_v54, %v1041_v33  ;;  %v1115_v1 = vadd.f32 %v1097_v58, %v1042_v38  ;;  %v1117_v9 = vperm.slane %v4150_v34, 6  ;;  %v4457_v58 = vld [vmem:[%s3914_s21 + $0x60] sm:$0xff] }
  0x9e   : > { %v1116_v15 = vadd.f32 %v1100_v36, %v1043_v10  ;;  %v4420_v20 = vperm.slane %v4413_v62, 0  ;;  %v4423_v21 = vperm.slane %v4413_v62, 1  ;;  %v4426_v47 = vperm.slane %v4413_v62, 2  ;;  %v4460_v36 = vld [vmem:[%s3914_s21 + $0x70] sm:$0xff] }
  0x9f   : > { %v1118_v52 = vmul.f32 %v3815_v3, %v1117_v9  ;;  %v1119_v7 = vmul.f32 %v4192_v14, %v1117_v9  ;;  %v1120_v13 = vmul.f32 %v3816_v49, %v1117_v9  ;;  %v1121_v50 = vmul.f32 %v4195_v19, %v1117_v9 }
  0xa0   : > { %v1122_v33 = vmul.f32 %v3817_v60, %v1117_v9  ;;  %v1123_v38 = vmul.f32 %v4202_v37, %v1117_v9  ;;  %v1124_v34 = vmul.f32 %v3818_v6, %v1117_v9  ;;  %v1125_v10 = vmul.f32 %v4205_v0, %v1117_v9 }
  0xa1   : > { %v1126_v23 = vmul.f32 %v3819_v5, %v1117_v9  ;;  %v1127_v41 = vmul.f32 %v4208_v4, %v1117_v9  ;;  %v1128_v32 = vmul.f32 %v3820_v2, %v1117_v9  ;;  %v1129_v26 = vmul.f32 %v4211_v53, %v1117_v9 }
  0xa2   : > { %v1130_v40 = vmul.f32 %v3821_v17, %v1117_v9  ;;  %v1131_v3 = vmul.f32 %v4214_v56, %v1117_v9  ;;  %v1132_v14 = vmul.f32 %v4184_v27, %v1117_v9  ;;  %v1133_v49 = vmul.f32 %v4217_v57, %v1117_v9 }
  0xa3   : > { %v1150_v19 = vrot.slane %v1118_v52, 6  ;;  %v1151_v60 = vrot.slane %v1119_v7, 6  ;;  %v1153_v29 = vrot.slane %v1120_v13, 6  ;;  %v1154_v37 = vrot.slane %v1121_v50, 6  ;;  %v4475_v50 = vld [vmem:[%s3914_s21 + $0x28] sm:$0x3f] }
  0xa4   : > { %v1156_v6 = vrot.slane %v1122_v33, 6  ;;  %v1157_v0 = vrot.slane %v1123_v38, 6  ;;  %v1159_v5 = vrot.slane %v1124_v34, 6  ;;  %v1160_v45 = vrot.slane %v1125_v10, 6  ;;  %v4478_v33 = vld [vmem:[%s3914_s21 + $0x38] sm:$0x3f] }
  0xa5   : > { %v1152_v4 = vsel %vm677_vm5, %v1150_v19, %v1151_v60  ;;  %v1155_v53 = vsel %vm677_vm5, %v1153_v29, %v1154_v37  ;;  %v1162_v2 = vrot.slane %v1126_v23, 6  ;;  %v1163_v56 = vrot.slane %v1127_v41, 6  ;;  %v4489_v34 = vld [vmem:[%s3914_s21 + $0x48] sm:$0x3f]  ;;  %v4492_v10 = vld [vmem:[%s3914_s21 + $0x58] sm:$0x3f] }
  0xa6   : > { %v1158_v57 = vsel %vm677_vm5, %v1156_v6, %v1157_v0  ;;  %v1161_v17 = vsel %vm677_vm5, %v1159_v5, %v1160_v45  ;;  %v1165_v39 = vrot.slane %v1128_v32, 6  ;;  %v1166_v12 = vrot.slane %v1129_v26, 6  ;;  %v4501_v29 = vld [vmem:[%s3914_s21 + $0x88] sm:$0x3f]  ;;  %v4504_v37 = vld [vmem:[%s3914_s21 + $0x98] sm:$0x3f] }
  0xa7   : > { %v1164_v18 = vsel %vm677_vm5, %v1162_v2, %v1163_v56  ;;  %v1168_v31 = vrot.slane %v1130_v40, 6  ;;  %v1169_v51 = vrot.slane %v1131_v3, 6  ;;  %v1171_v46 = vrot.slane %v1132_v14, 6  ;;  %v4495_v40 = vld [vmem:[%s3914_s21 + $0x68] sm:$0x3f] }
  0xa8   : > { %v1167_v43 = vsel %vm677_vm5, %v1165_v39, %v1166_v12  ;;  %v1172_v25 = vrot.slane %v1133_v49, 6  ;;  %v1182_v63 = vadd.f32 %v1152_v4, %v1109_v8  ;;  %v1183_v28 = vadd.f32 %v1155_v53, %v1110_v44  ;;  %v4463_v8 = vld [vmem:[%s3914_s21 + $0x90] sm:$0xff]  ;;  %v4498_v3 = vld [vmem:[%s3914_s21 + $0x78] sm:$0x3f] }
  0xa9   : > { %v1170_v22 = vsel %vm677_vm5, %v1168_v31, %v1169_v51  ;;  %v1184_v30 = vadd.f32 %v1158_v57, %v1111_v59  ;;  %v1185_v54 = vadd.f32 %v1161_v17, %v1112_v55  ;;  %v1186_v61 = vadd.f32 %v1164_v18, %v1113_v24 }
  0xaa   : > { %v1173_v44 = vsel %vm677_vm5, %v1171_v46, %v1172_v25  ;;  %v1187_v9 = vadd.f32 %v1167_v43, %v1114_v11  ;;  %v1188_v52 = vadd.f32 %v1170_v22, %v1115_v1  ;;  %v1208_v7 = vmul.f32 %v4443_v48, %v4420_v20 }
  0xab   : > { %v1189_v13 = vadd.f32 %v1173_v44, %v1116_v15  ;;  %v1209_v59 = vmul.f32 %v4447_v42, %v4420_v20  ;;  %v1210_v55 = vmul.f32 %v4450_v35, %v4420_v20  ;;  %v1211_v24 = vmul.f32 %v4453_v16, %v4420_v20 }
  0xac   : > { %v1212_v11 = vmul.f32 %v4457_v58, %v4420_v20  ;;  %v1213_v1 = vmul.f32 %v4460_v36, %v4420_v20  ;;  %v1214_v15 = vmul.f32 %v4184_v27, %v4420_v20  ;;  %v1215_v38 = vmul.f32 %v4463_v8, %v4420_v20 }
  0xad   : > { %v1216_v23 = vadd.f32 %v1208_v7, %v1182_v63  ;;  %v1217_v41 = vadd.f32 %v1209_v59, %v1183_v28  ;;  %v1218_v32 = vadd.f32 %v1210_v55, %v1184_v30  ;;  %v1219_v26 = vadd.f32 %v1211_v24, %v1185_v54 }
  0xae   : > { %v1220_v14 = vadd.f32 %v1212_v11, %v1186_v61  ;;  %v1221_v49 = vadd.f32 %v1213_v1, %v1187_v9  ;;  %v1222_v19 = vadd.f32 %v1214_v15, %v1188_v52  ;;  %v1223_v60 = vadd.f32 %v1215_v38, %v1189_v13 }
  0xaf   : > { %v1225_v20 = vmul.f32 %v4443_v48, %v4423_v21  ;;  %v1226_v6 = vmul.f32 %v4475_v50, %v4423_v21  ;;  %v1227_v0 = vmul.f32 %v4447_v42, %v4423_v21  ;;  %v1228_v5 = vmul.f32 %v4478_v33, %v4423_v21 }
  0xb0   : > { %v1229_v45 = vmul.f32 %v4450_v35, %v4423_v21  ;;  %v1230_v4 = vmul.f32 %v4489_v34, %v4423_v21  ;;  %v1231_v53 = vmul.f32 %v4453_v16, %v4423_v21  ;;  %v1232_v2 = vmul.f32 %v4492_v10, %v4423_v21 }
  0xb1   : > { %v1233_v56 = vmul.f32 %v4457_v58, %v4423_v21  ;;  %v1234_v57 = vmul.f32 %v4495_v40, %v4423_v21  ;;  %v1235_v17 = vmul.f32 %v4460_v36, %v4423_v21  ;;  %v1236_v39 = vmul.f32 %v4498_v3, %v4423_v21 }
  0xb2   : > { %v1237_v12 = vmul.f32 %v4184_v27, %v4423_v21  ;;  %v1238_v18 = vmul.f32 %v4501_v29, %v4423_v21  ;;  %v1239_v31 = vmul.f32 %v4463_v8, %v4423_v21  ;;  %v1240_v51 = vmul.f32 %v4504_v37, %v4423_v21 }
  0xb3   : > { %v1257_v46 = vrot.slane %v1225_v20, 1  ;;  %v1258_v43 = vrot.slane %v1226_v6, 1  ;;  %v1260_v25 = vrot.slane %v1227_v0, 1  ;;  %v1261_v63 = vrot.slane %v1228_v5, 1 }
  0xb4   : > { %v1263_v28 = vrot.slane %v1229_v45, 1  ;;  %v1264_v22 = vrot.slane %v1230_v4, 1  ;;  %v1266_v30 = vrot.slane %v1231_v53, 1  ;;  %v1267_v54 = vrot.slane %v1232_v2, 1 }
  0xb5   : > { %v1259_v61 = vsel %vm307_vm0, %v1257_v46, %v1258_v43  ;;  %v1262_v44 = vsel %vm307_vm0, %v1260_v25, %v1261_v63  ;;  %v1269_v9 = vrot.slane %v1233_v56, 1  ;;  %v1270_v52 = vrot.slane %v1234_v57, 1 }
  0xb6   : > { %v1265_v7 = vsel %vm307_vm0, %v1263_v28, %v1264_v22  ;;  %v1268_v13 = vsel %vm307_vm0, %v1266_v30, %v1267_v54  ;;  %v1272_v59 = vrot.slane %v1235_v17, 1  ;;  %v1273_v21 = vrot.slane %v1236_v39, 1 }
  0xb7   : > { %v1271_v55 = vsel %vm307_vm0, %v1269_v9, %v1270_v52  ;;  %v1275_v24 = vrot.slane %v1237_v12, 1  ;;  %v1276_v11 = vrot.slane %v1238_v18, 1  ;;  %v1278_v1 = vrot.slane %v1239_v31, 1 }
  0xb8   : > { %v1274_v15 = vsel %vm307_vm0, %v1272_v59, %v1273_v21  ;;  %v1279_v38 = vrot.slane %v1240_v51, 1  ;;  %v1289_v20 = vadd.f32 %v1259_v61, %v1216_v23  ;;  %v1290_v6 = vadd.f32 %v1262_v44, %v1217_v41 }
  0xb9   : > { %v1277_v0 = vsel %vm307_vm0, %v1275_v24, %v1276_v11  ;;  %v1291_v5 = vadd.f32 %v1265_v7, %v1218_v32  ;;  %v1292_v45 = vadd.f32 %v1268_v13, %v1219_v26  ;;  %v1293_v4 = vadd.f32 %v1271_v55, %v1220_v14 }
  0xba   : > { %v1280_v53 = vsel %vm307_vm0, %v1278_v1, %v1279_v38  ;;  %v1294_v2 = vadd.f32 %v1274_v15, %v1221_v49  ;;  %v1295_v56 = vadd.f32 %v1277_v0, %v1222_v19  ;;  %v1298_v57 = vmul.f32 %v4443_v48, %v4426_v47 }
  0xbb   : > { %v1296_v17 = vadd.f32 %v1280_v53, %v1223_v60  ;;  %v1299_v39 = vmul.f32 %v4475_v50, %v4426_v47  ;;  %v1300_v23 = vmul.f32 %v4447_v42, %v4426_v47  ;;  %v1301_v41 = vmul.f32 %v4478_v33, %v4426_v47 }
  0xbc   : > { %v1302_v32 = vmul.f32 %v4450_v35, %v4426_v47  ;;  %v1303_v26 = vmul.f32 %v4489_v34, %v4426_v47  ;;  %v1304_v14 = vmul.f32 %v4453_v16, %v4426_v47  ;;  %v1305_v49 = vmul.f32 %v4492_v10, %v4426_v47 }
  0xbd   : > { %v1306_v19 = vmul.f32 %v4457_v58, %v4426_v47  ;;  %v1307_v60 = vmul.f32 %v4495_v40, %v4426_v47  ;;  %v1308_v12 = vmul.f32 %v4460_v36, %v4426_v47  ;;  %v1309_v18 = vmul.f32 %v4498_v3, %v4426_v47 }
  0xbe   : > { %v1310_v31 = vmul.f32 %v4184_v27, %v4426_v47  ;;  %v1311_v51 = vmul.f32 %v4501_v29, %v4426_v47  ;;  %v1312_v46 = vmul.f32 %v4463_v8, %v4426_v47  ;;  %v1313_v43 = vmul.f32 %v4504_v37, %v4426_v47 }
  0xbf   : > { %v1330_v25 = vrot.slane %v1298_v57, 2  ;;  %v1331_v63 = vrot.slane %v1299_v39, 2  ;;  %v1333_v28 = vrot.slane %v1300_v23, 2  ;;  %v1334_v22 = vrot.slane %v1301_v41, 2 }
  0xc0   : > { %v1336_v30 = vrot.slane %v1302_v32, 2  ;;  %v1337_v54 = vrot.slane %v1303_v26, 2  ;;  %v1339_v61 = vrot.slane %v1304_v14, 2  ;;  %v1340_v44 = vrot.slane %v1305_v49, 2 }
  0xc1   : > { %v1332_v9 = vsel %vm381_vm1, %v1330_v25, %v1331_v63  ;;  %v1335_v52 = vsel %vm381_vm1, %v1333_v28, %v1334_v22  ;;  %v1342_v7 = vrot.slane %v1306_v19, 2  ;;  %v1343_v13 = vrot.slane %v1307_v60, 2 }
  0xc2   : > { %v1338_v59 = vsel %vm381_vm1, %v1336_v30, %v1337_v54  ;;  %v1341_v21 = vsel %vm381_vm1, %v1339_v61, %v1340_v44  ;;  %v1345_v55 = vrot.slane %v1308_v12, 2  ;;  %v1346_v47 = vrot.slane %v1309_v18, 2 }
  0xc3   : > { %v1344_v24 = vsel %vm381_vm1, %v1342_v7, %v1343_v13  ;;  %v1348_v11 = vrot.slane %v1310_v31, 2  ;;  %v1349_v1 = vrot.slane %v1311_v51, 2  ;;  %v1351_v15 = vrot.slane %v1312_v46, 2 }
  0xc4   : > { %v1347_v38 = vsel %vm381_vm1, %v1345_v55, %v1346_v47  ;;  %v1352_v0 = vrot.slane %v1313_v43, 2  ;;  %v1362_v53 = vadd.f32 %v1332_v9, %v1289_v20  ;;  %v1363_v57 = vadd.f32 %v1335_v52, %v1290_v6 }
  0xc5   : > { %v1350_v39 = vsel %vm381_vm1, %v1348_v11, %v1349_v1  ;;  %v1364_v23 = vadd.f32 %v1338_v59, %v1291_v5  ;;  %v1365_v41 = vadd.f32 %v1341_v21, %v1292_v45  ;;  %v1366_v32 = vadd.f32 %v1344_v24, %v1293_v4 }
  0xc6   : > { %v1353_v26 = vsel %vm381_vm1, %v1351_v15, %v1352_v0  ;;  %v1367_v14 = vadd.f32 %v1347_v38, %v1294_v2  ;;  %v1368_v49 = vadd.f32 %v1350_v39, %v1295_v56  ;;  %v1370_v19 = vperm.slane %v4413_v62, 3 }
  0xc7   : > { %v1369_v60 = vadd.f32 %v1353_v26, %v1296_v17  ;;  %v4588_v12 = vperm.slane %v4413_v62, 4  ;;  %v4591_v18 = vperm.slane %v4413_v62, 5  ;;  %v4594_v20 = vperm.slane %v4413_v62, 6 }
  0xc8   : > { %v1371_v6 = vmul.f32 %v4443_v48, %v1370_v19  ;;  %v1372_v5 = vmul.f32 %v4475_v50, %v1370_v19  ;;  %v1373_v45 = vmul.f32 %v4447_v42, %v1370_v19  ;;  %v1374_v4 = vmul.f32 %v4478_v33, %v1370_v19 }
  0xc9   : > { %v1375_v2 = vmul.f32 %v4450_v35, %v1370_v19  ;;  %v1376_v56 = vmul.f32 %v4489_v34, %v1370_v19  ;;  %v1377_v17 = vmul.f32 %v4453_v16, %v1370_v19  ;;  %v1378_v31 = vmul.f32 %v4492_v10, %v1370_v19 }
  0xca   : > { %v1379_v51 = vmul.f32 %v4457_v58, %v1370_v19  ;;  %v1380_v62 = vmul.f32 %v4495_v40, %v1370_v19  ;;  %v1381_v46 = vmul.f32 %v4460_v36, %v1370_v19  ;;  %v1382_v43 = vmul.f32 %v4498_v3, %v1370_v19 }
  0xcb   : > { %v1383_v25 = vmul.f32 %v4184_v27, %v1370_v19  ;;  %v1384_v63 = vmul.f32 %v4501_v29, %v1370_v19  ;;  %v1385_v28 = vmul.f32 %v4463_v8, %v1370_v19  ;;  %v1386_v22 = vmul.f32 %v4504_v37, %v1370_v19 }
  0xcc   : > { %v1403_v30 = vrot.slane %v1371_v6, 3  ;;  %v1404_v54 = vrot.slane %v1372_v5, 3  ;;  %v1406_v61 = vrot.slane %v1373_v45, 3  ;;  %v1407_v44 = vrot.slane %v1374_v4, 3 }
  0xcd   : > { %v1409_v9 = vrot.slane %v1375_v2, 3  ;;  %v1410_v52 = vrot.slane %v1376_v56, 3  ;;  %v1412_v7 = vrot.slane %v1377_v17, 3  ;;  %v1413_v13 = vrot.slane %v1378_v31, 3 }
  0xce   : > { %v1405_v59 = vsel %vm455_vm2, %v1403_v30, %v1404_v54  ;;  %v1408_v21 = vsel %vm455_vm2, %v1406_v61, %v1407_v44  ;;  %v1415_v55 = vrot.slane %v1379_v51, 3  ;;  %v1416_v27 = vrot.slane %v1380_v62, 3 }
  0xcf   : > { %v1411_v47 = vsel %vm455_vm2, %v1409_v9, %v1410_v52  ;;  %v1414_v24 = vsel %vm455_vm2, %v1412_v7, %v1413_v13  ;;  %v1418_v11 = vrot.slane %v1381_v46, 3  ;;  %v1419_v1 = vrot.slane %v1382_v43, 3 }
  0xd0   : > { %v1417_v15 = vsel %vm455_vm2, %v1415_v55, %v1416_v27  ;;  %v1421_v38 = vrot.slane %v1383_v25, 3  ;;  %v1422_v0 = vrot.slane %v1384_v63, 3  ;;  %v1424_v39 = vrot.slane %v1385_v28, 3  ;;  %v4645_v28 = vld [vmem:[%s3914_s21 + $0x80] sm:$0xff] }
  0xd1   : > { %v1420_v26 = vsel %vm455_vm2, %v1418_v11, %v1419_v1  ;;  %v1425_v19 = vrot.slane %v1386_v22, 3  ;;  %v1435_v6 = vadd.f32 %v1405_v59, %v1362_v53  ;;  %v1436_v5 = vadd.f32 %v1408_v21, %v1363_v57 }
  0xd2   : > { %v1423_v45 = vsel %vm455_vm2, %v1421_v38, %v1422_v0  ;;  %v1437_v4 = vadd.f32 %v1411_v47, %v1364_v23  ;;  %v1438_v2 = vadd.f32 %v1414_v24, %v1365_v41  ;;  %v1439_v56 = vadd.f32 %v1417_v15, %v1366_v32 }
  0xd3   : > { %v1426_v17 = vsel %vm455_vm2, %v1424_v39, %v1425_v19  ;;  %v1440_v31 = vadd.f32 %v1420_v26, %v1367_v14  ;;  %v1441_v51 = vadd.f32 %v1423_v45, %v1368_v49  ;;  %v1444_v62 = vmul.f32 %v4443_v48, %v4588_v12 }
  0xd4   : > { %v1442_v46 = vadd.f32 %v1426_v17, %v1369_v60  ;;  %v1445_v43 = vmul.f32 %v4475_v50, %v4588_v12  ;;  %v1446_v53 = vmul.f32 %v4447_v42, %v4588_v12  ;;  %v1447_v57 = vmul.f32 %v4478_v33, %v4588_v12 }
  0xd5   : > { %v1448_v23 = vmul.f32 %v4450_v35, %v4588_v12  ;;  %v1449_v41 = vmul.f32 %v4489_v34, %v4588_v12  ;;  %v1450_v32 = vmul.f32 %v4453_v16, %v4588_v12  ;;  %v1451_v14 = vmul.f32 %v4492_v10, %v4588_v12 }
  0xd6   : > { %v1452_v49 = vmul.f32 %v4457_v58, %v4588_v12  ;;  %v1453_v60 = vmul.f32 %v4495_v40, %v4588_v12  ;;  %v1454_v25 = vmul.f32 %v4460_v36, %v4588_v12  ;;  %v1455_v63 = vmul.f32 %v4498_v3, %v4588_v12 }
  0xd7   : > { %v1456_v22 = vmul.f32 %v4645_v28, %v4588_v12  ;;  %v1457_v30 = vmul.f32 %v4501_v29, %v4588_v12  ;;  %v1458_v54 = vmul.f32 %v4463_v8, %v4588_v12  ;;  %v1459_v61 = vmul.f32 %v4504_v37, %v4588_v12 }
  0xd8   : > { %v1476_v44 = vrot.slane %v1444_v62, 4  ;;  %v1477_v9 = vrot.slane %v1445_v43, 4  ;;  %v1479_v52 = vrot.slane %v1446_v53, 4  ;;  %v1480_v7 = vrot.slane %v1447_v57, 4 }
  0xd9   : > { %v1482_v13 = vrot.slane %v1448_v23, 4  ;;  %v1483_v59 = vrot.slane %v1449_v41, 4  ;;  %v1485_v21 = vrot.slane %v1450_v32, 4  ;;  %v1486_v55 = vrot.slane %v1451_v14, 4 }
  0xda   : > { %v1478_v27 = vsel %vm529_vm3, %v1476_v44, %v1477_v9  ;;  %v1481_v47 = vsel %vm529_vm3, %v1479_v52, %v1480_v7  ;;  %v1488_v24 = vrot.slane %v1452_v49, 4  ;;  %v1489_v11 = vrot.slane %v1453_v60, 4 }
  0xdb   : > { %v1484_v1 = vsel %vm529_vm3, %v1482_v13, %v1483_v59  ;;  %v1487_v15 = vsel %vm529_vm3, %v1485_v21, %v1486_v55  ;;  %v1491_v38 = vrot.slane %v1454_v25, 4  ;;  %v1492_v12 = vrot.slane %v1455_v63, 4 }
  0xdc   : > { %v1490_v0 = vsel %vm529_vm3, %v1488_v24, %v1489_v11  ;;  %v1494_v39 = vrot.slane %v1456_v22, 4  ;;  %v1495_v26 = vrot.slane %v1457_v30, 4  ;;  %v1497_v19 = vrot.slane %v1458_v54, 4 }
  0xdd   : > { %v1493_v45 = vsel %vm529_vm3, %v1491_v38, %v1492_v12  ;;  %v1498_v17 = vrot.slane %v1459_v61, 4  ;;  %v1508_v62 = vadd.f32 %v1478_v27, %v1435_v6  ;;  %v1509_v43 = vadd.f32 %v1481_v47, %v1436_v5 }
  0xde   : > { %v1496_v53 = vsel %vm529_vm3, %v1494_v39, %v1495_v26  ;;  %v1510_v57 = vadd.f32 %v1484_v1, %v1437_v4  ;;  %v1511_v23 = vadd.f32 %v1487_v15, %v1438_v2  ;;  %v1512_v41 = vadd.f32 %v1490_v0, %v1439_v56 }
  0xdf   : > { %v1499_v32 = vsel %vm529_vm3, %v1497_v19, %v1498_v17  ;;  %v1513_v14 = vadd.f32 %v1493_v45, %v1440_v31  ;;  %v1514_v49 = vadd.f32 %v1496_v53, %v1441_v51  ;;  %v1517_v60 = vmul.f32 %v4443_v48, %v4591_v18 }
  0xe0   : > { %v1515_v25 = vadd.f32 %v1499_v32, %v1442_v46  ;;  %v1518_v63 = vmul.f32 %v4475_v50, %v4591_v18  ;;  %v1519_v6 = vmul.f32 %v4447_v42, %v4591_v18  ;;  %v1520_v5 = vmul.f32 %v4478_v33, %v4591_v18 }
  0xe1   : > { %v1521_v4 = vmul.f32 %v4450_v35, %v4591_v18  ;;  %v1522_v2 = vmul.f32 %v4489_v34, %v4591_v18  ;;  %v1523_v56 = vmul.f32 %v4453_v16, %v4591_v18  ;;  %v1524_v31 = vmul.f32 %v4492_v10, %v4591_v18 }
  0xe2   : > { %v1525_v51 = vmul.f32 %v4457_v58, %v4591_v18  ;;  %v1526_v46 = vmul.f32 %v4495_v40, %v4591_v18  ;;  %v1527_v22 = vmul.f32 %v4460_v36, %v4591_v18  ;;  %v1528_v30 = vmul.f32 %v4498_v3, %v4591_v18 }
  0xe3   : > { %v1529_v54 = vmul.f32 %v4645_v28, %v4591_v18  ;;  %v1530_v61 = vmul.f32 %v4501_v29, %v4591_v18  ;;  %v1531_v44 = vmul.f32 %v4463_v8, %v4591_v18  ;;  %v1532_v9 = vmul.f32 %v4504_v37, %v4591_v18 }
  0xe4   : > { %v1549_v52 = vrot.slane %v1517_v60, 5  ;;  %v1550_v7 = vrot.slane %v1518_v63, 5  ;;  %v1552_v13 = vrot.slane %v1519_v6, 5  ;;  %v1553_v59 = vrot.slane %v1520_v5, 5 }
  0xe5   : > { %v1555_v21 = vrot.slane %v1521_v4, 5  ;;  %v1556_v55 = vrot.slane %v1522_v2, 5  ;;  %v1558_v27 = vrot.slane %v1523_v56, 5  ;;  %v1559_v47 = vrot.slane %v1524_v31, 5 }
  0xe6   : > { %v1551_v24 = vsel %vm603_vm4, %v1549_v52, %v1550_v7  ;;  %v1554_v11 = vsel %vm603_vm4, %v1552_v13, %v1553_v59  ;;  %v1561_v1 = vrot.slane %v1525_v51, 5  ;;  %v1562_v15 = vrot.slane %v1526_v46, 5 }
  0xe7   : > { %v1557_v38 = vsel %vm603_vm4, %v1555_v21, %v1556_v55  ;;  %v1560_v12 = vsel %vm603_vm4, %v1558_v27, %v1559_v47  ;;  %v1564_v0 = vrot.slane %v1527_v22, 5  ;;  %v1565_v18 = vrot.slane %v1528_v30, 5 }
  0xe8   : > { %v1563_v39 = vsel %vm603_vm4, %v1561_v1, %v1562_v15  ;;  %v1567_v26 = vrot.slane %v1529_v54, 5  ;;  %v1568_v19 = vrot.slane %v1530_v61, 5  ;;  %v1570_v45 = vrot.slane %v1531_v44, 5 }
  0xe9   : > { %v1566_v17 = vsel %vm603_vm4, %v1564_v0, %v1565_v18  ;;  %v1571_v53 = vrot.slane %v1532_v9, 5  ;;  %v1581_v32 = vadd.f32 %v1551_v24, %v1508_v62  ;;  %v1582_v60 = vadd.f32 %v1554_v11, %v1509_v43 }
  0xea   : > { %v1569_v63 = vsel %vm603_vm4, %v1567_v26, %v1568_v19  ;;  %v1583_v6 = vadd.f32 %v1557_v38, %v1510_v57  ;;  %v1584_v5 = vadd.f32 %v1560_v12, %v1511_v23  ;;  %v1585_v4 = vadd.f32 %v1563_v39, %v1512_v41 }
  0xeb   : > { %v1572_v2 = vsel %vm603_vm4, %v1570_v45, %v1571_v53  ;;  %v1586_v56 = vadd.f32 %v1566_v17, %v1513_v14  ;;  %v1587_v31 = vadd.f32 %v1569_v63, %v1514_v49  ;;  %v1590_v51 = vmul.f32 %v4443_v48, %v4594_v20  ;;  %v4749_v63 = vld [vmem:[%s3914_s21 + $0x80] sm:$0xff] }
  0xec   : > { %v1588_v46 = vadd.f32 %v1572_v2, %v1515_v25  ;;  %v1591_v22 = vmul.f32 %v4475_v50, %v4594_v20  ;;  %v1592_v62 = vmul.f32 %v4447_v42, %v4594_v20  ;;  %v1593_v43 = vmul.f32 %v4478_v33, %v4594_v20  ;;  %v4752_v2 = vld [vmem:[%s3914_s21 + $0xa0] sm:$0xff] }
  0xed   : > { %v1594_v57 = vmul.f32 %v4450_v35, %v4594_v20  ;;  %v1595_v23 = vmul.f32 %v4489_v34, %v4594_v20  ;;  %v1596_v41 = vmul.f32 %v4453_v16, %v4594_v20  ;;  %v1597_v48 = vmul.f32 %v4492_v10, %v4594_v20 }
  0xee   : > { %v1598_v50 = vmul.f32 %v4457_v58, %v4594_v20  ;;  %v1599_v14 = vmul.f32 %v4495_v40, %v4594_v20  ;;  %v1600_v33 = vmul.f32 %v4460_v36, %v4594_v20  ;;  %v1601_v49 = vmul.f32 %v4498_v3, %v4594_v20 }
  0xef   : > { %v1602_v34 = vmul.f32 %v4645_v28, %v4594_v20  ;;  %v1603_v25 = vmul.f32 %v4501_v29, %v4594_v20  ;;  %v1604_v10 = vmul.f32 %v4463_v8, %v4594_v20  ;;  %v1605_v30 = vmul.f32 %v4504_v37, %v4594_v20  ;;  %v4742_v20 = vld [vmem:[%s5848_s1 + $0x18] sm:$0x7f] }
  0xf0   : > { %v1622_v54 = vrot.slane %v1590_v51, 6  ;;  %v1623_v40 = vrot.slane %v1591_v22, 6  ;;  %v1625_v61 = vrot.slane %v1592_v62, 6  ;;  %v1626_v44 = vrot.slane %v1593_v43, 6  ;;  %v4767_v62 = vld [vmem:[%s3914_s21 + $0x38] sm:$0x3f] }
  0xf1   : > { %v1628_v9 = vrot.slane %v1594_v57, 6  ;;  %v1629_v52 = vrot.slane %v1595_v23, 6  ;;  %v1631_v7 = vrot.slane %v1596_v41, 6  ;;  %v1632_v3 = vrot.slane %v1597_v48, 6  ;;  %v4777_v48 = vld [vmem:[%s3914_s21 + $0x58] sm:$0x3f] }
  0xf2   : > { %v1624_v13 = vsel %vm677_vm5, %v1622_v54, %v1623_v40  ;;  %v1627_v28 = vsel %vm677_vm5, %v1625_v61, %v1626_v44  ;;  %v1634_v59 = vrot.slane %v1598_v50, 6  ;;  %v1635_v29 = vrot.slane %v1599_v14, 6  ;;  %v4780_v50 = vld [vmem:[%s3914_s21 + $0x68] sm:$0x3f]  ;;  %v4789_v44 = vld [vmem:[%s3914_s21 + $0x98] sm:$0x3f] }
  0xf3   : > { %v1630_v21 = vsel %vm677_vm5, %v1628_v9, %v1629_v52  ;;  %v1633_v55 = vsel %vm677_vm5, %v1631_v7, %v1632_v3  ;;  %v1637_v27 = vrot.slane %v1600_v33, 6  ;;  %v1638_v37 = vrot.slane %v1601_v49, 6  ;;  %v4792_v9 = vld [vmem:[%s3914_s21 + $0xa8] sm:$0x3f] }
  0xf4   : > { %v1636_v47 = vsel %vm677_vm5, %v1634_v59, %v1635_v29  ;;  %v1640_v24 = vrot.slane %v1602_v34, 6  ;;  %v1641_v11 = vrot.slane %v1603_v25, 6  ;;  %v1643_v1 = vrot.slane %v1604_v10, 6  ;;  %v4783_v25 = vld [vmem:[%s3914_s21 + $0x78] sm:$0x3f] }
  0xf5   : > { %v1639_v15 = vsel %vm677_vm5, %v1637_v27, %v1638_v37  ;;  %v1644_v38 = vrot.slane %v1605_v30, 6  ;;  %v1654_v12 = vadd.f32 %v1624_v13, %v1581_v32  ;;  %v1655_v0 = vadd.f32 %v1627_v28, %v1582_v60  ;;  %v4786_v10 = vld [vmem:[%s3914_s21 + $0x88] sm:$0x3f] }
  0xf6   : > { %v1642_v18 = vsel %vm677_vm5, %v1640_v24, %v1641_v11  ;;  %v1656_v39 = vadd.f32 %v1630_v21, %v1583_v6  ;;  %v1657_v26 = vadd.f32 %v1633_v55, %v1584_v5  ;;  %v1658_v19 = vadd.f32 %v1636_v47, %v1585_v4 }
  0xf7   : > { %v1645_v45 = vsel %vm677_vm5, %v1643_v1, %v1644_v38  ;;  %v1659_v17 = vadd.f32 %v1639_v15, %v1586_v56  ;;  %v1660_v53 = vadd.f32 %v1642_v18, %v1587_v31  ;;  %v1679_v51 = vperm.slane %v4742_v20, 0 }
  0xf8   : > { %v1661_v32 = vadd.f32 %v1645_v45, %v1588_v46  ;;  %v1696_v60 = vperm.slane %v4742_v20, 1  ;;  %v4757_v6 = vperm.slane %v4742_v20, 2  ;;  %v4760_v5 = vperm.slane %v4742_v20, 3  ;;  %v4770_v46 = vld [vmem:[%s3914_s21 + $0x48] sm:$0x3f] }
  0xf9   : > { %v1680_v4 = vmul.f32 %v4447_v42, %v1679_v51  ;;  %v1681_v56 = vmul.f32 %v4450_v35, %v1679_v51  ;;  %v1682_v31 = vmul.f32 %v4453_v16, %v1679_v51  ;;  %v1683_v22 = vmul.f32 %v4457_v58, %v1679_v51 }
  0xfa   : > { %v1684_v43 = vmul.f32 %v4460_v36, %v1679_v51  ;;  %v1685_v57 = vmul.f32 %v4749_v63, %v1679_v51  ;;  %v1686_v23 = vmul.f32 %v4463_v8, %v1679_v51  ;;  %v1687_v41 = vmul.f32 %v4752_v2, %v1679_v51 }
  0xfb   : > { %v1688_v14 = vadd.f32 %v1680_v4, %v1654_v12  ;;  %v1689_v33 = vadd.f32 %v1681_v56, %v1655_v0  ;;  %v1690_v49 = vadd.f32 %v1682_v31, %v1656_v39  ;;  %v1691_v34 = vadd.f32 %v1683_v22, %v1657_v26 }
  0xfc   : > { %v1692_v30 = vadd.f32 %v1684_v43, %v1658_v19  ;;  %v1693_v54 = vadd.f32 %v1685_v57, %v1659_v17  ;;  %v1694_v40 = vadd.f32 %v1686_v23, %v1660_v53  ;;  %v1695_v61 = vadd.f32 %v1687_v41, %v1661_v32 }
  0xfd   : > { %v1697_v52 = vmul.f32 %v4447_v42, %v1696_v60  ;;  %v1698_v7 = vmul.f32 %v4767_v62, %v1696_v60  ;;  %v1699_v3 = vmul.f32 %v4450_v35, %v1696_v60  ;;  %v1700_v13 = vmul.f32 %v4770_v46, %v1696_v60 }
  0xfe   : > { %v1701_v28 = vmul.f32 %v4453_v16, %v1696_v60  ;;  %v1702_v59 = vmul.f32 %v4777_v48, %v1696_v60  ;;  %v1703_v29 = vmul.f32 %v4457_v58, %v1696_v60  ;;  %v1704_v21 = vmul.f32 %v4780_v50, %v1696_v60 }
  0xff   : > { %v1705_v55 = vmul.f32 %v4460_v36, %v1696_v60  ;;  %v1706_v27 = vmul.f32 %v4783_v25, %v1696_v60  ;;  %v1707_v37 = vmul.f32 %v4749_v63, %v1696_v60  ;;  %v1708_v47 = vmul.f32 %v4786_v10, %v1696_v60 }
 0x100   : > { %v1709_v24 = vmul.f32 %v4463_v8, %v1696_v60  ;;  %v1710_v11 = vmul.f32 %v4789_v44, %v1696_v60  ;;  %v1711_v1 = vmul.f32 %v4752_v2, %v1696_v60  ;;  %v1712_v15 = vmul.f32 %v4792_v9, %v1696_v60 }
 0x101   : > { %v1729_v38 = vrot.slane %v1697_v52, 1  ;;  %v1730_v12 = vrot.slane %v1698_v7, 1  ;;  %v1732_v0 = vrot.slane %v1699_v3, 1  ;;  %v1733_v18 = vrot.slane %v1700_v13, 1 }
 0x102   : > { %v1735_v39 = vrot.slane %v1701_v28, 1  ;;  %v1736_v26 = vrot.slane %v1702_v59, 1  ;;  %v1738_v19 = vrot.slane %v1703_v29, 1  ;;  %v1739_v45 = vrot.slane %v1704_v21, 1 }
 0x103   : > { %v1731_v17 = vsel %vm307_vm0, %v1729_v38, %v1730_v12  ;;  %v1734_v53 = vsel %vm307_vm0, %v1732_v0, %v1733_v18  ;;  %v1741_v51 = vrot.slane %v1705_v55, 1  ;;  %v1742_v32 = vrot.slane %v1706_v27, 1 }
 0x104   : > { %v1737_v4 = vsel %vm307_vm0, %v1735_v39, %v1736_v26  ;;  %v1740_v56 = vsel %vm307_vm0, %v1738_v19, %v1739_v45  ;;  %v1744_v31 = vrot.slane %v1707_v37, 1  ;;  %v1745_v60 = vrot.slane %v1708_v47, 1 }
 0x105   : > { %v1743_v22 = vsel %vm307_vm0, %v1741_v51, %v1742_v32  ;;  %v1747_v43 = vrot.slane %v1709_v24, 1  ;;  %v1748_v57 = vrot.slane %v1710_v11, 1  ;;  %v1750_v23 = vrot.slane %v1711_v1, 1 }
 0x106   : > { %v1746_v41 = vsel %vm307_vm0, %v1744_v31, %v1745_v60  ;;  %v1751_v52 = vrot.slane %v1712_v15, 1  ;;  %v1761_v7 = vadd.f32 %v1731_v17, %v1688_v14  ;;  %v1762_v3 = vadd.f32 %v1734_v53, %v1689_v33 }
 0x107   : > { %v1749_v13 = vsel %vm307_vm0, %v1747_v43, %v1748_v57  ;;  %v1763_v28 = vadd.f32 %v1737_v4, %v1690_v49  ;;  %v1764_v59 = vadd.f32 %v1740_v56, %v1691_v34  ;;  %v1765_v29 = vadd.f32 %v1743_v22, %v1692_v30 }
 0x108   : > { %v1752_v21 = vsel %vm307_vm0, %v1750_v23, %v1751_v52  ;;  %v1766_v55 = vadd.f32 %v1746_v41, %v1693_v54  ;;  %v1767_v27 = vadd.f32 %v1749_v13, %v1694_v40  ;;  %v1770_v37 = vmul.f32 %v4447_v42, %v4757_v6 }
 0x109   : > { %v1768_v47 = vadd.f32 %v1752_v21, %v1695_v61  ;;  %v1771_v24 = vmul.f32 %v4767_v62, %v4757_v6  ;;  %v1772_v14 = vmul.f32 %v4450_v35, %v4757_v6  ;;  %v1773_v33 = vmul.f32 %v4770_v46, %v4757_v6 }
 0x10a   : > { %v1774_v49 = vmul.f32 %v4453_v16, %v4757_v6  ;;  %v1775_v34 = vmul.f32 %v4777_v48, %v4757_v6  ;;  %v1776_v30 = vmul.f32 %v4457_v58, %v4757_v6  ;;  %v1777_v54 = vmul.f32 %v4780_v50, %v4757_v6 }
 0x10b   : > { %v1778_v40 = vmul.f32 %v4460_v36, %v4757_v6  ;;  %v1779_v61 = vmul.f32 %v4783_v25, %v4757_v6  ;;  %v1780_v11 = vmul.f32 %v4749_v63, %v4757_v6  ;;  %v1781_v1 = vmul.f32 %v4786_v10, %v4757_v6 }
 0x10c   : > { %v1782_v15 = vmul.f32 %v4463_v8, %v4757_v6  ;;  %v1783_v38 = vmul.f32 %v4789_v44, %v4757_v6  ;;  %v1784_v12 = vmul.f32 %v4752_v2, %v4757_v6  ;;  %v1785_v0 = vmul.f32 %v4792_v9, %v4757_v6 }
 0x10d   : > { %v1802_v18 = vrot.slane %v1770_v37, 2  ;;  %v1803_v39 = vrot.slane %v1771_v24, 2  ;;  %v1805_v26 = vrot.slane %v1772_v14, 2  ;;  %v1806_v19 = vrot.slane %v1773_v33, 2 }
 0x10e   : > { %v1808_v45 = vrot.slane %v1774_v49, 2  ;;  %v1809_v17 = vrot.slane %v1775_v34, 2  ;;  %v1811_v53 = vrot.slane %v1776_v30, 2  ;;  %v1812_v51 = vrot.slane %v1777_v54, 2 }
 0x10f   : > { %v1804_v32 = vsel %vm381_vm1, %v1802_v18, %v1803_v39  ;;  %v1807_v4 = vsel %vm381_vm1, %v1805_v26, %v1806_v19  ;;  %v1814_v56 = vrot.slane %v1778_v40, 2  ;;  %v1815_v31 = vrot.slane %v1779_v61, 2 }
 0x110   : > { %v1810_v60 = vsel %vm381_vm1, %v1808_v45, %v1809_v17  ;;  %v1813_v22 = vsel %vm381_vm1, %v1811_v53, %v1812_v51  ;;  %v1817_v43 = vrot.slane %v1780_v11, 2  ;;  %v1818_v6 = vrot.slane %v1781_v1, 2 }
 0x111   : > { %v1816_v57 = vsel %vm381_vm1, %v1814_v56, %v1815_v31  ;;  %v1820_v23 = vrot.slane %v1782_v15, 2  ;;  %v1821_v41 = vrot.slane %v1783_v38, 2  ;;  %v1823_v52 = vrot.slane %v1784_v12, 2 }
 0x112   : > { %v1819_v13 = vsel %vm381_vm1, %v1817_v43, %v1818_v6  ;;  %v1824_v21 = vrot.slane %v1785_v0, 2  ;;  %v1834_v37 = vadd.f32 %v1804_v32, %v1761_v7  ;;  %v1835_v24 = vadd.f32 %v1807_v4, %v1762_v3 }
 0x113   : > { %v1822_v14 = vsel %vm381_vm1, %v1820_v23, %v1821_v41  ;;  %v1836_v33 = vadd.f32 %v1810_v60, %v1763_v28  ;;  %v1837_v49 = vadd.f32 %v1813_v22, %v1764_v59  ;;  %v1838_v34 = vadd.f32 %v1816_v57, %v1765_v29 }
 0x114   : > { %v1825_v30 = vsel %vm381_vm1, %v1823_v52, %v1824_v21  ;;  %v1839_v54 = vadd.f32 %v1819_v13, %v1766_v55  ;;  %v1840_v40 = vadd.f32 %v1822_v14, %v1767_v27  ;;  %v1843_v61 = vmul.f32 %v4447_v42, %v4760_v5 }
 0x115   : > { %v1841_v11 = vadd.f32 %v1825_v30, %v1768_v47  ;;  %v1844_v1 = vmul.f32 %v4767_v62, %v4760_v5  ;;  %v1845_v7 = vmul.f32 %v4450_v35, %v4760_v5  ;;  %v1846_v3 = vmul.f32 %v4770_v46, %v4760_v5 }
 0x116   : > { %v1847_v28 = vmul.f32 %v4453_v16, %v4760_v5  ;;  %v1848_v59 = vmul.f32 %v4777_v48, %v4760_v5  ;;  %v1849_v29 = vmul.f32 %v4457_v58, %v4760_v5  ;;  %v1850_v55 = vmul.f32 %v4780_v50, %v4760_v5 }
 0x117   : > { %v1851_v27 = vmul.f32 %v4460_v36, %v4760_v5  ;;  %v1852_v47 = vmul.f32 %v4783_v25, %v4760_v5  ;;  %v1853_v15 = vmul.f32 %v4749_v63, %v4760_v5  ;;  %v1854_v38 = vmul.f32 %v4786_v10, %v4760_v5 }
 0x118   : > { %v1855_v12 = vmul.f32 %v4463_v8, %v4760_v5  ;;  %v1856_v0 = vmul.f32 %v4789_v44, %v4760_v5  ;;  %v1857_v18 = vmul.f32 %v4752_v2, %v4760_v5  ;;  %v1858_v39 = vmul.f32 %v4792_v9, %v4760_v5 }
 0x119   : > { %v1875_v26 = vrot.slane %v1843_v61, 3  ;;  %v1876_v19 = vrot.slane %v1844_v1, 3  ;;  %v1878_v45 = vrot.slane %v1845_v7, 3  ;;  %v1879_v17 = vrot.slane %v1846_v3, 3 }
 0x11a   : > { %v1881_v53 = vrot.slane %v1847_v28, 3  ;;  %v1882_v51 = vrot.slane %v1848_v59, 3  ;;  %v1884_v32 = vrot.slane %v1849_v29, 3  ;;  %v1885_v4 = vrot.slane %v1850_v55, 3 }
 0x11b   : > { %v1877_v56 = vsel %vm455_vm2, %v1875_v26, %v1876_v19  ;;  %v1880_v31 = vsel %vm455_vm2, %v1878_v45, %v1879_v17  ;;  %v1887_v60 = vrot.slane %v1851_v27, 3  ;;  %v1888_v22 = vrot.slane %v1852_v47, 3 }
 0x11c   : > { %v1883_v43 = vsel %vm455_vm2, %v1881_v53, %v1882_v51  ;;  %v1886_v6 = vsel %vm455_vm2, %v1884_v32, %v1885_v4  ;;  %v1890_v57 = vrot.slane %v1853_v15, 3  ;;  %v1891_v5 = vrot.slane %v1854_v38, 3 }
 0x11d   : > { %v1889_v23 = vsel %vm455_vm2, %v1887_v60, %v1888_v22  ;;  %v1893_v41 = vrot.slane %v1855_v12, 3  ;;  %v1894_v52 = vrot.slane %v1856_v0, 3  ;;  %v1896_v13 = vrot.slane %v1857_v18, 3 }
 0x11e   : > { %v1892_v21 = vsel %vm455_vm2, %v1890_v57, %v1891_v5  ;;  %v1897_v14 = vrot.slane %v1858_v39, 3  ;;  %v1907_v30 = vadd.f32 %v1877_v56, %v1834_v37  ;;  %v1908_v1 = vadd.f32 %v1880_v31, %v1835_v24 }
 0x11f   : > { %v1895_v61 = vsel %vm455_vm2, %v1893_v41, %v1894_v52  ;;  %v1909_v7 = vadd.f32 %v1883_v43, %v1836_v33  ;;  %v1910_v3 = vadd.f32 %v1886_v6, %v1837_v49  ;;  %v1911_v59 = vadd.f32 %v1889_v23, %v1838_v34 }
 0x120   : > { %v1898_v28 = vsel %vm455_vm2, %v1896_v13, %v1897_v14  ;;  %v1912_v29 = vadd.f32 %v1892_v21, %v1839_v54  ;;  %v1915_v55 = vperm.slane %v4742_v20, 4  ;;  %v1913_v27 = vadd.f32 %v1895_v61, %v1840_v40 }
 0x121   : > { %v1914_v47 = vadd.f32 %v1898_v28, %v1841_v11  ;;  %v4900_v15 = vperm.slane %v4742_v20, 5  ;;  %v4903_v38 = vperm.slane %v4742_v20, 6 }
 0x122   : > { %v1916_v37 = vmul.f32 %v4447_v42, %v1915_v55  ;;  %v1917_v24 = vmul.f32 %v4767_v62, %v1915_v55  ;;  %v1918_v33 = vmul.f32 %v4450_v35, %v1915_v55  ;;  %v1919_v49 = vmul.f32 %v4770_v46, %v1915_v55 }
 0x123   : > { %v1920_v34 = vmul.f32 %v4453_v16, %v1915_v55  ;;  %v1921_v54 = vmul.f32 %v4777_v48, %v1915_v55  ;;  %v1922_v40 = vmul.f32 %v4457_v58, %v1915_v55  ;;  %v1923_v11 = vmul.f32 %v4780_v50, %v1915_v55 }
 0x124   : > { %v1924_v12 = vmul.f32 %v4460_v36, %v1915_v55  ;;  %v1925_v20 = vmul.f32 %v4783_v25, %v1915_v55  ;;  %v1926_v42 = vmul.f32 %v4749_v63, %v1915_v55  ;;  %v1927_v0 = vmul.f32 %v4786_v10, %v1915_v55 }
 0x125   : > { %v1928_v35 = vmul.f32 %v4463_v8, %v1915_v55  ;;  %v1929_v18 = vmul.f32 %v4789_v44, %v1915_v55  ;;  %v1930_v16 = vmul.f32 %v4752_v2, %v1915_v55  ;;  %v1931_v39 = vmul.f32 %v4792_v9, %v1915_v55 }
 0x126   : > { %v1948_v26 = vrot.slane %v1916_v37, 4  ;;  %v1949_v58 = vrot.slane %v1917_v24, 4  ;;  %v1951_v19 = vrot.slane %v1918_v33, 4  ;;  %v1952_v45 = vrot.slane %v1919_v49, 4  ;;  %v3823_v49 = vld [vmem:[%s3914_s21 + $0x30] sm:$0xff] }
 0x127   : > { %v1954_v17 = vrot.slane %v1920_v34, 4  ;;  %v1955_v36 = vrot.slane %v1921_v54, 4  ;;  %v1957_v53 = vrot.slane %v1922_v40, 4  ;;  %v1958_v51 = vrot.slane %v1923_v11, 4 }
 0x128   : > { %v1950_v32 = vsel %vm529_vm3, %v1948_v26, %v1949_v58  ;;  %v1953_v4 = vsel %vm529_vm3, %v1951_v19, %v1952_v45  ;;  %v1960_v56 = vrot.slane %v1924_v12, 4  ;;  %v1961_v8 = vrot.slane %v1925_v20, 4  ;;  %v3827_v12 = vld [vmem:[%s3914_s21 + $0x70] sm:$0xff] }
 0x129   : > { %v1956_v31 = vsel %vm529_vm3, %v1954_v17, %v1955_v36  ;;  %v1959_v60 = vsel %vm529_vm3, %v1957_v53, %v1958_v51  ;;  %v1963_v22 = vrot.slane %v1926_v42, 4  ;;  %v1964_v43 = vrot.slane %v1927_v0, 4 }
 0x12a   : > { %v1962_v6 = vsel %vm529_vm3, %v1960_v56, %v1961_v8  ;;  %v1966_v57 = vrot.slane %v1928_v35, 4  ;;  %v1967_v5 = vrot.slane %v1929_v18, 4  ;;  %v1969_v23 = vrot.slane %v1930_v16, 4  ;;  %v3828_v18 = vld [vmem:[%s3914_s21 + $0x90] sm:$0xff] }
 0x12b   : > { %v1965_v41 = vsel %vm529_vm3, %v1963_v22, %v1964_v43  ;;  %v1970_v52 = vrot.slane %v1931_v39, 4  ;;  %v1980_v13 = vadd.f32 %v1950_v32, %v1907_v30  ;;  %v1981_v21 = vadd.f32 %v1953_v4, %v1908_v1  ;;  %v3824_v1 = vld [vmem:[%s3914_s21 + $0x40] sm:$0xff] }
 0x12c   : > { %v1968_v14 = vsel %vm529_vm3, %v1966_v57, %v1967_v5  ;;  %v1982_v61 = vadd.f32 %v1956_v31, %v1909_v7  ;;  %v1983_v28 = vadd.f32 %v1959_v60, %v1910_v3  ;;  %v1984_v55 = vadd.f32 %v1962_v6, %v1911_v59  ;;  %v3825_v3 = vld [vmem:[%s3914_s21 + $0x50] sm:$0xff] }
 0x12d   : > { %v1971_v37 = vsel %vm529_vm3, %v1969_v23, %v1970_v52  ;;  %v1985_v24 = vadd.f32 %v1965_v41, %v1912_v29  ;;  %v1986_v33 = vadd.f32 %v1968_v14, %v1913_v27  ;;  %v1989_v34 = vmul.f32 %v3823_v49, %v4900_v15  ;;  %v3826_v27 = vld [vmem:[%s3914_s21 + $0x60] sm:$0xff] }
 0x12e   : > { %v1987_v54 = vadd.f32 %v1971_v37, %v1914_v47  ;;  %v1990_v30 = vmul.f32 %v4767_v62, %v4900_v15  ;;  %v1991_v40 = vmul.f32 %v3824_v1, %v4900_v15  ;;  %v1992_v7 = vmul.f32 %v4770_v46, %v4900_v15 }
 0x12f   : > { %v1993_v59 = vmul.f32 %v3825_v3, %v4900_v15  ;;  %v1994_v29 = vmul.f32 %v4777_v48, %v4900_v15  ;;  %v1995_v11 = vmul.f32 %v3826_v27, %v4900_v15  ;;  %v1996_v47 = vmul.f32 %v4780_v50, %v4900_v15 }
 0x130   : > { %v1997_v20 = vmul.f32 %v3827_v12, %v4900_v15  ;;  %v1998_v42 = vmul.f32 %v4783_v25, %v4900_v15  ;;  %v1999_v0 = vmul.f32 %v4749_v63, %v4900_v15  ;;  %v2000_v35 = vmul.f32 %v4786_v10, %v4900_v15 }
 0x131   : > { %v2001_v16 = vmul.f32 %v3828_v18, %v4900_v15  ;;  %v2002_v39 = vmul.f32 %v4789_v44, %v4900_v15  ;;  %v2003_v26 = vmul.f32 %v4752_v2, %v4900_v15  ;;  %v2004_v58 = vmul.f32 %v4792_v9, %v4900_v15 }
 0x132   : > { %v2021_v19 = vrot.slane %v1989_v34, 5  ;;  %v2022_v45 = vrot.slane %v1990_v30, 5  ;;  %v2024_v17 = vrot.slane %v1991_v40, 5  ;;  %v2025_v36 = vrot.slane %v1992_v7, 5 }
 0x133   : > { %v2027_v53 = vrot.slane %v1993_v59, 5  ;;  %v2028_v51 = vrot.slane %v1994_v29, 5  ;;  %v2030_v32 = vrot.slane %v1995_v11, 5  ;;  %v2031_v4 = vrot.slane %v1996_v47, 5 }
 0x134   : > { %v2023_v56 = vsel %vm603_vm4, %v2021_v19, %v2022_v45  ;;  %v2026_v8 = vsel %vm603_vm4, %v2024_v17, %v2025_v36  ;;  %v2033_v31 = vrot.slane %v1997_v20, 5  ;;  %v2034_v60 = vrot.slane %v1998_v42, 5  ;;  %v5002_v17 = vld [vmem:[%s5848_s1 + $0x20] sm:$0x7f] }
 0x135   : > { %v2029_v22 = vsel %vm603_vm4, %v2027_v53, %v2028_v51  ;;  %v2032_v43 = vsel %vm603_vm4, %v2030_v32, %v2031_v4  ;;  %v2036_v6 = vrot.slane %v1999_v0, 5  ;;  %v2037_v15 = vrot.slane %v2000_v35, 5 }
 0x136   : > { %v2035_v57 = vsel %vm603_vm4, %v2033_v31, %v2034_v60  ;;  %v2039_v5 = vrot.slane %v2001_v16, 5  ;;  %v2040_v23 = vrot.slane %v2002_v39, 5  ;;  %v2042_v41 = vrot.slane %v2003_v26, 5  ;;  %v5007_v60 = vld [vmem:[%s3914_s21 + $0x40] sm:$0xff] }
 0x137   : > { %v2038_v52 = vsel %vm603_vm4, %v2036_v6, %v2037_v15  ;;  %v2043_v14 = vrot.slane %v2004_v58, 5  ;;  %v2053_v37 = vadd.f32 %v2023_v56, %v1980_v13  ;;  %v2054_v34 = vadd.f32 %v2026_v8, %v1981_v21 }
 0x138   : > { %v2041_v30 = vsel %vm603_vm4, %v2039_v5, %v2040_v23  ;;  %v2055_v40 = vadd.f32 %v2029_v22, %v1982_v61  ;;  %v2056_v7 = vadd.f32 %v2032_v43, %v1983_v28  ;;  %v2057_v59 = vadd.f32 %v2035_v57, %v1984_v55  ;;  %v5011_v57 = vld [vmem:[%s3914_s21 + $0x50] sm:$0xff]  ;;  %v5014_v5 = vld [vmem:[%s3914_s21 + $0x60] sm:$0xff] }
 0x139   : > { %v2044_v29 = vsel %vm603_vm4, %v2042_v41, %v2043_v14  ;;  %v2058_v11 = vadd.f32 %v2038_v52, %v1985_v24  ;;  %v2059_v47 = vadd.f32 %v2041_v30, %v1986_v33  ;;  %v2062_v20 = vmul.f32 %v3823_v49, %v4903_v38  ;;  %v5017_v23 = vld [vmem:[%s3914_s21 + $0x70] sm:$0xff] }
 0x13a   : > { %v2060_v42 = vadd.f32 %v2044_v29, %v1987_v54  ;;  %v2063_v0 = vmul.f32 %v4767_v62, %v4903_v38  ;;  %v2064_v35 = vmul.f32 %v3824_v1, %v4903_v38  ;;  %v2065_v13 = vmul.f32 %v4770_v46, %v4903_v38 }
 0x13b   : > { %v2066_v21 = vmul.f32 %v3825_v3, %v4903_v38  ;;  %v2067_v61 = vmul.f32 %v4777_v48, %v4903_v38  ;;  %v2068_v28 = vmul.f32 %v3826_v27, %v4903_v38  ;;  %v2069_v55 = vmul.f32 %v4780_v50, %v4903_v38 }
 0x13c   : > { %v2070_v24 = vmul.f32 %v3827_v12, %v4903_v38  ;;  %v2071_v62 = vmul.f32 %v4783_v25, %v4903_v38  ;;  %v2072_v33 = vmul.f32 %v4749_v63, %v4903_v38  ;;  %v2073_v46 = vmul.f32 %v4786_v10, %v4903_v38 }
 0x13d   : > { %v2074_v49 = vmul.f32 %v3828_v18, %v4903_v38  ;;  %v2075_v48 = vmul.f32 %v4789_v44, %v4903_v38  ;;  %v2076_v54 = vmul.f32 %v4752_v2, %v4903_v38  ;;  %v2077_v50 = vmul.f32 %v4792_v9, %v4903_v38 }
 0x13e   : > { %v2094_v1 = vrot.slane %v2062_v20, 6  ;;  %v2095_v3 = vrot.slane %v2063_v0, 6  ;;  %v2097_v25 = vrot.slane %v2064_v35, 6  ;;  %v2098_v27 = vrot.slane %v2065_v13, 6  ;;  %v5039_v35 = vld [vmem:[%s3914_s21 + $0x48] sm:$0x3f] }
 0x13f   : > { %v2100_v12 = vrot.slane %v2066_v21, 6  ;;  %v2101_v16 = vrot.slane %v2067_v61, 6  ;;  %v2103_v39 = vrot.slane %v2068_v28, 6  ;;  %v2104_v26 = vrot.slane %v2069_v55, 6  ;;  %v5049_v55 = vld [vmem:[%s3914_s21 + $0x68] sm:$0x3f] }
 0x140   : > { %v2096_v10 = vsel %vm677_vm5, %v2094_v1, %v2095_v3  ;;  %v2099_v18 = vsel %vm677_vm5, %v2097_v25, %v2098_v27  ;;  %v2106_v44 = vrot.slane %v2070_v24, 6  ;;  %v2107_v58 = vrot.slane %v2071_v62, 6  ;;  %v5052_v24 = vld [vmem:[%s3914_s21 + $0x78] sm:$0x3f]  ;;  %v5061_v27 = vld [vmem:[%s3914_s21 + $0xa8] sm:$0x3f] }
 0x141   : > { %v2102_v19 = vsel %vm677_vm5, %v2100_v12, %v2101_v16  ;;  %v2105_v45 = vsel %vm677_vm5, %v2103_v39, %v2104_v26  ;;  %v2109_v9 = vrot.slane %v2072_v33, 6  ;;  %v2110_v38 = vrot.slane %v2073_v46, 6  ;;  %v5064_v12 = vld [vmem:[%s3914_s21 + $0xb8] sm:$0x3f] }
 0x142   : > { %v2108_v36 = vsel %vm677_vm5, %v2106_v44, %v2107_v58  ;;  %v2112_v53 = vrot.slane %v2074_v49, 6  ;;  %v2113_v51 = vrot.slane %v2075_v48, 6  ;;  %v2115_v32 = vrot.slane %v2076_v54, 6  ;;  %v5055_v48 = vld [vmem:[%s3914_s21 + $0x88] sm:$0x3f] }
 0x143   : > { %v2111_v4 = vsel %vm677_vm5, %v2109_v9, %v2110_v38  ;;  %v2116_v56 = vrot.slane %v2077_v50, 6  ;;  %v2126_v8 = vadd.f32 %v2096_v10, %v2053_v37  ;;  %v2127_v31 = vadd.f32 %v2099_v18, %v2054_v34  ;;  %v5021_v37 = vld [vmem:[%s3914_s21 + $0x90] sm:$0xff]  ;;  %v5058_v54 = vld [vmem:[%s3914_s21 + $0x98] sm:$0x3f] }
 0x144   : > { %v2114_v22 = vsel %vm677_vm5, %v2112_v53, %v2113_v51  ;;  %v2128_v43 = vadd.f32 %v2102_v19, %v2055_v40  ;;  %v2129_v6 = vadd.f32 %v2105_v45, %v2056_v7  ;;  %v2130_v15 = vadd.f32 %v2108_v36, %v2057_v59  ;;  %v5024_v34 = vld [vmem:[%s3914_s21 + $0xb0] sm:$0xff] }
 0x145   : > { %v2117_v41 = vsel %vm677_vm5, %v2115_v32, %v2116_v56  ;;  %v2131_v52 = vadd.f32 %v2111_v4, %v2058_v11  ;;  %v2132_v14 = vadd.f32 %v2114_v22, %v2059_v47  ;;  %v2151_v30 = vperm.slane %v5002_v17, 0 }
 0x146   : > { %v2133_v40 = vadd.f32 %v2117_v41, %v2060_v42  ;;  %v2168_v7 = vperm.slane %v5002_v17, 1  ;;  %v5029_v59 = vperm.slane %v5002_v17, 2  ;;  %v5032_v29 = vperm.slane %v5002_v17, 3  ;;  %v5042_v42 = vld [vmem:[%s3914_s21 + $0x58] sm:$0x3f] }
 0x147   : > { %v2152_v11 = vmul.f32 %v5007_v60, %v2151_v30  ;;  %v2153_v47 = vmul.f32 %v5011_v57, %v2151_v30  ;;  %v2154_v20 = vmul.f32 %v5014_v5, %v2151_v30  ;;  %v2155_v0 = vmul.f32 %v5017_v23, %v2151_v30 }
 0x148   : > { %v2156_v13 = vmul.f32 %v4749_v63, %v2151_v30  ;;  %v2157_v21 = vmul.f32 %v5021_v37, %v2151_v30  ;;  %v2158_v61 = vmul.f32 %v4752_v2, %v2151_v30  ;;  %v2159_v28 = vmul.f32 %v5024_v34, %v2151_v30 }
 0x149   : > { %v2160_v62 = vadd.f32 %v2152_v11, %v2126_v8  ;;  %v2161_v33 = vadd.f32 %v2153_v47, %v2127_v31  ;;  %v2162_v46 = vadd.f32 %v2154_v20, %v2128_v43  ;;  %v2163_v49 = vadd.f32 %v2155_v0, %v2129_v6 }
 0x14a   : > { %v2164_v50 = vadd.f32 %v2156_v13, %v2130_v15  ;;  %v2165_v1 = vadd.f32 %v2157_v21, %v2131_v52  ;;  %v2166_v3 = vadd.f32 %v2158_v61, %v2132_v14  ;;  %v2167_v25 = vadd.f32 %v2159_v28, %v2133_v40 }
 0x14b   : > { %v2169_v16 = vmul.f32 %v5007_v60, %v2168_v7  ;;  %v2170_v39 = vmul.f32 %v5039_v35, %v2168_v7  ;;  %v2171_v26 = vmul.f32 %v5011_v57, %v2168_v7  ;;  %v2172_v10 = vmul.f32 %v5042_v42, %v2168_v7 }
 0x14c   : > { %v2173_v18 = vmul.f32 %v5014_v5, %v2168_v7  ;;  %v2174_v44 = vmul.f32 %v5049_v55, %v2168_v7  ;;  %v2175_v58 = vmul.f32 %v5017_v23, %v2168_v7  ;;  %v2176_v19 = vmul.f32 %v5052_v24, %v2168_v7 }
 0x14d   : > { %v2177_v45 = vmul.f32 %v4749_v63, %v2168_v7  ;;  %v2178_v9 = vmul.f32 %v5055_v48, %v2168_v7  ;;  %v2179_v38 = vmul.f32 %v5021_v37, %v2168_v7  ;;  %v2180_v36 = vmul.f32 %v5058_v54, %v2168_v7 }
 0x14e   : > { %v2181_v53 = vmul.f32 %v4752_v2, %v2168_v7  ;;  %v2182_v51 = vmul.f32 %v5061_v27, %v2168_v7  ;;  %v2183_v32 = vmul.f32 %v5024_v34, %v2168_v7  ;;  %v2184_v4 = vmul.f32 %v5064_v12, %v2168_v7 }
 0x14f   : > { %v2201_v56 = vrot.slane %v2169_v16, 1  ;;  %v2202_v8 = vrot.slane %v2170_v39, 1  ;;  %v2204_v31 = vrot.slane %v2171_v26, 1  ;;  %v2205_v22 = vrot.slane %v2172_v10, 1 }
 0x150   : > { %v2207_v43 = vrot.slane %v2173_v18, 1  ;;  %v2208_v6 = vrot.slane %v2174_v44, 1  ;;  %v2210_v15 = vrot.slane %v2175_v58, 1  ;;  %v2211_v41 = vrot.slane %v2176_v19, 1 }
 0x151   : > { %v2203_v52 = vsel %vm307_vm0, %v2201_v56, %v2202_v8  ;;  %v2206_v14 = vsel %vm307_vm0, %v2204_v31, %v2205_v22  ;;  %v2213_v30 = vrot.slane %v2177_v45, 1  ;;  %v2214_v40 = vrot.slane %v2178_v9, 1 }
 0x152   : > { %v2209_v11 = vsel %vm307_vm0, %v2207_v43, %v2208_v6  ;;  %v2212_v47 = vsel %vm307_vm0, %v2210_v15, %v2211_v41  ;;  %v2216_v20 = vrot.slane %v2179_v38, 1  ;;  %v2217_v7 = vrot.slane %v2180_v36, 1 }
 0x153   : > { %v2215_v0 = vsel %vm307_vm0, %v2213_v30, %v2214_v40  ;;  %v2219_v13 = vrot.slane %v2181_v53, 1  ;;  %v2220_v21 = vrot.slane %v2182_v51, 1  ;;  %v2222_v61 = vrot.slane %v2183_v32, 1 }
 0x154   : > { %v2218_v28 = vsel %vm307_vm0, %v2216_v20, %v2217_v7  ;;  %v2223_v16 = vrot.slane %v2184_v4, 1  ;;  %v2233_v39 = vadd.f32 %v2203_v52, %v2160_v62  ;;  %v2234_v26 = vadd.f32 %v2206_v14, %v2161_v33 }
 0x155   : > { %v2221_v10 = vsel %vm307_vm0, %v2219_v13, %v2220_v21  ;;  %v2235_v18 = vadd.f32 %v2209_v11, %v2162_v46  ;;  %v2236_v44 = vadd.f32 %v2212_v47, %v2163_v49  ;;  %v2237_v58 = vadd.f32 %v2215_v0, %v2164_v50 }
 0x156   : > { %v2224_v19 = vsel %vm307_vm0, %v2222_v61, %v2223_v16  ;;  %v2238_v45 = vadd.f32 %v2218_v28, %v2165_v1  ;;  %v2239_v9 = vadd.f32 %v2221_v10, %v2166_v3  ;;  %v2242_v38 = vmul.f32 %v5007_v60, %v5029_v59 }
 0x157   : > { %v2240_v36 = vadd.f32 %v2224_v19, %v2167_v25  ;;  %v2243_v53 = vmul.f32 %v5039_v35, %v5029_v59  ;;  %v2244_v62 = vmul.f32 %v5011_v57, %v5029_v59  ;;  %v2245_v33 = vmul.f32 %v5042_v42, %v5029_v59 }
 0x158   : > { %v2246_v46 = vmul.f32 %v5014_v5, %v5029_v59  ;;  %v2247_v49 = vmul.f32 %v5049_v55, %v5029_v59  ;;  %v2248_v50 = vmul.f32 %v5017_v23, %v5029_v59  ;;  %v2249_v1 = vmul.f32 %v5052_v24, %v5029_v59 }
 0x159   : > { %v2250_v3 = vmul.f32 %v4749_v63, %v5029_v59  ;;  %v2251_v25 = vmul.f32 %v5055_v48, %v5029_v59  ;;  %v2252_v51 = vmul.f32 %v5021_v37, %v5029_v59  ;;  %v2253_v32 = vmul.f32 %v5058_v54, %v5029_v59 }
 0x15a   : > { %v2254_v4 = vmul.f32 %v4752_v2, %v5029_v59  ;;  %v2255_v56 = vmul.f32 %v5061_v27, %v5029_v59  ;;  %v2256_v8 = vmul.f32 %v5024_v34, %v5029_v59  ;;  %v2257_v31 = vmul.f32 %v5064_v12, %v5029_v59 }
 0x15b   : > { %v2274_v22 = vrot.slane %v2242_v38, 2  ;;  %v2275_v43 = vrot.slane %v2243_v53, 2  ;;  %v2277_v6 = vrot.slane %v2244_v62, 2  ;;  %v2278_v15 = vrot.slane %v2245_v33, 2 }
 0x15c   : > { %v2280_v41 = vrot.slane %v2246_v46, 2  ;;  %v2281_v52 = vrot.slane %v2247_v49, 2  ;;  %v2283_v14 = vrot.slane %v2248_v50, 2  ;;  %v2284_v30 = vrot.slane %v2249_v1, 2 }
 0x15d   : > { %v2276_v40 = vsel %vm381_vm1, %v2274_v22, %v2275_v43  ;;  %v2279_v11 = vsel %vm381_vm1, %v2277_v6, %v2278_v15  ;;  %v2286_v47 = vrot.slane %v2250_v3, 2  ;;  %v2287_v20 = vrot.slane %v2251_v25, 2 }
 0x15e   : > { %v2282_v7 = vsel %vm381_vm1, %v2280_v41, %v2281_v52  ;;  %v2285_v0 = vsel %vm381_vm1, %v2283_v14, %v2284_v30  ;;  %v2289_v13 = vrot.slane %v2252_v51, 2  ;;  %v2290_v59 = vrot.slane %v2253_v32, 2 }
 0x15f   : > { %v2288_v21 = vsel %vm381_vm1, %v2286_v47, %v2287_v20  ;;  %v2292_v61 = vrot.slane %v2254_v4, 2  ;;  %v2293_v28 = vrot.slane %v2255_v56, 2  ;;  %v2295_v16 = vrot.slane %v2256_v8, 2 }
 0x160   : > { %v2291_v10 = vsel %vm381_vm1, %v2289_v13, %v2290_v59  ;;  %v2296_v19 = vrot.slane %v2257_v31, 2  ;;  %v2306_v38 = vadd.f32 %v2276_v40, %v2233_v39  ;;  %v2307_v53 = vadd.f32 %v2279_v11, %v2234_v26 }
 0x161   : > { %v2294_v62 = vsel %vm381_vm1, %v2292_v61, %v2293_v28  ;;  %v2308_v33 = vadd.f32 %v2282_v7, %v2235_v18  ;;  %v2309_v46 = vadd.f32 %v2285_v0, %v2236_v44  ;;  %v2310_v49 = vadd.f32 %v2288_v21, %v2237_v58 }
 0x162   : > { %v2297_v50 = vsel %vm381_vm1, %v2295_v16, %v2296_v19  ;;  %v2311_v1 = vadd.f32 %v2291_v10, %v2238_v45  ;;  %v2312_v3 = vadd.f32 %v2294_v62, %v2239_v9  ;;  %v2315_v25 = vmul.f32 %v5007_v60, %v5032_v29 }
 0x163   : > { %v2313_v51 = vadd.f32 %v2297_v50, %v2240_v36  ;;  %v2316_v32 = vmul.f32 %v5039_v35, %v5032_v29  ;;  %v2317_v39 = vmul.f32 %v5011_v57, %v5032_v29  ;;  %v2318_v26 = vmul.f32 %v5042_v42, %v5032_v29 }
 0x164   : > { %v2319_v18 = vmul.f32 %v5014_v5, %v5032_v29  ;;  %v2320_v44 = vmul.f32 %v5049_v55, %v5032_v29  ;;  %v2321_v58 = vmul.f32 %v5017_v23, %v5032_v29  ;;  %v2322_v45 = vmul.f32 %v5052_v24, %v5032_v29 }
 0x165   : > { %v2323_v9 = vmul.f32 %v4749_v63, %v5032_v29  ;;  %v2324_v36 = vmul.f32 %v5055_v48, %v5032_v29  ;;  %v2325_v4 = vmul.f32 %v5021_v37, %v5032_v29  ;;  %v2326_v56 = vmul.f32 %v5058_v54, %v5032_v29 }
 0x166   : > { %v2327_v8 = vmul.f32 %v4752_v2, %v5032_v29  ;;  %v2328_v31 = vmul.f32 %v5061_v27, %v5032_v29  ;;  %v2329_v22 = vmul.f32 %v5024_v34, %v5032_v29  ;;  %v2330_v63 = vmul.f32 %v5064_v12, %v5032_v29 }
 0x167   : > { %v2347_v43 = vrot.slane %v2315_v25, 3  ;;  %v2348_v6 = vrot.slane %v2316_v32, 3  ;;  %v2350_v15 = vrot.slane %v2317_v39, 3  ;;  %v2351_v41 = vrot.slane %v2318_v26, 3 }
 0x168   : > { %v2353_v52 = vrot.slane %v2319_v18, 3  ;;  %v2354_v14 = vrot.slane %v2320_v44, 3  ;;  %v2356_v30 = vrot.slane %v2321_v58, 3  ;;  %v2357_v40 = vrot.slane %v2322_v45, 3 }
 0x169   : > { %v2349_v11 = vsel %vm455_vm2, %v2347_v43, %v2348_v6  ;;  %v2352_v2 = vsel %vm455_vm2, %v2350_v15, %v2351_v41  ;;  %v2359_v47 = vrot.slane %v2323_v9, 3  ;;  %v2360_v20 = vrot.slane %v2324_v36, 3 }
 0x16a   : > { %v2355_v7 = vsel %vm455_vm2, %v2353_v52, %v2354_v14  ;;  %v2358_v0 = vsel %vm455_vm2, %v2356_v30, %v2357_v40  ;;  %v2362_v13 = vrot.slane %v2325_v4, 3  ;;  %v2363_v29 = vrot.slane %v2326_v56, 3  ;;  %v5186_v4 = vld [vmem:[%s3914_s21 + $0x80] sm:$0xff] }
 0x16b   : > { %v2361_v59 = vsel %vm455_vm2, %v2359_v47, %v2360_v20  ;;  %v2365_v21 = vrot.slane %v2327_v8, 3  ;;  %v2366_v61 = vrot.slane %v2328_v31, 3  ;;  %v2368_v28 = vrot.slane %v2329_v22, 3  ;;  %v5193_v22 = vld [vmem:[%s3914_s21 + $0xa0] sm:$0xff] }
 0x16c   : > { %v2364_v16 = vsel %vm455_vm2, %v2362_v13, %v2363_v29  ;;  %v2369_v10 = vrot.slane %v2330_v63, 3  ;;  %v2379_v19 = vadd.f32 %v2349_v11, %v2306_v38  ;;  %v2380_v50 = vadd.f32 %v2352_v2, %v2307_v53 }
 0x16d   : > { %v2367_v62 = vsel %vm455_vm2, %v2365_v21, %v2366_v61  ;;  %v2381_v25 = vadd.f32 %v2355_v7, %v2308_v33  ;;  %v2382_v32 = vadd.f32 %v2358_v0, %v2309_v46  ;;  %v2383_v26 = vadd.f32 %v2361_v59, %v2310_v49 }
 0x16e   : > { %v2370_v39 = vsel %vm455_vm2, %v2368_v28, %v2369_v10  ;;  %v2384_v18 = vadd.f32 %v2364_v16, %v2311_v1  ;;  %v2387_v44 = vperm.slane %v5002_v17, 4  ;;  %v2385_v58 = vadd.f32 %v2367_v62, %v2312_v3 }
 0x16f   : > { %v2386_v45 = vadd.f32 %v2370_v39, %v2313_v51  ;;  %v5172_v9 = vperm.slane %v5002_v17, 5  ;;  %v5175_v38 = vperm.slane %v5002_v17, 6 }
 0x170   : > { %v2388_v53 = vmul.f32 %v5007_v60, %v2387_v44  ;;  %v2389_v33 = vmul.f32 %v5039_v35, %v2387_v44  ;;  %v2390_v46 = vmul.f32 %v5011_v57, %v2387_v44  ;;  %v2391_v49 = vmul.f32 %v5042_v42, %v2387_v44 }
 0x171   : > { %v2392_v1 = vmul.f32 %v5014_v5, %v2387_v44  ;;  %v2393_v3 = vmul.f32 %v5049_v55, %v2387_v44  ;;  %v2394_v51 = vmul.f32 %v5017_v23, %v2387_v44  ;;  %v2395_v36 = vmul.f32 %v5052_v24, %v2387_v44 }
 0x172   : > { %v2396_v17 = vmul.f32 %v5186_v4, %v2387_v44  ;;  %v2397_v56 = vmul.f32 %v5055_v48, %v2387_v44  ;;  %v2398_v8 = vmul.f32 %v5021_v37, %v2387_v44  ;;  %v2399_v31 = vmul.f32 %v5058_v54, %v2387_v44 }
 0x173   : > { %v2400_v63 = vmul.f32 %v5193_v22, %v2387_v44  ;;  %v2401_v43 = vmul.f32 %v5061_v27, %v2387_v44  ;;  %v2402_v6 = vmul.f32 %v5024_v34, %v2387_v44  ;;  %v2403_v15 = vmul.f32 %v5064_v12, %v2387_v44 }
 0x174   : > { %v2420_v41 = vrot.slane %v2388_v53, 4  ;;  %v2421_v52 = vrot.slane %v2389_v33, 4  ;;  %v2423_v14 = vrot.slane %v2390_v46, 4  ;;  %v2424_v30 = vrot.slane %v2391_v49, 4 }
 0x175   : > { %v2426_v40 = vrot.slane %v2392_v1, 4  ;;  %v2427_v11 = vrot.slane %v2393_v3, 4  ;;  %v2429_v2 = vrot.slane %v2394_v51, 4  ;;  %v2430_v47 = vrot.slane %v2395_v36, 4 }
 0x176   : > { %v2422_v20 = vsel %vm529_vm3, %v2420_v41, %v2421_v52  ;;  %v2425_v7 = vsel %vm529_vm3, %v2423_v14, %v2424_v30  ;;  %v2432_v0 = vrot.slane %v2396_v17, 4  ;;  %v2433_v13 = vrot.slane %v2397_v56, 4 }
 0x177   : > { %v2428_v29 = vsel %vm529_vm3, %v2426_v40, %v2427_v11  ;;  %v2431_v59 = vsel %vm529_vm3, %v2429_v2, %v2430_v47  ;;  %v2435_v21 = vrot.slane %v2398_v8, 4  ;;  %v2436_v61 = vrot.slane %v2399_v31, 4 }
 0x178   : > { %v2434_v28 = vsel %vm529_vm3, %v2432_v0, %v2433_v13  ;;  %v2438_v16 = vrot.slane %v2400_v63, 4  ;;  %v2439_v10 = vrot.slane %v2401_v43, 4  ;;  %v2441_v62 = vrot.slane %v2402_v6, 4 }
 0x179   : > { %v2437_v39 = vsel %vm529_vm3, %v2435_v21, %v2436_v61  ;;  %v2442_v44 = vrot.slane %v2403_v15, 4  ;;  %v2452_v53 = vadd.f32 %v2422_v20, %v2379_v19  ;;  %v2453_v33 = vadd.f32 %v2425_v7, %v2380_v50 }
 0x17a   : > { %v2440_v46 = vsel %vm529_vm3, %v2438_v16, %v2439_v10  ;;  %v2454_v49 = vadd.f32 %v2428_v29, %v2381_v25  ;;  %v2455_v1 = vadd.f32 %v2431_v59, %v2382_v32  ;;  %v2456_v3 = vadd.f32 %v2434_v28, %v2383_v26 }
 0x17b   : > { %v2443_v51 = vsel %vm529_vm3, %v2441_v62, %v2442_v44  ;;  %v2457_v36 = vadd.f32 %v2437_v39, %v2384_v18  ;;  %v2458_v17 = vadd.f32 %v2440_v46, %v2385_v58  ;;  %v2461_v56 = vmul.f32 %v5007_v60, %v5172_v9 }
 0x17c   : > { %v2459_v8 = vadd.f32 %v2443_v51, %v2386_v45  ;;  %v2462_v31 = vmul.f32 %v5039_v35, %v5172_v9  ;;  %v2463_v19 = vmul.f32 %v5011_v57, %v5172_v9  ;;  %v2464_v50 = vmul.f32 %v5042_v42, %v5172_v9 }
 0x17d   : > { %v2465_v25 = vmul.f32 %v5014_v5, %v5172_v9  ;;  %v2466_v32 = vmul.f32 %v5049_v55, %v5172_v9  ;;  %v2467_v26 = vmul.f32 %v5017_v23, %v5172_v9  ;;  %v2468_v18 = vmul.f32 %v5052_v24, %v5172_v9 }
 0x17e   : > { %v2469_v58 = vmul.f32 %v5186_v4, %v5172_v9  ;;  %v2470_v45 = vmul.f32 %v5055_v48, %v5172_v9  ;;  %v2471_v63 = vmul.f32 %v5021_v37, %v5172_v9  ;;  %v2472_v43 = vmul.f32 %v5058_v54, %v5172_v9 }
 0x17f   : > { %v2473_v6 = vmul.f32 %v5193_v22, %v5172_v9  ;;  %v2474_v15 = vmul.f32 %v5061_v27, %v5172_v9  ;;  %v2475_v41 = vmul.f32 %v5024_v34, %v5172_v9  ;;  %v2476_v52 = vmul.f32 %v5064_v12, %v5172_v9 }
 0x180   : > { %v2493_v14 = vrot.slane %v2461_v56, 5  ;;  %v2494_v30 = vrot.slane %v2462_v31, 5  ;;  %v2496_v40 = vrot.slane %v2463_v19, 5  ;;  %v2497_v11 = vrot.slane %v2464_v50, 5 }
 0x181   : > { %v2499_v2 = vrot.slane %v2465_v25, 5  ;;  %v2500_v47 = vrot.slane %v2466_v32, 5  ;;  %v2502_v20 = vrot.slane %v2467_v26, 5  ;;  %v2503_v7 = vrot.slane %v2468_v18, 5 }
 0x182   : > { %v2495_v0 = vsel %vm603_vm4, %v2493_v14, %v2494_v30  ;;  %v2498_v13 = vsel %vm603_vm4, %v2496_v40, %v2497_v11  ;;  %v2505_v29 = vrot.slane %v2469_v58, 5  ;;  %v2506_v59 = vrot.slane %v2470_v45, 5 }
 0x183   : > { %v2501_v21 = vsel %vm603_vm4, %v2499_v2, %v2500_v47  ;;  %v2504_v61 = vsel %vm603_vm4, %v2502_v20, %v2503_v7  ;;  %v2508_v28 = vrot.slane %v2471_v63, 5  ;;  %v2509_v9 = vrot.slane %v2472_v43, 5  ;;  %v5286_v47 = vld [vmem:[%s5848_s1 + $0x28] sm:$0x7f] }
 0x184   : > { %v2507_v16 = vsel %vm603_vm4, %v2505_v29, %v2506_v59  ;;  %v2511_v10 = vrot.slane %v2473_v6, 5  ;;  %v2512_v62 = vrot.slane %v2474_v15, 5  ;;  %v2514_v39 = vrot.slane %v2475_v41, 5 }
 0x185   : > { %v2510_v44 = vsel %vm603_vm4, %v2508_v28, %v2509_v9  ;;  %v2515_v46 = vrot.slane %v2476_v52, 5  ;;  %v2525_v51 = vadd.f32 %v2495_v0, %v2452_v53  ;;  %v2526_v56 = vadd.f32 %v2498_v13, %v2453_v33 }
 0x186   : > { %v2513_v31 = vsel %vm603_vm4, %v2511_v10, %v2512_v62  ;;  %v2527_v19 = vadd.f32 %v2501_v21, %v2454_v49  ;;  %v2528_v50 = vadd.f32 %v2504_v61, %v2455_v1  ;;  %v2529_v25 = vadd.f32 %v2507_v16, %v2456_v3  ;;  %v5292_v62 = vld [vmem:[%s3914_s21 + $0x80] sm:$0xff] }
 0x187   : > { %v2516_v32 = vsel %vm603_vm4, %v2514_v39, %v2515_v46  ;;  %v2530_v26 = vadd.f32 %v2510_v44, %v2457_v36  ;;  %v2531_v18 = vadd.f32 %v2513_v31, %v2458_v17  ;;  %v2534_v58 = vmul.f32 %v5007_v60, %v5175_v38  ;;  %v5296_v31 = vld [vmem:[%s3914_s21 + $0xa0] sm:$0xff] }
 0x188   : > { %v2532_v45 = vadd.f32 %v2516_v32, %v2459_v8  ;;  %v2535_v63 = vmul.f32 %v5039_v35, %v5175_v38  ;;  %v2536_v53 = vmul.f32 %v5011_v57, %v5175_v38  ;;  %v2537_v33 = vmul.f32 %v5042_v42, %v5175_v38  ;;  %v5299_v32 = vld [vmem:[%s3914_s21 + $0xc0] sm:$0xff] }
 0x189   : > { %v2538_v49 = vmul.f32 %v5014_v5, %v5175_v38  ;;  %v2539_v1 = vmul.f32 %v5049_v55, %v5175_v38  ;;  %v2540_v3 = vmul.f32 %v5017_v23, %v5175_v38  ;;  %v2541_v60 = vmul.f32 %v5052_v24, %v5175_v38 }
 0x18a   : > { %v2542_v35 = vmul.f32 %v5186_v4, %v5175_v38  ;;  %v2543_v36 = vmul.f32 %v5055_v48, %v5175_v38  ;;  %v2544_v42 = vmul.f32 %v5021_v37, %v5175_v38  ;;  %v2545_v17 = vmul.f32 %v5058_v54, %v5175_v38 }
 0x18b   : > { %v2546_v55 = vmul.f32 %v5193_v22, %v5175_v38  ;;  %v2547_v8 = vmul.f32 %v5061_v27, %v5175_v38  ;;  %v2548_v24 = vmul.f32 %v5024_v34, %v5175_v38  ;;  %v2549_v4 = vmul.f32 %v5064_v12, %v5175_v38 }
 0x18c   : > { %v2566_v43 = vrot.slane %v2534_v58, 6  ;;  %v2567_v48 = vrot.slane %v2535_v63, 6  ;;  %v2569_v6 = vrot.slane %v2536_v53, 6  ;;  %v2570_v15 = vrot.slane %v2537_v33, 6  ;;  %v5314_v53 = vld [vmem:[%s3914_s21 + $0x58] sm:$0x3f] }
 0x18d   : > { %v2572_v41 = vrot.slane %v2538_v49, 6  ;;  %v2573_v52 = vrot.slane %v2539_v1, 6  ;;  %v2575_v14 = vrot.slane %v2540_v3, 6  ;;  %v2576_v54 = vrot.slane %v2541_v60, 6  ;;  %v5324_v60 = vld [vmem:[%s3914_s21 + $0x78] sm:$0x3f] }
 0x18e   : > { %v2568_v30 = vsel %vm677_vm5, %v2566_v43, %v2567_v48  ;;  %v2571_v22 = vsel %vm677_vm5, %v2569_v6, %v2570_v15  ;;  %v2578_v40 = vrot.slane %v2542_v35, 6  ;;  %v2579_v27 = vrot.slane %v2543_v36, 6  ;;  %v5327_v35 = vld [vmem:[%s3914_s21 + $0x88] sm:$0x3f]  ;;  %v5336_v15 = vld [vmem:[%s3914_s21 + $0xb8] sm:$0x3f] }
 0x18f   : > { %v2574_v11 = vsel %vm677_vm5, %v2572_v41, %v2573_v52  ;;  %v2577_v2 = vsel %vm677_vm5, %v2575_v14, %v2576_v54  ;;  %v2581_v12 = vrot.slane %v2544_v42, 6  ;;  %v2582_v38 = vrot.slane %v2545_v17, 6  ;;  %v5339_v41 = vld [vmem:[%s3914_s21 + $0xc8] sm:$0x3f] }
 0x190   : > { %v2580_v20 = vsel %vm677_vm5, %v2578_v40, %v2579_v27  ;;  %v2584_v7 = vrot.slane %v2546_v55, 6  ;;  %v2585_v0 = vrot.slane %v2547_v8, 6  ;;  %v2587_v13 = vrot.slane %v2548_v24, 6  ;;  %v5330_v8 = vld [vmem:[%s3914_s21 + $0x98] sm:$0x3f] }
 0x191   : > { %v2583_v29 = vsel %vm677_vm5, %v2581_v12, %v2582_v38  ;;  %v2588_v59 = vrot.slane %v2549_v4, 6  ;;  %v2598_v21 = vadd.f32 %v2568_v30, %v2525_v51  ;;  %v2599_v61 = vadd.f32 %v2571_v22, %v2526_v56  ;;  %v5333_v24 = vld [vmem:[%s3914_s21 + $0xa8] sm:$0x3f] }
 0x192   : > { %v2586_v28 = vsel %vm677_vm5, %v2584_v7, %v2585_v0  ;;  %v2600_v9 = vadd.f32 %v2574_v11, %v2527_v19  ;;  %v2601_v16 = vadd.f32 %v2577_v2, %v2528_v50  ;;  %v2602_v10 = vadd.f32 %v2580_v20, %v2529_v25 }
 0x193   : > { %v2589_v39 = vsel %vm677_vm5, %v2587_v13, %v2588_v59  ;;  %v2603_v44 = vadd.f32 %v2583_v29, %v2530_v26  ;;  %v2604_v46 = vadd.f32 %v2586_v28, %v2531_v18  ;;  %v2623_v51 = vperm.slane %v5286_v47, 0 }
 0x194   : > { %v2605_v56 = vadd.f32 %v2589_v39, %v2532_v45  ;;  %v2640_v19 = vperm.slane %v5286_v47, 1  ;;  %v5304_v50 = vperm.slane %v5286_v47, 2  ;;  %v5307_v25 = vperm.slane %v5286_v47, 3  ;;  %v5317_v45 = vld [vmem:[%s3914_s21 + $0x68] sm:$0x3f] }
 0x195   : > { %v2624_v26 = vmul.f32 %v5011_v57, %v2623_v51  ;;  %v2625_v18 = vmul.f32 %v5014_v5, %v2623_v51  ;;  %v2626_v58 = vmul.f32 %v5017_v23, %v2623_v51  ;;  %v2627_v63 = vmul.f32 %v5292_v62, %v2623_v51 }
 0x196   : > { %v2628_v33 = vmul.f32 %v5021_v37, %v2623_v51  ;;  %v2629_v49 = vmul.f32 %v5296_v31, %v2623_v51  ;;  %v2630_v1 = vmul.f32 %v5024_v34, %v2623_v51  ;;  %v2631_v3 = vmul.f32 %v5299_v32, %v2623_v51 }
 0x197   : > { %v2632_v36 = vadd.f32 %v2624_v26, %v2598_v21  ;;  %v2633_v42 = vadd.f32 %v2625_v18, %v2599_v61  ;;  %v2634_v17 = vadd.f32 %v2626_v58, %v2600_v9  ;;  %v2635_v55 = vadd.f32 %v2627_v63, %v2601_v16 }
 0x198   : > { %v2636_v4 = vadd.f32 %v2628_v33, %v2602_v10  ;;  %v2637_v43 = vadd.f32 %v2629_v49, %v2603_v44  ;;  %v2638_v48 = vadd.f32 %v2630_v1, %v2604_v46  ;;  %v2639_v6 = vadd.f32 %v2631_v3, %v2605_v56 }
 0x199   : > { %v2641_v52 = vmul.f32 %v5011_v57, %v2640_v19  ;;  %v2642_v14 = vmul.f32 %v5314_v53, %v2640_v19  ;;  %v2643_v54 = vmul.f32 %v5014_v5, %v2640_v19  ;;  %v2644_v30 = vmul.f32 %v5317_v45, %v2640_v19 }
 0x19a   : > { %v2645_v22 = vmul.f32 %v5017_v23, %v2640_v19  ;;  %v2646_v40 = vmul.f32 %v5324_v60, %v2640_v19  ;;  %v2647_v27 = vmul.f32 %v5292_v62, %v2640_v19  ;;  %v2648_v11 = vmul.f32 %v5327_v35, %v2640_v19 }
 0x19b   : > { %v2649_v2 = vmul.f32 %v5021_v37, %v2640_v19  ;;  %v2650_v12 = vmul.f32 %v5330_v8, %v2640_v19  ;;  %v2651_v38 = vmul.f32 %v5296_v31, %v2640_v19  ;;  %v2652_v20 = vmul.f32 %v5333_v24, %v2640_v19 }
 0x19c   : > { %v2653_v7 = vmul.f32 %v5024_v34, %v2640_v19  ;;  %v2654_v0 = vmul.f32 %v5336_v15, %v2640_v19  ;;  %v2655_v13 = vmul.f32 %v5299_v32, %v2640_v19  ;;  %v2656_v29 = vmul.f32 %v5339_v41, %v2640_v19 }
 0x19d   : > { %v2673_v59 = vrot.slane %v2641_v52, 1  ;;  %v2674_v21 = vrot.slane %v2642_v14, 1  ;;  %v2676_v61 = vrot.slane %v2643_v54, 1  ;;  %v2677_v28 = vrot.slane %v2644_v30, 1 }
 0x19e   : > { %v2679_v9 = vrot.slane %v2645_v22, 1  ;;  %v2680_v16 = vrot.slane %v2646_v40, 1  ;;  %v2682_v10 = vrot.slane %v2647_v27, 1  ;;  %v2683_v39 = vrot.slane %v2648_v11, 1 }
 0x19f   : > { %v2675_v44 = vsel %vm307_vm0, %v2673_v59, %v2674_v21  ;;  %v2678_v46 = vsel %vm307_vm0, %v2676_v61, %v2677_v28  ;;  %v2685_v51 = vrot.slane %v2649_v2, 1  ;;  %v2686_v56 = vrot.slane %v2650_v12, 1 }
 0x1a0   : > { %v2681_v26 = vsel %vm307_vm0, %v2679_v9, %v2680_v16  ;;  %v2684_v18 = vsel %vm307_vm0, %v2682_v10, %v2683_v39  ;;  %v2688_v58 = vrot.slane %v2651_v38, 1  ;;  %v2689_v19 = vrot.slane %v2652_v20, 1 }
 0x1a1   : > { %v2687_v63 = vsel %vm307_vm0, %v2685_v51, %v2686_v56  ;;  %v2691_v33 = vrot.slane %v2653_v7, 1  ;;  %v2692_v49 = vrot.slane %v2654_v0, 1  ;;  %v2694_v1 = vrot.slane %v2655_v13, 1 }
 0x1a2   : > { %v2690_v3 = vsel %vm307_vm0, %v2688_v58, %v2689_v19  ;;  %v2695_v52 = vrot.slane %v2656_v29, 1  ;;  %v2705_v14 = vadd.f32 %v2675_v44, %v2632_v36  ;;  %v2706_v54 = vadd.f32 %v2678_v46, %v2633_v42 }
 0x1a3   : > { %v2693_v30 = vsel %vm307_vm0, %v2691_v33, %v2692_v49  ;;  %v2707_v22 = vadd.f32 %v2681_v26, %v2634_v17  ;;  %v2708_v40 = vadd.f32 %v2684_v18, %v2635_v55  ;;  %v2709_v27 = vadd.f32 %v2687_v63, %v2636_v4 }
 0x1a4   : > { %v2696_v11 = vsel %vm307_vm0, %v2694_v1, %v2695_v52  ;;  %v2710_v2 = vadd.f32 %v2690_v3, %v2637_v43  ;;  %v2711_v12 = vadd.f32 %v2693_v30, %v2638_v48  ;;  %v2714_v38 = vmul.f32 %v5011_v57, %v5304_v50 }
 0x1a5   : > { %v2712_v20 = vadd.f32 %v2696_v11, %v2639_v6  ;;  %v2715_v7 = vmul.f32 %v5314_v53, %v5304_v50  ;;  %v2716_v36 = vmul.f32 %v5014_v5, %v5304_v50  ;;  %v2717_v42 = vmul.f32 %v5317_v45, %v5304_v50 }
 0x1a6   : > { %v2718_v17 = vmul.f32 %v5017_v23, %v5304_v50  ;;  %v2719_v55 = vmul.f32 %v5324_v60, %v5304_v50  ;;  %v2720_v4 = vmul.f32 %v5292_v62, %v5304_v50  ;;  %v2721_v43 = vmul.f32 %v5327_v35, %v5304_v50 }
 0x1a7   : > { %v2722_v48 = vmul.f32 %v5021_v37, %v5304_v50  ;;  %v2723_v6 = vmul.f32 %v5330_v8, %v5304_v50  ;;  %v2724_v0 = vmul.f32 %v5296_v31, %v5304_v50  ;;  %v2725_v13 = vmul.f32 %v5333_v24, %v5304_v50 }
 0x1a8   : > { %v2726_v29 = vmul.f32 %v5024_v34, %v5304_v50  ;;  %v2727_v59 = vmul.f32 %v5336_v15, %v5304_v50  ;;  %v2728_v21 = vmul.f32 %v5299_v32, %v5304_v50  ;;  %v2729_v61 = vmul.f32 %v5339_v41, %v5304_v50 }
 0x1a9   : > { %v2746_v28 = vrot.slane %v2714_v38, 2  ;;  %v2747_v9 = vrot.slane %v2715_v7, 2  ;;  %v2749_v16 = vrot.slane %v2716_v36, 2  ;;  %v2750_v10 = vrot.slane %v2717_v42, 2 }
 0x1aa   : > { %v2752_v39 = vrot.slane %v2718_v17, 2  ;;  %v2753_v44 = vrot.slane %v2719_v55, 2  ;;  %v2755_v46 = vrot.slane %v2720_v4, 2  ;;  %v2756_v51 = vrot.slane %v2721_v43, 2 }
 0x1ab   : > { %v2748_v56 = vsel %vm381_vm1, %v2746_v28, %v2747_v9  ;;  %v2751_v26 = vsel %vm381_vm1, %v2749_v16, %v2750_v10  ;;  %v2758_v18 = vrot.slane %v2722_v48, 2  ;;  %v2759_v58 = vrot.slane %v2723_v6, 2 }
 0x1ac   : > { %v2754_v19 = vsel %vm381_vm1, %v2752_v39, %v2753_v44  ;;  %v2757_v63 = vsel %vm381_vm1, %v2755_v46, %v2756_v51  ;;  %v2761_v33 = vrot.slane %v2724_v0, 2  ;;  %v2762_v50 = vrot.slane %v2725_v13, 2 }
 0x1ad   : > { %v2760_v49 = vsel %vm381_vm1, %v2758_v18, %v2759_v58  ;;  %v2764_v1 = vrot.slane %v2726_v29, 2  ;;  %v2765_v3 = vrot.slane %v2727_v59, 2  ;;  %v2767_v52 = vrot.slane %v2728_v21, 2 }
 0x1ae   : > { %v2763_v30 = vsel %vm381_vm1, %v2761_v33, %v2762_v50  ;;  %v2768_v11 = vrot.slane %v2729_v61, 2  ;;  %v2778_v38 = vadd.f32 %v2748_v56, %v2705_v14  ;;  %v2779_v7 = vadd.f32 %v2751_v26, %v2706_v54 }
 0x1af   : > { %v2766_v36 = vsel %vm381_vm1, %v2764_v1, %v2765_v3  ;;  %v2780_v42 = vadd.f32 %v2754_v19, %v2707_v22  ;;  %v2781_v17 = vadd.f32 %v2757_v63, %v2708_v40  ;;  %v2782_v55 = vadd.f32 %v2760_v49, %v2709_v27 }
 0x1b0   : > { %v2769_v4 = vsel %vm381_vm1, %v2767_v52, %v2768_v11  ;;  %v2783_v43 = vadd.f32 %v2763_v30, %v2710_v2  ;;  %v2784_v48 = vadd.f32 %v2766_v36, %v2711_v12  ;;  %v2787_v6 = vmul.f32 %v5011_v57, %v5307_v25 }
 0x1b1   : > { %v2785_v0 = vadd.f32 %v2769_v4, %v2712_v20  ;;  %v2788_v13 = vmul.f32 %v5314_v53, %v5307_v25  ;;  %v2789_v14 = vmul.f32 %v5014_v5, %v5307_v25  ;;  %v2790_v54 = vmul.f32 %v5317_v45, %v5307_v25 }
 0x1b2   : > { %v2791_v22 = vmul.f32 %v5017_v23, %v5307_v25  ;;  %v2792_v40 = vmul.f32 %v5324_v60, %v5307_v25  ;;  %v2793_v27 = vmul.f32 %v5292_v62, %v5307_v25  ;;  %v2794_v2 = vmul.f32 %v5327_v35, %v5307_v25 }
 0x1b3   : > { %v2795_v12 = vmul.f32 %v5021_v37, %v5307_v25  ;;  %v2796_v20 = vmul.f32 %v5330_v8, %v5307_v25  ;;  %v2797_v29 = vmul.f32 %v5296_v31, %v5307_v25  ;;  %v2798_v59 = vmul.f32 %v5333_v24, %v5307_v25 }
 0x1b4   : > { %v2799_v21 = vmul.f32 %v5024_v34, %v5307_v25  ;;  %v2800_v61 = vmul.f32 %v5336_v15, %v5307_v25  ;;  %v2801_v28 = vmul.f32 %v5299_v32, %v5307_v25  ;;  %v2802_v9 = vmul.f32 %v5339_v41, %v5307_v25 }
 0x1b5   : > { %v2819_v16 = vrot.slane %v2787_v6, 3  ;;  %v2820_v10 = vrot.slane %v2788_v13, 3  ;;  %v2822_v39 = vrot.slane %v2789_v14, 3  ;;  %v2823_v44 = vrot.slane %v2790_v54, 3 }
 0x1b6   : > { %v2825_v46 = vrot.slane %v2791_v22, 3  ;;  %v2826_v51 = vrot.slane %v2792_v40, 3  ;;  %v2828_v56 = vrot.slane %v2793_v27, 3  ;;  %v2829_v26 = vrot.slane %v2794_v2, 3 }
 0x1b7   : > { %v2821_v18 = vsel %vm455_vm2, %v2819_v16, %v2820_v10  ;;  %v2824_v34 = vsel %vm455_vm2, %v2822_v39, %v2823_v44  ;;  %v2831_v58 = vrot.slane %v2795_v12, 3  ;;  %v2832_v19 = vrot.slane %v2796_v20, 3 }
 0x1b8   : > { %v2827_v63 = vsel %vm455_vm2, %v2825_v46, %v2826_v51  ;;  %v2830_v33 = vsel %vm455_vm2, %v2828_v56, %v2829_v26  ;;  %v2834_v50 = vrot.slane %v2797_v29, 3  ;;  %v2835_v25 = vrot.slane %v2798_v59, 3 }
 0x1b9   : > { %v2833_v49 = vsel %vm455_vm2, %v2831_v58, %v2832_v19  ;;  %v2837_v1 = vrot.slane %v2799_v21, 3  ;;  %v2838_v3 = vrot.slane %v2800_v61, 3  ;;  %v2840_v52 = vrot.slane %v2801_v28, 3  ;;  %v5465_v61 = vld [vmem:[%s3914_s21 + $0xb0] sm:$0xff] }
 0x1ba   : > { %v2836_v30 = vsel %vm455_vm2, %v2834_v50, %v2835_v25  ;;  %v2841_v11 = vrot.slane %v2802_v9, 3  ;;  %v2851_v36 = vadd.f32 %v2821_v18, %v2778_v38  ;;  %v2852_v6 = vadd.f32 %v2824_v34, %v2779_v7 }
 0x1bb   : > { %v2839_v4 = vsel %vm455_vm2, %v2837_v1, %v2838_v3  ;;  %v2853_v13 = vadd.f32 %v2827_v63, %v2780_v42  ;;  %v2854_v14 = vadd.f32 %v2830_v33, %v2781_v17  ;;  %v2855_v22 = vadd.f32 %v2833_v49, %v2782_v55 }
 0x1bc   : > { %v2842_v54 = vsel %vm455_vm2, %v2840_v52, %v2841_v11  ;;  %v2856_v40 = vadd.f32 %v2836_v30, %v2783_v43  ;;  %v2859_v27 = vperm.slane %v5286_v47, 4  ;;  %v2857_v2 = vadd.f32 %v2839_v4, %v2784_v48 }
 0x1bd   : > { %v2858_v12 = vadd.f32 %v2842_v54, %v2785_v0  ;;  %v5447_v20 = vperm.slane %v5286_v47, 5  ;;  %v5450_v29 = vperm.slane %v5286_v47, 6 }
 0x1be   : > { %v2860_v38 = vmul.f32 %v5011_v57, %v2859_v27  ;;  %v2861_v7 = vmul.f32 %v5314_v53, %v2859_v27  ;;  %v2862_v42 = vmul.f32 %v5014_v5, %v2859_v27  ;;  %v2863_v17 = vmul.f32 %v5317_v45, %v2859_v27 }
 0x1bf   : > { %v2864_v55 = vmul.f32 %v5017_v23, %v2859_v27  ;;  %v2865_v43 = vmul.f32 %v5324_v60, %v2859_v27  ;;  %v2866_v48 = vmul.f32 %v5292_v62, %v2859_v27  ;;  %v2867_v0 = vmul.f32 %v5327_v35, %v2859_v27 }
 0x1c0   : > { %v2868_v59 = vmul.f32 %v5021_v37, %v2859_v27  ;;  %v2869_v47 = vmul.f32 %v5330_v8, %v2859_v27  ;;  %v2870_v57 = vmul.f32 %v5296_v31, %v2859_v27  ;;  %v2871_v21 = vmul.f32 %v5333_v24, %v2859_v27 }
 0x1c1   : > { %v2872_v5 = vmul.f32 %v5465_v61, %v2859_v27  ;;  %v2873_v23 = vmul.f32 %v5336_v15, %v2859_v27  ;;  %v2874_v28 = vmul.f32 %v5299_v32, %v2859_v27  ;;  %v2875_v9 = vmul.f32 %v5339_v41, %v2859_v27 }
 0x1c2   : > { %v2892_v16 = vrot.slane %v2860_v38, 4  ;;  %v2893_v10 = vrot.slane %v2861_v7, 4  ;;  %v2895_v39 = vrot.slane %v2862_v42, 4  ;;  %v2896_v37 = vrot.slane %v2863_v17, 4 }
 0x1c3   : > { %v2898_v44 = vrot.slane %v2864_v55, 4  ;;  %v2899_v46 = vrot.slane %v2865_v43, 4  ;;  %v2901_v51 = vrot.slane %v2866_v48, 4  ;;  %v2902_v56 = vrot.slane %v2867_v0, 4  ;;  %v3832_v43 = vld [vmem:[%s3914_s21 + $0x50] sm:$0xff] }
 0x1c4   : > { %v2894_v26 = vsel %vm529_vm3, %v2892_v16, %v2893_v10  ;;  %v2897_v18 = vsel %vm529_vm3, %v2895_v39, %v2896_v37  ;;  %v2904_v34 = vrot.slane %v2868_v59, 4  ;;  %v2905_v58 = vrot.slane %v2869_v47, 4  ;;  %v3835_v47 = vld [vmem:[%s3914_s21 + $0x90] sm:$0xff] }
 0x1c5   : > { %v2900_v19 = vsel %vm529_vm3, %v2898_v44, %v2899_v46  ;;  %v2903_v63 = vsel %vm529_vm3, %v2901_v51, %v2902_v56  ;;  %v2907_v33 = vrot.slane %v2870_v57, 4  ;;  %v2908_v50 = vrot.slane %v2871_v21, 4 }
 0x1c6   : > { %v2906_v25 = vsel %vm529_vm3, %v2904_v34, %v2905_v58  ;;  %v2910_v49 = vrot.slane %v2872_v5, 4  ;;  %v2911_v1 = vrot.slane %v2873_v23, 4  ;;  %v2913_v3 = vrot.slane %v2874_v28, 4 }
 0x1c7   : > { %v2909_v52 = vsel %vm529_vm3, %v2907_v33, %v2908_v50  ;;  %v2914_v30 = vrot.slane %v2875_v9, 4  ;;  %v2924_v11 = vadd.f32 %v2894_v26, %v2851_v36  ;;  %v2925_v4 = vadd.f32 %v2897_v18, %v2852_v6  ;;  %v3833_v36 = vld [vmem:[%s3914_s21 + $0x60] sm:$0xff] }
 0x1c8   : > { %v2912_v54 = vsel %vm529_vm3, %v2910_v49, %v2911_v1  ;;  %v2926_v27 = vadd.f32 %v2900_v19, %v2853_v13  ;;  %v2927_v38 = vadd.f32 %v2903_v63, %v2854_v14  ;;  %v2928_v7 = vadd.f32 %v2906_v25, %v2855_v22  ;;  %v3834_v14 = vld [vmem:[%s3914_s21 + $0x70] sm:$0xff] }
 0x1c9   : > { %v2915_v42 = vsel %vm529_vm3, %v2913_v3, %v2914_v30  ;;  %v2929_v17 = vadd.f32 %v2909_v52, %v2856_v40  ;;  %v2930_v55 = vadd.f32 %v2912_v54, %v2857_v2  ;;  %v2933_v48 = vmul.f32 %v3832_v43, %v5447_v20 }
 0x1ca   : > { %v2931_v0 = vadd.f32 %v2915_v42, %v2858_v12  ;;  %v2934_v59 = vmul.f32 %v5314_v53, %v5447_v20  ;;  %v2935_v6 = vmul.f32 %v3833_v36, %v5447_v20  ;;  %v2936_v13 = vmul.f32 %v5317_v45, %v5447_v20 }
 0x1cb   : > { %v2937_v22 = vmul.f32 %v3834_v14, %v5447_v20  ;;  %v2938_v40 = vmul.f32 %v5324_v60, %v5447_v20  ;;  %v2939_v2 = vmul.f32 %v5292_v62, %v5447_v20  ;;  %v2940_v12 = vmul.f32 %v5327_v35, %v5447_v20 }
 0x1cc   : > { %v2941_v57 = vmul.f32 %v3835_v47, %v5447_v20  ;;  %v2942_v21 = vmul.f32 %v5330_v8, %v5447_v20  ;;  %v2943_v5 = vmul.f32 %v5296_v31, %v5447_v20  ;;  %v2944_v23 = vmul.f32 %v5333_v24, %v5447_v20 }
 0x1cd   : > { %v2945_v28 = vmul.f32 %v5465_v61, %v5447_v20  ;;  %v2946_v9 = vmul.f32 %v5336_v15, %v5447_v20  ;;  %v2947_v16 = vmul.f32 %v5299_v32, %v5447_v20  ;;  %v2948_v10 = vmul.f32 %v5339_v41, %v5447_v20 }
 0x1ce   : > { %v2965_v39 = vrot.slane %v2933_v48, 5  ;;  %v2966_v37 = vrot.slane %v2934_v59, 5  ;;  %v2968_v44 = vrot.slane %v2935_v6, 5  ;;  %v2969_v46 = vrot.slane %v2936_v13, 5 }
 0x1cf   : > { %v2971_v51 = vrot.slane %v2937_v22, 5  ;;  %v2972_v56 = vrot.slane %v2938_v40, 5  ;;  %v2974_v26 = vrot.slane %v2939_v2, 5  ;;  %v2975_v18 = vrot.slane %v2940_v12, 5 }
 0x1d0   : > { %v2967_v34 = vsel %vm603_vm4, %v2965_v39, %v2966_v37  ;;  %v2970_v58 = vsel %vm603_vm4, %v2968_v44, %v2969_v46  ;;  %v2977_v19 = vrot.slane %v2941_v57, 5  ;;  %v2978_v63 = vrot.slane %v2942_v21, 5  ;;  %v5554_v46 = vld [vmem:[%s5848_s1 + $0x30] sm:$0x7f] }
 0x1d1   : > { %v2973_v33 = vsel %vm603_vm4, %v2971_v51, %v2972_v56  ;;  %v2976_v50 = vsel %vm603_vm4, %v2974_v26, %v2975_v18  ;;  %v2980_v25 = vrot.slane %v2943_v5, 5  ;;  %v2981_v20 = vrot.slane %v2944_v23, 5 }
 0x1d2   : > { %v2979_v49 = vsel %vm603_vm4, %v2977_v19, %v2978_v63  ;;  %v2983_v1 = vrot.slane %v2945_v28, 5  ;;  %v2984_v3 = vrot.slane %v2946_v9, 5  ;;  %v2986_v52 = vrot.slane %v2947_v16, 5 }
 0x1d3   : > { %v2982_v30 = vsel %vm603_vm4, %v2980_v25, %v2981_v20  ;;  %v2987_v54 = vrot.slane %v2948_v10, 5  ;;  %v2997_v42 = vadd.f32 %v2967_v34, %v2924_v11  ;;  %v2998_v48 = vadd.f32 %v2970_v58, %v2925_v4 }
 0x1d4   : > { %v2985_v59 = vsel %vm603_vm4, %v2983_v1, %v2984_v3  ;;  %v2999_v6 = vadd.f32 %v2973_v33, %v2926_v27  ;;  %v3000_v13 = vadd.f32 %v2976_v50, %v2927_v38  ;;  %v3001_v22 = vadd.f32 %v2979_v49, %v2928_v7  ;;  %v5560_v49 = vld [vmem:[%s3914_s21 + $0x60] sm:$0xff]  ;;  %v5563_v1 = vld [vmem:[%s3914_s21 + $0x70] sm:$0xff] }
 0x1d5   : > { %v2988_v40 = vsel %vm603_vm4, %v2986_v52, %v2987_v54  ;;  %v3002_v2 = vadd.f32 %v2982_v30, %v2929_v17  ;;  %v3003_v12 = vadd.f32 %v2985_v59, %v2930_v55  ;;  %v3006_v57 = vmul.f32 %v3832_v43, %v5450_v29  ;;  %v5566_v3 = vld [vmem:[%s3914_s21 + $0x90] sm:$0xff] }
 0x1d6   : > { %v3004_v21 = vadd.f32 %v2988_v40, %v2931_v0  ;;  %v3007_v5 = vmul.f32 %v5314_v53, %v5450_v29  ;;  %v3008_v23 = vmul.f32 %v3833_v36, %v5450_v29  ;;  %v3009_v11 = vmul.f32 %v5317_v45, %v5450_v29  ;;  %v5570_v59 = vld [vmem:[%s3914_s21 + $0xb0] sm:$0xff] }
 0x1d7   : > { %v3010_v4 = vmul.f32 %v3834_v14, %v5450_v29  ;;  %v3011_v27 = vmul.f32 %v5324_v60, %v5450_v29  ;;  %v3012_v38 = vmul.f32 %v5292_v62, %v5450_v29  ;;  %v3013_v7 = vmul.f32 %v5327_v35, %v5450_v29 }
 0x1d8   : > { %v3014_v17 = vmul.f32 %v3835_v47, %v5450_v29  ;;  %v3015_v53 = vmul.f32 %v5330_v8, %v5450_v29  ;;  %v3016_v55 = vmul.f32 %v5296_v31, %v5450_v29  ;;  %v3017_v45 = vmul.f32 %v5333_v24, %v5450_v29 }
 0x1d9   : > { %v3018_v60 = vmul.f32 %v5465_v61, %v5450_v29  ;;  %v3019_v43 = vmul.f32 %v5336_v15, %v5450_v29  ;;  %v3020_v35 = vmul.f32 %v5299_v32, %v5450_v29  ;;  %v3021_v0 = vmul.f32 %v5339_v41, %v5450_v29 }
 0x1da   : > { %v3038_v36 = vrot.slane %v3006_v57, 6  ;;  %v3039_v8 = vrot.slane %v3007_v5, 6  ;;  %v3041_v14 = vrot.slane %v3008_v23, 6  ;;  %v3042_v47 = vrot.slane %v3009_v11, 6  ;;  %v5588_v23 = vld [vmem:[%s3914_s21 + $0x68] sm:$0x3f] }
 0x1db   : > { %v3044_v28 = vrot.slane %v3010_v4, 6  ;;  %v3045_v9 = vrot.slane %v3011_v27, 6  ;;  %v3047_v16 = vrot.slane %v3012_v38, 6  ;;  %v3048_v24 = vrot.slane %v3013_v7, 6  ;;  %v5598_v7 = vld [vmem:[%s3914_s21 + $0x88] sm:$0x3f] }
 0x1dc   : > { %v3040_v10 = vsel %vm677_vm5, %v3038_v36, %v3039_v8  ;;  %v3043_v61 = vsel %vm677_vm5, %v3041_v14, %v3042_v47  ;;  %v3050_v39 = vrot.slane %v3014_v17, 6  ;;  %v3051_v15 = vrot.slane %v3015_v53, 6  ;;  %v5601_v17 = vld [vmem:[%s3914_s21 + $0x98] sm:$0x3f]  ;;  %v5610_v47 = vld [vmem:[%s3914_s21 + $0xc8] sm:$0x3f] }
 0x1dd   : > { %v3046_v37 = vsel %vm677_vm5, %v3044_v28, %v3045_v9  ;;  %v3049_v44 = vsel %vm677_vm5, %v3047_v16, %v3048_v24  ;;  %v3053_v41 = vrot.slane %v3016_v55, 6  ;;  %v3054_v29 = vrot.slane %v3017_v45, 6  ;;  %v5613_v28 = vld [vmem:[%s3914_s21 + $0xd8] sm:$0x3f] }
 0x1de   : > { %v3052_v51 = vsel %vm677_vm5, %v3050_v39, %v3051_v15  ;;  %v3056_v56 = vrot.slane %v3018_v60, 6  ;;  %v3057_v26 = vrot.slane %v3019_v43, 6  ;;  %v3059_v18 = vrot.slane %v3020_v35, 6  ;;  %v5604_v43 = vld [vmem:[%s3914_s21 + $0xa8] sm:$0x3f] }
 0x1df   : > { %v3055_v34 = vsel %vm677_vm5, %v3053_v41, %v3054_v29  ;;  %v3060_v58 = vrot.slane %v3021_v0, 6  ;;  %v3070_v19 = vadd.f32 %v3040_v10, %v2997_v42  ;;  %v3071_v63 = vadd.f32 %v3043_v61, %v2998_v48  ;;  %v5573_v42 = vld [vmem:[%s3914_s21 + $0xd0] sm:$0xff]  ;;  %v5607_v35 = vld [vmem:[%s3914_s21 + $0xb8] sm:$0x3f] }
 0x1e0   : > { %v3058_v33 = vsel %vm677_vm5, %v3056_v56, %v3057_v26  ;;  %v3072_v50 = vadd.f32 %v3046_v37, %v2999_v6  ;;  %v3073_v25 = vadd.f32 %v3049_v44, %v3000_v13  ;;  %v3074_v20 = vadd.f32 %v3052_v51, %v3001_v22 }
 0x1e1   : > { %v3061_v52 = vsel %vm677_vm5, %v3059_v18, %v3060_v58  ;;  %v3075_v30 = vadd.f32 %v3055_v34, %v3002_v2  ;;  %v3076_v54 = vadd.f32 %v3058_v33, %v3003_v12  ;;  %v3095_v48 = vperm.slane %v5554_v46, 0 }
 0x1e2   : > { %v3077_v6 = vadd.f32 %v3061_v52, %v3004_v21  ;;  %v3112_v13 = vperm.slane %v5554_v46, 1  ;;  %v5578_v22 = vperm.slane %v5554_v46, 2  ;;  %v5581_v40 = vperm.slane %v5554_v46, 3  ;;  %v5591_v21 = vld [vmem:[%s3914_s21 + $0x78] sm:$0x3f] }
 0x1e3   : > { %v3096_v2 = vmul.f32 %v5560_v49, %v3095_v48  ;;  %v3097_v12 = vmul.f32 %v5563_v1, %v3095_v48  ;;  %v3098_v57 = vmul.f32 %v5292_v62, %v3095_v48  ;;  %v3099_v5 = vmul.f32 %v5566_v3, %v3095_v48 }
 0x1e4   : > { %v3100_v11 = vmul.f32 %v5296_v31, %v3095_v48  ;;  %v3101_v4 = vmul.f32 %v5570_v59, %v3095_v48  ;;  %v3102_v27 = vmul.f32 %v5299_v32, %v3095_v48  ;;  %v3103_v38 = vmul.f32 %v5573_v42, %v3095_v48 }
 0x1e5   : > { %v3104_v53 = vadd.f32 %v3096_v2, %v3070_v19  ;;  %v3105_v55 = vadd.f32 %v3097_v12, %v3071_v63  ;;  %v3106_v45 = vadd.f32 %v3098_v57, %v3072_v50  ;;  %v3107_v60 = vadd.f32 %v3099_v5, %v3073_v25 }
 0x1e6   : > { %v3108_v0 = vadd.f32 %v3100_v11, %v3074_v20  ;;  %v3109_v36 = vadd.f32 %v3101_v4, %v3075_v30  ;;  %v3110_v8 = vadd.f32 %v3102_v27, %v3076_v54  ;;  %v3111_v14 = vadd.f32 %v3103_v38, %v3077_v6 }
 0x1e7   : > { %v3113_v9 = vmul.f32 %v5560_v49, %v3112_v13  ;;  %v3114_v16 = vmul.f32 %v5588_v23, %v3112_v13  ;;  %v3115_v24 = vmul.f32 %v5563_v1, %v3112_v13  ;;  %v3116_v10 = vmul.f32 %v5591_v21, %v3112_v13 }
 0x1e8   : > { %v3117_v61 = vmul.f32 %v5292_v62, %v3112_v13  ;;  %v3118_v39 = vmul.f32 %v5598_v7, %v3112_v13  ;;  %v3119_v15 = vmul.f32 %v5566_v3, %v3112_v13  ;;  %v3120_v37 = vmul.f32 %v5601_v17, %v3112_v13 }
 0x1e9   : > { %v3121_v44 = vmul.f32 %v5296_v31, %v3112_v13  ;;  %v3122_v41 = vmul.f32 %v5604_v43, %v3112_v13  ;;  %v3123_v29 = vmul.f32 %v5570_v59, %v3112_v13  ;;  %v3124_v51 = vmul.f32 %v5607_v35, %v3112_v13 }
 0x1ea   : > { %v3125_v56 = vmul.f32 %v5299_v32, %v3112_v13  ;;  %v3126_v26 = vmul.f32 %v5610_v47, %v3112_v13  ;;  %v3127_v18 = vmul.f32 %v5573_v42, %v3112_v13  ;;  %v3128_v34 = vmul.f32 %v5613_v28, %v3112_v13 }
 0x1eb   : > { %v3145_v58 = vrot.slane %v3113_v9, 1  ;;  %v3146_v19 = vrot.slane %v3114_v16, 1  ;;  %v3148_v63 = vrot.slane %v3115_v24, 1  ;;  %v3149_v33 = vrot.slane %v3116_v10, 1 }
 0x1ec   : > { %v3151_v50 = vrot.slane %v3117_v61, 1  ;;  %v3152_v25 = vrot.slane %v3118_v39, 1  ;;  %v3154_v20 = vrot.slane %v3119_v15, 1  ;;  %v3155_v52 = vrot.slane %v3120_v37, 1 }
 0x1ed   : > { %v3147_v30 = vsel %vm307_vm0, %v3145_v58, %v3146_v19  ;;  %v3150_v54 = vsel %vm307_vm0, %v3148_v63, %v3149_v33  ;;  %v3157_v48 = vrot.slane %v3121_v44, 1  ;;  %v3158_v6 = vrot.slane %v3122_v41, 1 }
 0x1ee   : > { %v3153_v2 = vsel %vm307_vm0, %v3151_v50, %v3152_v25  ;;  %v3156_v12 = vsel %vm307_vm0, %v3154_v20, %v3155_v52  ;;  %v3160_v57 = vrot.slane %v3123_v29, 1  ;;  %v3161_v13 = vrot.slane %v3124_v51, 1 }
 0x1ef   : > { %v3159_v5 = vsel %vm307_vm0, %v3157_v48, %v3158_v6  ;;  %v3163_v11 = vrot.slane %v3125_v56, 1  ;;  %v3164_v4 = vrot.slane %v3126_v26, 1  ;;  %v3166_v27 = vrot.slane %v3127_v18, 1 }
 0x1f0   : > { %v3162_v38 = vsel %vm307_vm0, %v3160_v57, %v3161_v13  ;;  %v3167_v9 = vrot.slane %v3128_v34, 1  ;;  %v3177_v16 = vadd.f32 %v3147_v30, %v3104_v53  ;;  %v3178_v24 = vadd.f32 %v3150_v54, %v3105_v55 }
 0x1f1   : > { %v3165_v10 = vsel %vm307_vm0, %v3163_v11, %v3164_v4  ;;  %v3179_v61 = vadd.f32 %v3153_v2, %v3106_v45  ;;  %v3180_v39 = vadd.f32 %v3156_v12, %v3107_v60  ;;  %v3181_v15 = vadd.f32 %v3159_v5, %v3108_v0 }
 0x1f2   : > { %v3168_v37 = vsel %vm307_vm0, %v3166_v27, %v3167_v9  ;;  %v3182_v44 = vadd.f32 %v3162_v38, %v3109_v36  ;;  %v3183_v41 = vadd.f32 %v3165_v10, %v3110_v8  ;;  %v3186_v29 = vmul.f32 %v5560_v49, %v5578_v22 }
 0x1f3   : > { %v3184_v51 = vadd.f32 %v3168_v37, %v3111_v14  ;;  %v3187_v56 = vmul.f32 %v5588_v23, %v5578_v22  ;;  %v3188_v53 = vmul.f32 %v5563_v1, %v5578_v22  ;;  %v3189_v55 = vmul.f32 %v5591_v21, %v5578_v22 }
 0x1f4   : > { %v3190_v45 = vmul.f32 %v5292_v62, %v5578_v22  ;;  %v3191_v60 = vmul.f32 %v5598_v7, %v5578_v22  ;;  %v3192_v0 = vmul.f32 %v5566_v3, %v5578_v22  ;;  %v3193_v36 = vmul.f32 %v5601_v17, %v5578_v22 }
 0x1f5   : > { %v3194_v8 = vmul.f32 %v5296_v31, %v5578_v22  ;;  %v3195_v14 = vmul.f32 %v5604_v43, %v5578_v22  ;;  %v3196_v26 = vmul.f32 %v5570_v59, %v5578_v22  ;;  %v3197_v18 = vmul.f32 %v5607_v35, %v5578_v22 }
 0x1f6   : > { %v3198_v34 = vmul.f32 %v5299_v32, %v5578_v22  ;;  %v3199_v58 = vmul.f32 %v5610_v47, %v5578_v22  ;;  %v3200_v19 = vmul.f32 %v5573_v42, %v5578_v22  ;;  %v3201_v63 = vmul.f32 %v5613_v28, %v5578_v22 }
 0x1f7   : > { %v3218_v33 = vrot.slane %v3186_v29, 2  ;;  %v3219_v50 = vrot.slane %v3187_v56, 2  ;;  %v3221_v25 = vrot.slane %v3188_v53, 2  ;;  %v3222_v20 = vrot.slane %v3189_v55, 2 }
 0x1f8   : > { %v3224_v52 = vrot.slane %v3190_v45, 2  ;;  %v3225_v30 = vrot.slane %v3191_v60, 2  ;;  %v3227_v54 = vrot.slane %v3192_v0, 2  ;;  %v3228_v48 = vrot.slane %v3193_v36, 2 }
 0x1f9   : > { %v3220_v6 = vsel %vm381_vm1, %v3218_v33, %v3219_v50  ;;  %v3223_v2 = vsel %vm381_vm1, %v3221_v25, %v3222_v20  ;;  %v3230_v12 = vrot.slane %v3194_v8, 2  ;;  %v3231_v57 = vrot.slane %v3195_v14, 2 }
 0x1fa   : > { %v3226_v13 = vsel %vm381_vm1, %v3224_v52, %v3225_v30  ;;  %v3229_v5 = vsel %vm381_vm1, %v3227_v54, %v3228_v48  ;;  %v3233_v11 = vrot.slane %v3196_v26, 2  ;;  %v3234_v22 = vrot.slane %v3197_v18, 2 }
 0x1fb   : > { %v3232_v4 = vsel %vm381_vm1, %v3230_v12, %v3231_v57  ;;  %v3236_v27 = vrot.slane %v3198_v34, 2  ;;  %v3237_v38 = vrot.slane %v3199_v58, 2  ;;  %v3239_v9 = vrot.slane %v3200_v19, 2 }
 0x1fc   : > { %v3235_v10 = vsel %vm381_vm1, %v3233_v11, %v3234_v22  ;;  %v3240_v37 = vrot.slane %v3201_v63, 2  ;;  %v3250_v29 = vadd.f32 %v3220_v6, %v3177_v16  ;;  %v3251_v56 = vadd.f32 %v3223_v2, %v3178_v24 }
 0x1fd   : > { %v3238_v53 = vsel %vm381_vm1, %v3236_v27, %v3237_v38  ;;  %v3252_v55 = vadd.f32 %v3226_v13, %v3179_v61  ;;  %v3253_v45 = vadd.f32 %v3229_v5, %v3180_v39  ;;  %v3254_v60 = vadd.f32 %v3232_v4, %v3181_v15 }
 0x1fe   : > { %v3241_v0 = vsel %vm381_vm1, %v3239_v9, %v3240_v37  ;;  %v3255_v36 = vadd.f32 %v3235_v10, %v3182_v44  ;;  %v3256_v8 = vadd.f32 %v3238_v53, %v3183_v41  ;;  %v3259_v14 = vmul.f32 %v5560_v49, %v5581_v40 }
 0x1ff   : > { %v3257_v26 = vadd.f32 %v3241_v0, %v3184_v51  ;;  %v3260_v18 = vmul.f32 %v5588_v23, %v5581_v40  ;;  %v3261_v16 = vmul.f32 %v5563_v1, %v5581_v40  ;;  %v3262_v24 = vmul.f32 %v5591_v21, %v5581_v40 }
 0x200   : > { %v3263_v61 = vmul.f32 %v5292_v62, %v5581_v40  ;;  %v3264_v39 = vmul.f32 %v5598_v7, %v5581_v40  ;;  %v3265_v15 = vmul.f32 %v5566_v3, %v5581_v40  ;;  %v3266_v44 = vmul.f32 %v5601_v17, %v5581_v40 }
 0x201   : > { %v3267_v41 = vmul.f32 %v5296_v31, %v5581_v40  ;;  %v3268_v51 = vmul.f32 %v5604_v43, %v5581_v40  ;;  %v3269_v34 = vmul.f32 %v5570_v59, %v5581_v40  ;;  %v3270_v58 = vmul.f32 %v5607_v35, %v5581_v40 }
 0x202   : > { %v3271_v19 = vmul.f32 %v5299_v32, %v5581_v40  ;;  %v3272_v63 = vmul.f32 %v5610_v47, %v5581_v40  ;;  %v3273_v33 = vmul.f32 %v5573_v42, %v5581_v40  ;;  %v3274_v50 = vmul.f32 %v5613_v28, %v5581_v40 }
 0x203   : > { %v3291_v25 = vrot.slane %v3259_v14, 3  ;;  %v3292_v20 = vrot.slane %v3260_v18, 3  ;;  %v3294_v52 = vrot.slane %v3261_v16, 3  ;;  %v3295_v30 = vrot.slane %v3262_v24, 3 }
 0x204   : > { %v3297_v54 = vrot.slane %v3263_v61, 3  ;;  %v3298_v48 = vrot.slane %v3264_v39, 3  ;;  %v3300_v6 = vrot.slane %v3265_v15, 3  ;;  %v3301_v2 = vrot.slane %v3266_v44, 3 }
 0x205   : > { %v3293_v12 = vsel %vm455_vm2, %v3291_v25, %v3292_v20  ;;  %v3296_v32 = vsel %vm455_vm2, %v3294_v52, %v3295_v30  ;;  %v3303_v57 = vrot.slane %v3267_v41, 3  ;;  %v3304_v13 = vrot.slane %v3268_v51, 3 }
 0x206   : > { %v3299_v5 = vsel %vm455_vm2, %v3297_v54, %v3298_v48  ;;  %v3302_v11 = vsel %vm455_vm2, %v3300_v6, %v3301_v2  ;;  %v3306_v22 = vrot.slane %v3269_v34, 3  ;;  %v3307_v40 = vrot.slane %v3270_v58, 3 }
 0x207   : > { %v3305_v4 = vsel %vm455_vm2, %v3303_v57, %v3304_v13  ;;  %v3309_v27 = vrot.slane %v3271_v19, 3  ;;  %v3310_v38 = vrot.slane %v3272_v63, 3  ;;  %v3312_v9 = vrot.slane %v3273_v33, 3  ;;  %v5739_v33 = vld [vmem:[%s3914_s21 + $0xc0] sm:$0xff] }
 0x208   : > { %v3308_v10 = vsel %vm455_vm2, %v3306_v22, %v3307_v40  ;;  %v3313_v37 = vrot.slane %v3274_v50, 3  ;;  %v3323_v53 = vadd.f32 %v3293_v12, %v3250_v29  ;;  %v3324_v14 = vadd.f32 %v3296_v32, %v3251_v56 }
 0x209   : > { %v3311_v0 = vsel %vm455_vm2, %v3309_v27, %v3310_v38  ;;  %v3325_v18 = vadd.f32 %v3299_v5, %v3252_v55  ;;  %v3326_v16 = vadd.f32 %v3302_v11, %v3253_v45  ;;  %v3327_v61 = vadd.f32 %v3305_v4, %v3254_v60 }
 0x20a   : > { %v3314_v24 = vsel %vm455_vm2, %v3312_v9, %v3313_v37  ;;  %v3328_v39 = vadd.f32 %v3308_v10, %v3255_v36  ;;  %v3331_v15 = vperm.slane %v5554_v46, 4  ;;  %v3329_v44 = vadd.f32 %v3311_v0, %v3256_v8 }
 0x20b   : > { %v3330_v41 = vadd.f32 %v3314_v24, %v3257_v26  ;;  %v5721_v51 = vperm.slane %v5554_v46, 5  ;;  %v5724_v34 = vperm.slane %v5554_v46, 6 }
 0x20c   : > { %v3332_v29 = vmul.f32 %v5560_v49, %v3331_v15  ;;  %v3333_v56 = vmul.f32 %v5588_v23, %v3331_v15  ;;  %v3334_v55 = vmul.f32 %v5563_v1, %v3331_v15  ;;  %v3335_v45 = vmul.f32 %v5591_v21, %v3331_v15 }
 0x20d   : > { %v3336_v60 = vmul.f32 %v5292_v62, %v3331_v15  ;;  %v3337_v36 = vmul.f32 %v5598_v7, %v3331_v15  ;;  %v3338_v8 = vmul.f32 %v5566_v3, %v3331_v15  ;;  %v3339_v26 = vmul.f32 %v5601_v17, %v3331_v15 }
 0x20e   : > { %v3340_v58 = vmul.f32 %v5296_v31, %v3331_v15  ;;  %v3341_v46 = vmul.f32 %v5604_v43, %v3331_v15  ;;  %v3342_v19 = vmul.f32 %v5570_v59, %v3331_v15  ;;  %v3343_v63 = vmul.f32 %v5607_v35, %v3331_v15 }
 0x20f   : > { %v3344_v50 = vmul.f32 %v5739_v33, %v3331_v15  ;;  %v3345_v62 = vmul.f32 %v5610_v47, %v3331_v15  ;;  %v3346_v25 = vmul.f32 %v5573_v42, %v3331_v15  ;;  %v3347_v20 = vmul.f32 %v5613_v28, %v3331_v15 }
 0x210   : > { %v3364_v52 = vrot.slane %v3332_v29, 4  ;;  %v3365_v30 = vrot.slane %v3333_v56, 4  ;;  %v3367_v54 = vrot.slane %v3334_v55, 4  ;;  %v3368_v31 = vrot.slane %v3335_v45, 4 }
 0x211   : > { %v3370_v48 = vrot.slane %v3336_v60, 4  ;;  %v3371_v6 = vrot.slane %v3337_v36, 4  ;;  %v3373_v2 = vrot.slane %v3338_v8, 4  ;;  %v3374_v12 = vrot.slane %v3339_v26, 4 }
 0x212   : > { %v3366_v32 = vsel %vm529_vm3, %v3364_v52, %v3365_v30  ;;  %v3369_v57 = vsel %vm529_vm3, %v3367_v54, %v3368_v31  ;;  %v3376_v13 = vrot.slane %v3340_v58, 4  ;;  %v3377_v5 = vrot.slane %v3341_v46, 4 }
 0x213   : > { %v3372_v11 = vsel %vm529_vm3, %v3370_v48, %v3371_v6  ;;  %v3375_v22 = vsel %vm529_vm3, %v3373_v2, %v3374_v12  ;;  %v3379_v40 = vrot.slane %v3342_v19, 4  ;;  %v3380_v4 = vrot.slane %v3343_v63, 4 }
 0x214   : > { %v3378_v27 = vsel %vm529_vm3, %v3376_v13, %v3377_v5  ;;  %v3382_v38 = vrot.slane %v3344_v50, 4  ;;  %v3383_v9 = vrot.slane %v3345_v62, 4  ;;  %v3385_v10 = vrot.slane %v3346_v25, 4 }
 0x215   : > { %v3381_v37 = vsel %vm529_vm3, %v3379_v40, %v3380_v4  ;;  %v3386_v0 = vrot.slane %v3347_v20, 4  ;;  %v3396_v24 = vadd.f32 %v3366_v32, %v3323_v53  ;;  %v3397_v15 = vadd.f32 %v3369_v57, %v3324_v14 }
 0x216   : > { %v3384_v29 = vsel %vm529_vm3, %v3382_v38, %v3383_v9  ;;  %v3398_v56 = vadd.f32 %v3372_v11, %v3325_v18  ;;  %v3399_v55 = vadd.f32 %v3375_v22, %v3326_v16  ;;  %v3400_v45 = vadd.f32 %v3378_v27, %v3327_v61  ;;  %v3837_v18 = vld [vmem:[%s3914_s21 + $0x80] sm:$0xff] }
 0x217   : > { %v3387_v60 = vsel %vm529_vm3, %v3385_v10, %v3386_v0  ;;  %v3401_v36 = vadd.f32 %v3381_v37, %v3328_v39  ;;  %v3402_v8 = vadd.f32 %v3384_v29, %v3329_v44  ;;  %v3405_v26 = vmul.f32 %v5560_v49, %v5721_v51 }
 0x218   : > { %v3403_v58 = vadd.f32 %v3387_v60, %v3330_v41  ;;  %v3406_v46 = vmul.f32 %v5588_v23, %v5721_v51  ;;  %v3407_v53 = vmul.f32 %v5563_v1, %v5721_v51  ;;  %v3408_v14 = vmul.f32 %v5591_v21, %v5721_v51  ;;  %v3838_v41 = vld [vmem:[%s3914_s21 + $0xa0] sm:$0xff] }
 0x219   : > { %v3409_v16 = vmul.f32 %v3837_v18, %v5721_v51  ;;  %v3410_v61 = vmul.f32 %v5598_v7, %v5721_v51  ;;  %v3411_v39 = vmul.f32 %v5566_v3, %v5721_v51  ;;  %v3412_v44 = vmul.f32 %v5601_v17, %v5721_v51 }
 0x21a   : > { %v3413_v19 = vmul.f32 %v3838_v41, %v5721_v51  ;;  %v3414_v63 = vmul.f32 %v5604_v43, %v5721_v51  ;;  %v3415_v50 = vmul.f32 %v5570_v59, %v5721_v51  ;;  %v3416_v62 = vmul.f32 %v5607_v35, %v5721_v51 }
 0x21b   : > { %v3417_v25 = vmul.f32 %v5739_v33, %v5721_v51  ;;  %v3418_v20 = vmul.f32 %v5610_v47, %v5721_v51  ;;  %v3419_v52 = vmul.f32 %v5573_v42, %v5721_v51  ;;  %v3420_v30 = vmul.f32 %v5613_v28, %v5721_v51 }
 0x21c   : > { %v3437_v54 = vrot.slane %v3405_v26, 5  ;;  %v3438_v31 = vrot.slane %v3406_v46, 5  ;;  %v3440_v48 = vrot.slane %v3407_v53, 5  ;;  %v3441_v6 = vrot.slane %v3408_v14, 5 }
 0x21d   : > { %v3443_v2 = vrot.slane %v3409_v16, 5  ;;  %v3444_v12 = vrot.slane %v3410_v61, 5  ;;  %v3446_v32 = vrot.slane %v3411_v39, 5  ;;  %v3447_v57 = vrot.slane %v3412_v44, 5 }
 0x21e   : > { %v3439_v13 = vsel %vm603_vm4, %v3437_v54, %v3438_v31  ;;  %v3442_v5 = vsel %vm603_vm4, %v3440_v48, %v3441_v6  ;;  %v3449_v11 = vrot.slane %v3413_v19, 5  ;;  %v3450_v22 = vrot.slane %v3414_v63, 5  ;;  %v3814_v54 = vld [vmem:[%s5849_s2] ss:$0 sm:$0xff] }
 0x21f   : > { %v3445_v40 = vsel %vm603_vm4, %v3443_v2, %v3444_v12  ;;  %v3448_v4 = vsel %vm603_vm4, %v3446_v32, %v3447_v57  ;;  %v3452_v27 = vrot.slane %v3415_v50, 5  ;;  %v3453_v51 = vrot.slane %v3416_v62, 5 }
 0x220   : > { %v3451_v38 = vsel %vm603_vm4, %v3449_v11, %v3450_v22  ;;  %v3455_v9 = vrot.slane %v3417_v25, 5  ;;  %v3456_v10 = vrot.slane %v3418_v20, 5  ;;  %v3458_v37 = vrot.slane %v3419_v52, 5 }
 0x221   : > { %v3454_v0 = vsel %vm603_vm4, %v3452_v27, %v3453_v51  ;;  %v3459_v29 = vrot.slane %v3420_v30, 5  ;;  %v3469_v60 = vadd.f32 %v3439_v13, %v3396_v24  ;;  %v3470_v26 = vadd.f32 %v3442_v5, %v3397_v15 }
 0x222   : > { %v3457_v46 = vsel %vm603_vm4, %v3455_v9, %v3456_v10  ;;  %v3471_v53 = vadd.f32 %v3445_v40, %v3398_v56  ;;  %v3472_v14 = vadd.f32 %v3448_v4, %v3399_v55  ;;  %v3473_v16 = vadd.f32 %v3451_v38, %v3400_v45 }
 0x223   : > { %v3460_v61 = vsel %vm603_vm4, %v3458_v37, %v3459_v29  ;;  %v3474_v39 = vadd.f32 %v3454_v0, %v3401_v36  ;;  %v3475_v44 = vadd.f32 %v3457_v46, %v3402_v8  ;;  %v3478_v19 = vmul.f32 %v5560_v49, %v5724_v34 }
 0x224   : > { %v3476_v63 = vadd.f32 %v3460_v61, %v3403_v58  ;;  %v3479_v50 = vmul.f32 %v5588_v23, %v5724_v34  ;;  %v3480_v24 = vmul.f32 %v5563_v1, %v5724_v34  ;;  %v3481_v15 = vmul.f32 %v5591_v21, %v5724_v34 }
 0x225   : > { %v3482_v56 = vmul.f32 %v3837_v18, %v5724_v34  ;;  %v3483_v55 = vmul.f32 %v5598_v7, %v5724_v34  ;;  %v3484_v45 = vmul.f32 %v5566_v3, %v5724_v34  ;;  %v3485_v49 = vmul.f32 %v5601_v17, %v5724_v34 }
 0x226   : > { %v3486_v36 = vmul.f32 %v3838_v41, %v5724_v34  ;;  %v3487_v23 = vmul.f32 %v5604_v43, %v5724_v34  ;;  %v3488_v1 = vmul.f32 %v5570_v59, %v5724_v34  ;;  %v3489_v21 = vmul.f32 %v5607_v35, %v5724_v34 }
 0x227   : > { %v3490_v7 = vmul.f32 %v5739_v33, %v5724_v34  ;;  %v3491_v3 = vmul.f32 %v5610_v47, %v5724_v34  ;;  %v3492_v17 = vmul.f32 %v5573_v42, %v5724_v34  ;;  %v3493_v8 = vmul.f32 %v5613_v28, %v5724_v34 }
 0x228   : > { %v3510_v43 = vrot.slane %v3478_v19, 6  ;;  %v3511_v58 = vrot.slane %v3479_v50, 6  ;;  %v3513_v18 = vrot.slane %v3480_v24, 6  ;;  %v3514_v59 = vrot.slane %v3481_v15, 6 }
 0x229   : > { %v3516_v41 = vrot.slane %v3482_v56, 6  ;;  %v3517_v62 = vrot.slane %v3483_v55, 6  ;;  %v3519_v35 = vrot.slane %v3484_v45, 6  ;;  %v3520_v25 = vrot.slane %v3485_v49, 6 }
 0x22a   : > { %v3512_v33 = vsel %vm677_vm5, %v3510_v43, %v3511_v58  ;;  %v3515_v20 = vsel %vm677_vm5, %v3513_v18, %v3514_v59  ;;  %v3522_v52 = vrot.slane %v3486_v36, 6  ;;  %v3523_v47 = vrot.slane %v3487_v23, 6 }
 0x22b   : > { %v3518_v42 = vsel %vm677_vm5, %v3516_v41, %v3517_v62  ;;  %v3521_v30 = vsel %vm677_vm5, %v3519_v35, %v3520_v25  ;;  %v3525_v28 = vrot.slane %v3488_v1, 6  ;;  %v3526_v34 = vrot.slane %v3489_v21, 6 }
 0x22c   : > { %v3524_v31 = vsel %vm677_vm5, %v3522_v52, %v3523_v47  ;;  %v3528_v48 = vrot.slane %v3490_v7, 6  ;;  %v3529_v6 = vrot.slane %v3491_v3, 6  ;;  %v3531_v2 = vrot.slane %v3492_v17, 6 }
 0x22d   : > { %v3527_v12 = vsel %vm677_vm5, %v3525_v28, %v3526_v34  ;;  %v3532_v32 = vrot.slane %v3493_v8, 6  ;;  %v3542_v57 = vadd.f32 %v3512_v33, %v3469_v60  ;;  %v3543_v13 = vadd.f32 %v3515_v20, %v3470_v26 }
 0x22e   : > { %v3530_v5 = vsel %vm677_vm5, %v3528_v48, %v3529_v6  ;;  %v3544_v11 = vadd.f32 %v3518_v42, %v3471_v53  ;;  %v3545_v22 = vadd.f32 %v3521_v30, %v3472_v14  ;;  %v3546_v40 = vadd.f32 %v3524_v31, %v3473_v16 }
 0x22f   : > { %v3533_v4 = vsel %vm677_vm5, %v3531_v2, %v3532_v32  ;;  %v3547_v27 = vadd.f32 %v3527_v12, %v3474_v39  ;;  %v3548_v51 = vadd.f32 %v3530_v5, %v3475_v44  ;;  %v3553_v38 = vadd.f32 %v3814_v54, %v3542_v57 }
 0x230   : > { %v3549_v9 = vadd.f32 %v3533_v4, %v3476_v63  ;;  %v3554_v10 = vadd.f32 %v3814_v54, %v3543_v13  ;;  %v3555_v37 = vadd.f32 %v3814_v54, %v3544_v11  ;;  %v3556_v0 = vadd.f32 %v3814_v54, %v3545_v22 }
 0x231   : > { %v3557_v29 = vadd.f32 %v3814_v54, %v3546_v40  ;;  %3561 = vst [vmem:[%s232_s12] sm:$0xff] %v3553_v38  ;;  %v3558_v60 = vadd.f32 %v3814_v54, %v3547_v27  ;;  %v3559_v26 = vadd.f32 %v3814_v54, %v3548_v51 }
 0x232   : > { %3562 = vst [vmem:[%s232_s12 + $0x8] sm:$0xff] %v3554_v10  ;;  %v3560_v46 = vadd.f32 %v3814_v54, %v3549_v9 }
 0x233   : > { %3563 = vst [vmem:[%s232_s12 + $0x10] sm:$0xff] %v3555_v37 }
 0x234   : > { %3564 = vst [vmem:[%s232_s12 + $0x18] sm:$0xff] %v3556_v0 }
 0x235   : > { %3565 = vst [vmem:[%s232_s12 + $0x20] sm:$0xff] %v3557_v29 }
 0x236   : > { %3566 = vst [vmem:[%s232_s12 + $0x28] sm:$0xff] %v3558_v60 }
 0x237   : > { %3567 = vst [vmem:[%s232_s12 + $0x30] sm:$0xff] %v3559_v26 }
 0x238   : > { %3568 = vst [vmem:[%s232_s12 + $0x38] sm:$0xff] %v3560_v46 }
 0x239 PF: > { %s13_s14 = sadd.s32 1, %s3861_s14   ;;  %s5851_s12 = smov %s3857_s13 }
 0x23a   : > { %p10_p5 = scmp.ge.s32.totalorder %s13_s14, 4   ;;  %s5852_s13 = smov %s5854_s15 }
 0x23c   :  { %12 = sbr.rel (!%p10_p5) target bundleno = 2 (0x2), region = 74 }

</bundles_post_ra>
